<compile_context>
chip_gen: v7x
topology: tpu7x:2x2x1
jax: 0.10.0
libtpu: 0.0.40
codegen_flags: <defaults>
</compile_context>

<pallas_src>
import functools
import numpy as np
import jax
import jax.numpy as jnp
from jax import lax
from jax.experimental import pallas as pl
from jax.experimental.pallas import tpu as pltpu


def _round_up(x, m):
    return ((x + m - 1) // m) * m


def _largest_divisor_leq(n, cap):
    cap = max(1, min(n, cap))
    for d in range(cap, 0, -1):
        if n % d == 0:
            return d
    return 1


# Per-generation budgets (v5e/v6e: 128 MiB VMEM, v7x: 64 MiB).
try:
    _VMEM_CAP = int(pltpu.get_tpu_info().vmem_capacity_bytes)
except Exception:  # conservative fallback (also correct on v7x)
    _VMEM_CAP = 64 * 1024 * 1024
_VMEM_LIMIT = min((_VMEM_CAP * 3) // 4, 96 * 1024 * 1024)
_ACC_CAP = (2 * 1024 * 1024) if _VMEM_CAP >= (96 * 1024 * 1024) else (1024 * 1024)


# --------------------------------------------------------------------------
# Shared stripe compute: conv3x3 on one flattened padded row-stripe.
#
# Flat layout: flat_row = row * wpa + col, so output row m needs input flat
# rows m + kh*wpa + kw.  Each kh tap is a 16-aligned slice (wpa % 16 == 0);
# the kw shift is applied once per kw on the f32 partial sums and folded
# straight into a single running accumulator.
# --------------------------------------------------------------------------
def _stripe_conv(x3, idx, w_ref, b_ref, *, tr, wpa, wo, act):
    """x3: ref (?, >= (tr+3)*wpa, Cin) bf16; idx: static leading index.
    Returns the (tr, wo, Cout_tile) f32 stripe with bias + activation applied."""
    m2 = tr * wpa                 # flat rows holding real outputs
    mp = m2 + 8                   # a few extra rows so kw-shifted slices stay in range
    r = None
    for kw in range(3):
        p = None
        for kh in range(3):
            a = x3[idx, pl.ds(kh * wpa, mp), :]            # 16-aligned sublane offset
            d = jnp.dot(a, w_ref[kh, kw], preferred_element_type=jnp.float32)
            p = d if p is None else p + d
        pk = p[kw:kw + m2]        # fold the kw shift directly into the running sum
        r = pk if r is None else r + pk
    r = r + b_ref[...]
    if act == "relu":
        r = jnp.maximum(r, 0.0)
    # single slab epilogue: un-flatten rows, drop the (wpa - wo) pad columns
    return r.reshape(tr, wpa, -1)[:, :wo, :]


# Path A: whole image fits in one stripe -> plain auto-pipelined BlockSpecs.
def _conv3x3_block_kernel(x_ref, w_ref, b_ref, o_ref, *, tr, wpa, wo, act):
    y = _stripe_conv(x_ref, 0, w_ref, b_ref, tr=tr, wpa=wpa, wo=wo, act=act)
    o_ref[0] = y.astype(o_ref.dtype)


# Path B: big images.  The padded activation stays in HBM (pl.ANY) and the
# kernel DMAs overlapping (tr+3)-row stripes itself, double-buffered so the
# next stripe's fetch overlaps the current stripe's compute.  No jnp.stack.
def _conv3x3_stripe_dma_kernel(x_hbm, w_ref, b_ref, o_ref, xbuf, sem,
                               *, ns, tr, wpa, wo, act):
    n = pl.program_id(1)                            # grid = (nj, N)
    s2 = (tr + 3) * wpa

    def _copy(k, slot):
        return pltpu.make_async_copy(
            x_hbm.at[n, pl.ds(k * tr * wpa, s2), :], xbuf.at[slot], sem.at[slot])

    _copy(0, 0).start()
    for k in range(ns):                             # static unroll (ns <= 8)
        slot = k & 1
        _copy(k, slot).wait()
        if k + 1 < ns:
            _copy(k + 1, 1 - slot).start()          # prefetch next stripe
        y = _stripe_conv(xbuf, slot, w_ref, b_ref, tr=tr, wpa=wpa, wo=wo, act=act)
        o_ref[0, k * tr:(k + 1) * tr] = y.astype(o_ref.dtype)


def conv2d_3x3(x, w_t, b, padding, act, acc_cap_elems=None):
    """x: (N,H,W,Cin) bf16 NHWC; w_t: (3,3,Cin,Cout) bf16; b: (1,Cout) f32."""
    N, H, W, Cin = x.shape
    Cout = w_t.shape[-1]
    p = padding
    Ho, Wo = H + 2 * p - 2, W + 2 * p - 2
    wpa = _round_up(Wo + 2, 16)                  # 16-aligned: bf16 sublane packing
    cpad = 0 if Cin >= 8 else 8 - Cin            # first layer: Cin 3 -> 8
    if cpad:
        w_t = jnp.pad(w_t, ((0, 0), (0, 0), (0, cpad), (0, 0)))
    Cip = Cin + cpad

    tn = Cout if Cout <= 256 else 256            # 256-wide MXU tiles on deep layers
    assert Cout % tn == 0
    nj = Cout // tn
    cap = _ACC_CAP if acc_cap_elems is None else acc_cap_elems
    tr = _largest_divisor_leq(Ho, max(1, cap // tn // wpa))
    ns = Ho // tr
    s2 = (tr + 3) * wpa
    Hp = Ho + 3                                  # padded rows kept in HBM

    # Single fused pad (spatial + channel); the reshape to flat rows is metadata-only.
    xp = jnp.pad(x, ((0, 0), (p, Hp - H - p), (p, wpa - W - p), (0, cpad)))
    x2 = xp.reshape(N, Hp * wpa, Cip)

    out_shape = jax.ShapeDtypeStruct((N, Ho, Wo, Cout), jnp.bfloat16)
    cp = pltpu.CompilerParams(dimension_semantics=("parallel", "parallel"),
                              vmem_limit_bytes=_VMEM_LIMIT)

    if ns == 1:
        # keep the bigger operand resident: iterate the other one on the inner axis
        if 9 * tn > s2:
            grid = (nj, N)
            xm = lambda j, n: (n, 0, 0)
            wm = lambda j, n: (0, 0, 0, j)
            bm = lambda j, n: (0, j)
            om = lambda j, n: (n, 0, 0, j)
        else:
            grid = (N, nj)
            xm = lambda n, j: (n, 0, 0)
            wm = lambda n, j: (0, 0, 0, j)
            bm = lambda n, j: (0, j)
            om = lambda n, j: (n, 0, 0, j)
        return pl.pallas_call(
            functools.partial(_conv3x3_block_kernel, tr=tr, wpa=wpa, wo=Wo, act=act),
            out_shape=out_shape,
            grid_spec=pltpu.PrefetchScalarGridSpec(
                num_scalar_prefetch=0, grid=grid,
                in_specs=[pl.BlockSpec((1, s2, Cip), xm),
                          pl.BlockSpec((3, 3, Cip, tn), wm),
                          pl.BlockSpec((1, tn), bm)],
                out_specs=pl.BlockSpec((1, Ho, Wo, tn), om)),
            compiler_params=cp,
        )(x2, w_t, b)

    return pl.pallas_call(
        functools.partial(_conv3x3_stripe_dma_kernel,
                          ns=ns, tr=tr, wpa=wpa, wo=Wo, act=act),
        out_shape=out_shape,
        grid_spec=pltpu.PrefetchScalarGridSpec(
            num_scalar_prefetch=0, grid=(nj, N),
            in_specs=[pl.BlockSpec(memory_space=pl.ANY),          # raw HBM activation
                      pl.BlockSpec((3, 3, Cip, tn), lambda j, n: (0, 0, 0, j)),
                      pl.BlockSpec((1, tn), lambda j, n: (0, j))],
            out_specs=pl.BlockSpec((1, Ho, Wo, tn), lambda j, n: (n, 0, 0, j)),
            scratch_shapes=[pltpu.VMEM((2, s2, Cip), jnp.bfloat16),
                            pltpu.SemaphoreType.DMA((2,))]),
        compiler_params=cp,
    )(x2, w_t, b)


# --------------------------------------------------------------------------
# 2x2 max-pool (stride 2).  Wrapper reshape is metadata-only:
# (N,H,W,C) -> (N, Ho, 2, Wo, 2*C); kernel reduces the row pair, then the
# column pair (first C lanes vs last C lanes).
# --------------------------------------------------------------------------
def _maxpool2x2_kernel(x_ref, o_ref, *, c):
    a = x_ref[0, :, 0]                       # even rows  (trp, Wo, 2C)
    b = x_ref[0, :, 1]                       # odd rows
    m = jnp.maximum(a, b)
    o_ref[0] = jnp.maximum(m[:, :, :c], m[:, :, c:])


def maxpool2x2(x):
    N, H, W, C = x.shape
    Ho, Wo = H // 2, W // 2
    xr = x.reshape(N, Ho, 2, Wo, 2 * C)      # free reshape
    trp = _largest_divisor_leq(Ho, max(1, (_VMEM_LIMIT // 12) // (Wo * C * 8)))
    return pl.pallas_call(
        functools.partial(_maxpool2x2_kernel, c=C),
        out_shape=jax.ShapeDtypeStruct((N, Ho, Wo, C), x.dtype),
        grid_spec=pltpu.PrefetchScalarGridSpec(
            num_scalar_prefetch=0, grid=(N, Ho // trp),
            in_specs=[pl.BlockSpec((1, trp, 2, Wo, 2 * C),
                                   lambda n, i: (n, i, 0, 0, 0))],
            out_specs=pl.BlockSpec((1, trp, Wo, C), lambda n, i: (n, i, 0, 0))),
        compiler_params=pltpu.CompilerParams(
            dimension_semantics=("parallel", "parallel"),
            vmem_limit_bytes=_VMEM_LIMIT),
    )(xr)


# --------------------------------------------------------------------------
# AvgPool2d(4) on a 4x4 map + fused Sigmoid -> (N, C).
# --------------------------------------------------------------------------
def _avgpool4_sigmoid_kernel(x_ref, o_ref):
    v = x_ref[0].astype(jnp.float32)             # (4, 4, C)
    s = jnp.sum(v, axis=0)                       # (4, C)
    s = jnp.sum(s, axis=0, keepdims=True)        # (1, C)
    o_ref[...] = jax.nn.sigmoid(s * (1.0 / 16.0))


def avgpool4_sigmoid(x):
    N, H, W, C = x.shape
    assert H == 4 and W == 4
    return pl.pallas_call(
        _avgpool4_sigmoid_kernel,
        out_shape=jax.ShapeDtypeStruct((N, C), jnp.float32),
        grid_spec=pltpu.PrefetchScalarGridSpec(
            num_scalar_prefetch=0, grid=(N,),
            in_specs=[pl.BlockSpec((1, 4, 4, C), lambda n: (n, 0, 0, 0))],
            out_specs=pl.BlockSpec((1, C), lambda n: (n, 0))),
        compiler_params=pltpu.CompilerParams(
            dimension_semantics=("parallel",),
            vmem_limit_bytes=_VMEM_LIMIT),
    )(x)


# --------------------------------------------------------------------------
# I2V model: VGG16 features + top_layers
# --------------------------------------------------------------------------
VGG16_CFG = [64, 64, "M", 128, 128, "M", 256, 256, 256, "M",
             512, 512, 512, "M", 512, 512, 512, "M"]
TOP_CFG = [(512, 1024, 1), (1024, 1024, 0), (1024, 512, 0)]   # (cin, cout, pad)


def init_params(key):
    # TODO(synk): pretrained VGG16 weights cannot be loaded in-script; He init used.
    feats, cin = [], 3
    for v in VGG16_CFG:
        if v == "M":
            continue
        key, k1 = jax.random.split(key)
        w = jax.random.normal(k1, (3, 3, cin, v), jnp.float32) * np.sqrt(2.0 / (cin * 9))
        feats.append((w.astype(jnp.bfloat16), jnp.zeros((1, v), jnp.float32)))
        cin = v
    top = []
    for cin, cout, _pad in TOP_CFG:
        key, k1 = jax.random.split(key)
        w = jax.random.normal(k1, (3, 3, cin, cout), jnp.float32) * np.sqrt(2.0 / (cin * 9))
        top.append((w.astype(jnp.bfloat16), jnp.zeros((1, cout), jnp.float32)))
    return {"features": feats, "top": top}


def i2v_forward(params, img_nchw):
    x = jnp.transpose(img_nchw, (0, 2, 3, 1)).astype(jnp.bfloat16)   # NCHW -> NHWC bf16
    idx = 0
    for v in VGG16_CFG:
        if v == "M":
            x = maxpool2x2(x)
        else:
            w, b = params["features"][idx]
            idx += 1
            x = conv2d_3x3(x, w, b, padding=1, act="relu")
    for (w, b), (_ci, _co, pad) in zip(params["top"], TOP_CFG):
        x = conv2d_3x3(x, w, b, padding=pad, act="none")
    # TODO(synk): nn.Dropout has no deterministic Pallas equivalent; eval-mode identity.
    return avgpool4_sigmoid(x)        # AvgPool2d(4) + Sigmoid, flattened -> (B, 512)


if __name__ == "__main__":
    key = jax.random.PRNGKey(0)
    pkey, xkey, tkey = jax.random.split(key, 3)

    # --- Test A: auto-pipelined path, padding=1, Cin=3 (channel-pad path) ----
    tx = jax.random.normal(tkey, (1, 16, 16, 3), jnp.float32).astype(jnp.bfloat16)
    tw = (jax.random.normal(jax.random.fold_in(tkey, 1), (3, 3, 3, 64), jnp.float32)
          * 0.05).astype(jnp.bfloat16)
    tb = jax.random.normal(jax.random.fold_in(tkey, 2), (1, 64), jnp.float32) * 0.1
    got = conv2d_3x3(tx, tw, tb, padding=1, act="none").astype(jnp.float32)
    ref = lax.conv_general_dilated(
        tx.astype(jnp.float32), tw.astype(jnp.float32), (1, 1), ((1, 1), (1, 1)),
        dimension_numbers=("NHWC", "HWIO", "NHWC"),
        precision=lax.Precision.HIGHEST) + tb.reshape(1, 1, 1, 64)
    assert bool(jnp.allclose(got, ref, atol=2e-2, rtol=5e-2)), \
        float(jnp.max(jnp.abs(got - ref)))

    # --- Test B: striped manual-DMA path (ns>1), padding=0, nj>1, fused ReLU -
    tx2 = jax.random.normal(jax.random.fold_in(tkey, 3), (1, 18, 18, 16),
                            jnp.float32).astype(jnp.bfloat16)
    tw2 = (jax.random.normal(jax.random.fold_in(tkey, 4), (3, 3, 16, 512), jnp.float32)
           * 0.05).astype(jnp.bfloat16)
    tb2 = jax.random.normal(jax.random.fold_in(tkey, 5), (1, 512), jnp.float32) * 0.1
    got2 = conv2d_3x3(tx2, tw2, tb2, padding=0, act="relu",
                      acc_cap_elems=40000).astype(jnp.float32)
    ref2 = lax.conv_general_dilated(
        tx2.astype(jnp.float32), tw2.astype(jnp.float32), (1, 1), ((0, 0), (0, 0)),
        dimension_numbers=("NHWC", "HWIO", "NHWC"),
        precision=lax.Precision.HIGHEST) + tb2.reshape(1, 1, 1, 512)
    ref2 = jnp.maximum(ref2, 0.0)
    assert bool(jnp.allclose(got2, ref2, atol=2e-2, rtol=5e-2)), \
        float(jnp.max(jnp.abs(got2 - ref2)))

    params = init_params(pkey)
    # Minimum spatial size implied by the forward pass (5 maxpools -> 8x8 -> AvgPool2d(4)).
    img = jax.random.normal(xkey, (2, 3, 256, 256), jnp.float32)

    fwd = jax.jit(i2v_forward)
    out = jax.block_until_ready(fwd(params, img))

    assert out.shape == (2, 512), out.shape
    assert bool(jnp.all(jnp.isfinite(out)))
    assert bool(jnp.all((out >= 0.0) & (out <= 1.0)))   # sigmoid output range
    print("KERNEL_OK")
</pallas_src>

<mosaic_0001>
module attributes {stable_mosaic.version = 11 : i64} {
  func.func @_conv3x3_block_kernel(%arg0: i32, %arg1: i32, %arg2: memref<1x608x8xbf16, #tpu.memory_space<vmem>>, %arg3: memref<3x3x8x64xbf16, #tpu.memory_space<vmem>>, %arg4: memref<1x64xf32, #tpu.memory_space<vmem>>, %arg5: memref<1x16x16x64xbf16, #tpu.memory_space<vmem>>) attributes {dimension_semantics = [#tpu.dimension_semantics<parallel>, #tpu.dimension_semantics<parallel>], iteration_bounds = array<i64: 1, 1>, scalar_prefetch = 0 : i64, scratch_operands = 0 : i64, tpu.core_type = #tpu.core_type<tc>, window_params = [{transform_indices = @transform_0, window_bounds = array<i64: 1, 608, 8>}, {transform_indices = @transform_1, window_bounds = array<i64: 3, 3, 8, 64>}, {transform_indices = @transform_2, window_bounds = array<i64: 1, 64>}, {transform_indices = @transform_3, window_bounds = array<i64: 1, 16, 16, 64>}]} {
    %c0 = arith.constant 0 : index
    %c0_0 = arith.constant 0 : index
    %c0_1 = arith.constant 0 : index
    %0 = vector.load %arg2[%c0, %c0_0, %c0_1] : memref<1x608x8xbf16, #tpu.memory_space<vmem>>, vector<1x520x8xbf16>
    %1 = vector.shape_cast %0 : vector<1x520x8xbf16> to vector<520x8xbf16>
    %c0_2 = arith.constant 0 : index
    %c0_3 = arith.constant 0 : index
    %c0_4 = arith.constant 0 : index
    %c0_5 = arith.constant 0 : index
    %2 = vector.load %arg3[%c0_2, %c0_3, %c0_4, %c0_5] : memref<3x3x8x64xbf16, #tpu.memory_space<vmem>>, vector<1x1x8x64xbf16>
    %3 = vector.shape_cast %2 : vector<1x1x8x64xbf16> to vector<8x64xbf16>
    %cst = arith.constant dense<0.000000e+00> : vector<520x64xf32>
    %4 = tpu.matmul %1, %3, %cst {dimension_numbers = #tpu.dot_dimension_numbers<[1], [0], [0], [1], [0, 0, 1, 1], [], []>} : vector<520x8xbf16>, vector<8x64xbf16>, vector<520x64xf32> -> vector<520x64xf32>
    %c0_6 = arith.constant 0 : index
    %c32 = arith.constant 32 : index
    %c0_7 = arith.constant 0 : index
    %5 = vector.load %arg2[%c0_6, %c32, %c0_7] : memref<1x608x8xbf16, #tpu.memory_space<vmem>>, vector<1x520x8xbf16>
    %6 = vector.shape_cast %5 : vector<1x520x8xbf16> to vector<520x8xbf16>
    %c1 = arith.constant 1 : index
    %c0_8 = arith.constant 0 : index
    %c0_9 = arith.constant 0 : index
    %c0_10 = arith.constant 0 : index
    %7 = vector.load %arg3[%c1, %c0_8, %c0_9, %c0_10] : memref<3x3x8x64xbf16, #tpu.memory_space<vmem>>, vector<1x1x8x64xbf16>
    %8 = vector.shape_cast %7 : vector<1x1x8x64xbf16> to vector<8x64xbf16>
    %cst_11 = arith.constant dense<0.000000e+00> : vector<520x64xf32>
    %9 = tpu.matmul %6, %8, %cst_11 {dimension_numbers = #tpu.dot_dimension_numbers<[1], [0], [0], [1], [0, 0, 1, 1], [], []>} : vector<520x8xbf16>, vector<8x64xbf16>, vector<520x64xf32> -> vector<520x64xf32>
    %10 = arith.addf %4, %9 : vector<520x64xf32>
    %c0_12 = arith.constant 0 : index
    %c64 = arith.constant 64 : index
    %c0_13 = arith.constant 0 : index
    %11 = vector.load %arg2[%c0_12, %c64, %c0_13] : memref<1x608x8xbf16, #tpu.memory_space<vmem>>, vector<1x520x8xbf16>
    %12 = vector.shape_cast %11 : vector<1x520x8xbf16> to vector<520x8xbf16>
    %c2 = arith.constant 2 : index
    %c0_14 = arith.constant 0 : index
    %c0_15 = arith.constant 0 : index
    %c0_16 = arith.constant 0 : index
    %13 = vector.load %arg3[%c2, %c0_14, %c0_15, %c0_16] : memref<3x3x8x64xbf16, #tpu.memory_space<vmem>>, vector<1x1x8x64xbf16>
    %14 = vector.shape_cast %13 : vector<1x1x8x64xbf16> to vector<8x64xbf16>
    %cst_17 = arith.constant dense<0.000000e+00> : vector<520x64xf32>
    %15 = tpu.matmul %12, %14, %cst_17 {dimension_numbers = #tpu.dot_dimension_numbers<[1], [0], [0], [1], [0, 0, 1, 1], [], []>} : vector<520x8xbf16>, vector<8x64xbf16>, vector<520x64xf32> -> vector<520x64xf32>
    %16 = arith.addf %10, %15 : vector<520x64xf32>
    %17 = vector.extract_strided_slice %16 {offsets = [0, 0], sizes = [512, 64], strides = [1, 1]} : vector<520x64xf32> to vector<512x64xf32>
    %c0_18 = arith.constant 0 : index
    %c0_19 = arith.constant 0 : index
    %c0_20 = arith.constant 0 : index
    %18 = vector.load %arg2[%c0_18, %c0_19, %c0_20] : memref<1x608x8xbf16, #tpu.memory_space<vmem>>, vector<1x520x8xbf16>
    %19 = vector.shape_cast %18 : vector<1x520x8xbf16> to vector<520x8xbf16>
    %c0_21 = arith.constant 0 : index
    %c1_22 = arith.constant 1 : index
    %c0_23 = arith.constant 0 : index
    %c0_24 = arith.constant 0 : index
    %20 = vector.load %arg3[%c0_21, %c1_22, %c0_23, %c0_24] : memref<3x3x8x64xbf16, #tpu.memory_space<vmem>>, vector<1x1x8x64xbf16>
    %21 = vector.shape_cast %20 : vector<1x1x8x64xbf16> to vector<8x64xbf16>
    %cst_25 = arith.constant dense<0.000000e+00> : vector<520x64xf32>
    %22 = tpu.matmul %19, %21, %cst_25 {dimension_numbers = #tpu.dot_dimension_numbers<[1], [0], [0], [1], [0, 0, 1, 1], [], []>} : vector<520x8xbf16>, vector<8x64xbf16>, vector<520x64xf32> -> vector<520x64xf32>
    %c0_26 = arith.constant 0 : index
    %c32_27 = arith.constant 32 : index
    %c0_28 = arith.constant 0 : index
    %23 = vector.load %arg2[%c0_26, %c32_27, %c0_28] : memref<1x608x8xbf16, #tpu.memory_space<vmem>>, vector<1x520x8xbf16>
    %24 = vector.shape_cast %23 : vector<1x520x8xbf16> to vector<520x8xbf16>
    %c1_29 = arith.constant 1 : index
    %c1_30 = arith.constant 1 : index
    %c0_31 = arith.constant 0 : index
    %c0_32 = arith.constant 0 : index
    %25 = vector.load %arg3[%c1_29, %c1_30, %c0_31, %c0_32] : memref<3x3x8x64xbf16, #tpu.memory_space<vmem>>, vector<1x1x8x64xbf16>
    %26 = vector.shape_cast %25 : vector<1x1x8x64xbf16> to vector<8x64xbf16>
    %cst_33 = arith.constant dense<0.000000e+00> : vector<520x64xf32>
    %27 = tpu.matmul %24, %26, %cst_33 {dimension_numbers = #tpu.dot_dimension_numbers<[1], [0], [0], [1], [0, 0, 1, 1], [], []>} : vector<520x8xbf16>, vector<8x64xbf16>, vector<520x64xf32> -> vector<520x64xf32>
    %28 = arith.addf %22, %27 : vector<520x64xf32>
    %c0_34 = arith.constant 0 : index
    %c64_35 = arith.constant 64 : index
    %c0_36 = arith.constant 0 : index
    %29 = vector.load %arg2[%c0_34, %c64_35, %c0_36] : memref<1x608x8xbf16, #tpu.memory_space<vmem>>, vector<1x520x8xbf16>
    %30 = vector.shape_cast %29 : vector<1x520x8xbf16> to vector<520x8xbf16>
    %c2_37 = arith.constant 2 : index
    %c1_38 = arith.constant 1 : index
    %c0_39 = arith.constant 0 : index
    %c0_40 = arith.constant 0 : index
    %31 = vector.load %arg3[%c2_37, %c1_38, %c0_39, %c0_40] : memref<3x3x8x64xbf16, #tpu.memory_space<vmem>>, vector<1x1x8x64xbf16>
    %32 = vector.shape_cast %31 : vector<1x1x8x64xbf16> to vector<8x64xbf16>
    %cst_41 = arith.constant dense<0.000000e+00> : vector<520x64xf32>
    %33 = tpu.matmul %30, %32, %cst_41 {dimension_numbers = #tpu.dot_dimension_numbers<[1], [0], [0], [1], [0, 0, 1, 1], [], []>} : vector<520x8xbf16>, vector<8x64xbf16>, vector<520x64xf32> -> vector<520x64xf32>
    %34 = arith.addf %28, %33 : vector<520x64xf32>
    %35 = vector.extract_strided_slice %34 {offsets = [1, 0], sizes = [512, 64], strides = [1, 1]} : vector<520x64xf32> to vector<512x64xf32>
    %36 = arith.addf %17, %35 : vector<512x64xf32>
    %c0_42 = arith.constant 0 : index
    %c0_43 = arith.constant 0 : index
    %c0_44 = arith.constant 0 : index
    %37 = vector.load %arg2[%c0_42, %c0_43, %c0_44] : memref<1x608x8xbf16, #tpu.memory_space<vmem>>, vector<1x520x8xbf16>
    %38 = vector.shape_cast %37 : vector<1x520x8xbf16> to vector<520x8xbf16>
    %c0_45 = arith.constant 0 : index
    %c2_46 = arith.constant 2 : index
    %c0_47 = arith.constant 0 : index
    %c0_48 = arith.constant 0 : index
    %39 = vector.load %arg3[%c0_45, %c2_46, %c0_47, %c0_48] : memref<3x3x8x64xbf16, #tpu.memory_space<vmem>>, vector<1x1x8x64xbf16>
    %40 = vector.shape_cast %39 : vector<1x1x8x64xbf16> to vector<8x64xbf16>
    %cst_49 = arith.constant dense<0.000000e+00> : vector<520x64xf32>
    %41 = tpu.matmul %38, %40, %cst_49 {dimension_numbers = #tpu.dot_dimension_numbers<[1], [0], [0], [1], [0, 0, 1, 1], [], []>} : vector<520x8xbf16>, vector<8x64xbf16>, vector<520x64xf32> -> vector<520x64xf32>
    %c0_50 = arith.constant 0 : index
    %c32_51 = arith.constant 32 : index
    %c0_52 = arith.constant 0 : index
    %42 = vector.load %arg2[%c0_50, %c32_51, %c0_52] : memref<1x608x8xbf16, #tpu.memory_space<vmem>>, vector<1x520x8xbf16>
    %43 = vector.shape_cast %42 : vector<1x520x8xbf16> to vector<520x8xbf16>
    %c1_53 = arith.constant 1 : index
    %c2_54 = arith.constant 2 : index
    %c0_55 = arith.constant 0 : index
    %c0_56 = arith.constant 0 : index
    %44 = vector.load %arg3[%c1_53, %c2_54, %c0_55, %c0_56] : memref<3x3x8x64xbf16, #tpu.memory_space<vmem>>, vector<1x1x8x64xbf16>
    %45 = vector.shape_cast %44 : vector<1x1x8x64xbf16> to vector<8x64xbf16>
    %cst_57 = arith.constant dense<0.000000e+00> : vector<520x64xf32>
    %46 = tpu.matmul %43, %45, %cst_57 {dimension_numbers = #tpu.dot_dimension_numbers<[1], [0], [0], [1], [0, 0, 1, 1], [], []>} : vector<520x8xbf16>, vector<8x64xbf16>, vector<520x64xf32> -> vector<520x64xf32>
    %47 = arith.addf %41, %46 : vector<520x64xf32>
    %c0_58 = arith.constant 0 : index
    %c64_59 = arith.constant 64 : index
    %c0_60 = arith.constant 0 : index
    %48 = vector.load %arg2[%c0_58, %c64_59, %c0_60] : memref<1x608x8xbf16, #tpu.memory_space<vmem>>, vector<1x520x8xbf16>
    %49 = vector.shape_cast %48 : vector<1x520x8xbf16> to vector<520x8xbf16>
    %c2_61 = arith.constant 2 : index
    %c2_62 = arith.constant 2 : index
    %c0_63 = arith.constant 0 : index
    %c0_64 = arith.constant 0 : index
    %50 = vector.load %arg3[%c2_61, %c2_62, %c0_63, %c0_64] : memref<3x3x8x64xbf16, #tpu.memory_space<vmem>>, vector<1x1x8x64xbf16>
    %51 = vector.shape_cast %50 : vector<1x1x8x64xbf16> to vector<8x64xbf16>
    %cst_65 = arith.constant dense<0.000000e+00> : vector<520x64xf32>
    %52 = tpu.matmul %49, %51, %cst_65 {dimension_numbers = #tpu.dot_dimension_numbers<[1], [0], [0], [1], [0, 0, 1, 1], [], []>} : vector<520x8xbf16>, vector<8x64xbf16>, vector<520x64xf32> -> vector<520x64xf32>
    %53 = arith.addf %47, %52 : vector<520x64xf32>
    %54 = vector.extract_strided_slice %53 {offsets = [2, 0], sizes = [512, 64], strides = [1, 1]} : vector<520x64xf32> to vector<512x64xf32>
    %55 = arith.addf %36, %54 : vector<512x64xf32>
    %c0_66 = arith.constant 0 : index
    %c0_67 = arith.constant 0 : index
    %56 = vector.load %arg4[%c0_66, %c0_67] : memref<1x64xf32, #tpu.memory_space<vmem>>, vector<1x64xf32>
    %57 = vector.broadcast %56 : vector<1x64xf32> to vector<512x64xf32>
    %58 = arith.addf %55, %57 : vector<512x64xf32>
    %59 = vector.shape_cast %58 : vector<512x64xf32> to vector<16x32x64xf32>
    %60 = vector.extract_strided_slice %59 {offsets = [0, 0, 0], sizes = [16, 16, 64], strides = [1, 1, 1]} : vector<16x32x64xf32> to vector<16x16x64xf32>
    %61 = arith.truncf %60 : vector<16x16x64xf32> to vector<16x16x64xbf16>
    %c0_68 = arith.constant 0 : index
    %c0_69 = arith.constant 0 : index
    %c0_70 = arith.constant 0 : index
    %c0_71 = arith.constant 0 : index
    %62 = vector.load %arg5[%c0_68, %c0_69, %c0_70, %c0_71] : memref<1x16x16x64xbf16, #tpu.memory_space<vmem>>, vector<1x16x16x64xbf16>
    %63 = vector.shape_cast %62 : vector<1x16x16x64xbf16> to vector<16x16x64xbf16>
    %64 = vector.shape_cast %61 : vector<16x16x64xbf16> to vector<1x16x16x64xbf16>
    tpu.vector_store %arg5[%c0_68, %c0_69, %c0_70, %c0_71], %64 {strides = array<i32>} : memref<1x16x16x64xbf16, #tpu.memory_space<vmem>>, vector<1x16x16x64xbf16>,
    return
  }
  func.func @transform_0(%arg0: i32, %arg1: i32) -> (i32, i32, i32) {
    %c0_i32 = arith.constant 0 : i32
    %c0_i32_0 = arith.constant 0 : i32
    %c0_i32_1 = arith.constant 0 : i32
    return %arg0, %c0_i32, %c0_i32_0 : i32, i32, i32
  }
  func.func @transform_1(%arg0: i32, %arg1: i32) -> (i32, i32, i32, i32) {
    %c0_i32 = arith.constant 0 : i32
    %c0_i32_0 = arith.constant 0 : i32
    %c0_i32_1 = arith.constant 0 : i32
    %c0_i32_2 = arith.constant 0 : i32
    return %c0_i32, %c0_i32_0, %c0_i32_1, %arg1 : i32, i32, i32, i32
  }
  func.func @transform_2(%arg0: i32, %arg1: i32) -> (i32, i32) {
    %c0_i32 = arith.constant 0 : i32
    %c0_i32_0 = arith.constant 0 : i32
    return %c0_i32, %arg1 : i32, i32
  }
  func.func @transform_3(%arg0: i32, %arg1: i32) -> (i32, i32, i32, i32) {
    %c0_i32 = arith.constant 0 : i32
    %c0_i32_0 = arith.constant 0 : i32
    %c0_i32_1 = arith.constant 0 : i32
    return %arg0, %c0_i32, %c0_i32_0, %arg1 : i32, i32, i32, i32
  }
}

</mosaic_0001>

<bundles_post_ra>
// kernel: tpu_custom_call.1
= control target key start
LH: loop header
LB: loop body
LE: loop exit
PB: predicated region body
PF: predicated region fallthrough
CT: control target
= control target key end

     0   :  { %vm351_vm0 = vcmask 1043456   ;;  %v6564_v1 = vmov 0.0   ;;  %vm251_vm1 = vcmask 64512   ;;  %vm6565_vm2 = vmmov 0   ;;  %s8585_s0 = inlined_call_operand.vmem [shape: bf16[1,608,8], index: 0, kind: input, shape index: {}]   ;;  %s8586_s1 = inlined_call_operand.vmem [shape: bf16[3,3,8,64], index: 1, kind: input, shape index: {}]   ;;  %s8587_s2 = inlined_call_operand.vmem [shape: f32[1,64], index: 2, kind: input, shape index: {}]   ;;  %s8588_s3 = inlined_call_operand.hbm [shape: bf16[1,16,16,64], index: 3, kind: output, shape index: {}]  }
   0x1   :  { %v3933_v0 = vld [vmem:[%s8586_s1 + $0xc] sm:$0xf]  ;;  %4678 = vmatprep.subr.bf16.mxu0 %v6564_v1  ;;  %5884 = vmatprep.subr.bf16.mxu1 %v6564_v1  ;;  %v6598_v3 = vld [vmem:[%s8585_s0 + $0x10] sm:$0xff]   ;;  %v6603_v4 = vld [vmem:[%s8585_s0 + $0x98] sm:$0xff]  }
   0x2   :  { %v353_v2 = vsel %vm351_vm0, %v3933_v0, 0  ;;  %4680 = vmatprep.mubr.msk.bf16.mxu0 %vm6565_vm2, %v6564_v1  ;;  %4748 = vmatprep.mubr.msk.bf16.mxu1 %vm6565_vm2, %v6564_v1  ;;  %v4036_v5 = vld [vmem:[%s8586_s1 + $0x18] sm:$0xf]  ;;  %v81_v6 = vld [vmem:[%s8586_s1] sm:$0xf]  ;;  %v6655_v12 = vld [vmem:[%s8585_s0 + $0xa8] sm:$0xff]  }
   0x3   :  { %4679 = vmatpush3.bf16.msra.mxu0 %v353_v2  ;;  %5885 = vmatpush3.bf16.msra.mxu1 %v353_v2  ;;  %v1234_v7 = vsel %vm351_vm0, %v4036_v5, 0  ;;  %v639_v8 = vsel %vm351_vm0, %v81_v6, 0  ;;  %v6630_v9 = vld [vmem:[%s8585_s0 + $0x18] sm:$0xff]   ;;  %v6637_v10 = vld [vmem:[%s8585_s0 + $0xa0] sm:$0xff]   ;;  %v6668_v13 = vld [vmem:[%s8585_s0 + $0x28] sm:$0xff]  }
   0x4   :  { %4946 = vmatprep.subr.bf16.mxu0 %v6564_v1  ;;  %4812 = vmatprep.subr.bf16.mxu1 %v6564_v1  ;;  %v6650_v11 = vld [vmem:[%s8585_s0 + $0x20] sm:$0xff]   ;;  %v6673_v14 = vld [vmem:[%s8585_s0 + $0xb0] sm:$0xff]   ;;  %v6691_v16 = vld [vmem:[%s8585_s0 + $0xb8] sm:$0xff]  }
   0x5   :  { %v6686_v15 = vld [vmem:[%s8585_s0 + $0x30] sm:$0xff]   ;;  %v6704_v17 = vld [vmem:[%s8585_s0 + $0x38] sm:$0xff]   ;;  %v6709_v18 = vld [vmem:[%s8585_s0 + $0xc0] sm:$0xff]  }
   0x6   :  { %4681 = vmatmul.mubr.msk.bf16.vlgmr.msra.gmra.mrb[0].mxu0 %vm251_vm1, %v6598_v3  ;;  %4749 = vmatmul.mubr.msk.bf16.vlgmr.msra.gmra.mrb[0].mxu1 %vm251_vm1, %v6603_v4  ;;  %v6722_v19 = vld [vmem:[%s8585_s0 + $0x40] sm:$0xff]   ;;  %v6727_v20 = vld [vmem:[%s8585_s0 + $0xc8] sm:$0xff]   ;;  %v6745_v22 = vld [vmem:[%s8585_s0 + $0xd0] sm:$0xff]  }
   0x7   :  { %4947 = vmatpush3.bf16.msra.mxu0 %v1234_v7  ;;  %4684 = vmatprep.mubr.msk.bf16.mxu0 %vm6565_vm2, %v6564_v1  ;;  %v6740_v21 = vld [vmem:[%s8585_s0 + $0x48] sm:$0xff]  }
   0x8   :  { %4752 = vmatprep.mubr.msk.bf16.mxu1 %vm6565_vm2, %v6564_v1  ;;  %4813 = vmatpush3.bf16.msra.mxu1 %v639_v8 }
   0x9   :  { %5080 = vmatprep.subr.bf16.mxu1 %v6564_v1  ;;  %5482 = vmatprep.subr.bf16.mxu0 %v6564_v1 }
   0xe   :  { %4685 = vmatmul.mubr.msk.bf16.gmra.mrb[4].mxu0 %vm251_vm1, %v6630_v9  ;;  %4753 = vmatmul.mubr.msk.bf16.gmra.mrb[4].mxu1 %vm251_vm1, %v6637_v10 }
   0xf   :  { %4688 = vmatprep.mubr.msk.bf16.mxu0 %vm6565_vm2, %v6564_v1  ;;  %4756 = vmatprep.mubr.msk.bf16.mxu1 %vm6565_vm2, %v6564_v1 }
  0x16   :  { %4689 = vmatmul.mubr.msk.bf16.gmra.mrb[8].mxu0 %vm251_vm1, %v6650_v11  ;;  %4757 = vmatmul.mubr.msk.bf16.gmra.mrb[8].mxu1 %vm251_vm1, %v6655_v12 }
  0x17   :  { %4692 = vmatprep.mubr.msk.bf16.mxu0 %vm6565_vm2, %v6564_v1  ;;  %4760 = vmatprep.mubr.msk.bf16.mxu1 %vm6565_vm2, %v6564_v1 }
  0x1e   :  { %4693 = vmatmul.mubr.msk.bf16.gmra.mrb[12].mxu0 %vm251_vm1, %v6668_v13  ;;  %4761 = vmatmul.mubr.msk.bf16.gmra.mrb[12].mxu1 %vm251_vm1, %v6673_v14 }
  0x1f   :  { %4696 = vmatprep.mubr.msk.bf16.mxu0 %vm6565_vm2, %v6564_v1  ;;  %4764 = vmatprep.mubr.msk.bf16.mxu1 %vm6565_vm2, %v6564_v1 }
  0x26   :  { %4697 = vmatmul.mubr.msk.bf16.gmra.mrb[16].mxu0 %vm251_vm1, %v6686_v15  ;;  %4765 = vmatmul.mubr.msk.bf16.gmra.mrb[16].mxu1 %vm251_vm1, %v6691_v16 }
  0x27   :  { %4700 = vmatprep.mubr.msk.bf16.mxu0 %vm6565_vm2, %v6564_v1  ;;  %4768 = vmatprep.mubr.msk.bf16.mxu1 %vm6565_vm2, %v6564_v1 }
  0x2e   :  { %4701 = vmatmul.mubr.msk.bf16.gmra.mrb[20].mxu0 %vm251_vm1, %v6704_v17  ;;  %4769 = vmatmul.mubr.msk.bf16.gmra.mrb[20].mxu1 %vm251_vm1, %v6709_v18 }
  0x2f   :  { %4704 = vmatprep.mubr.msk.bf16.mxu0 %vm6565_vm2, %v6564_v1  ;;  %4772 = vmatprep.mubr.msk.bf16.mxu1 %vm6565_vm2, %v6564_v1 }
  0x36   :  { %4705 = vmatmul.mubr.msk.bf16.gmra.mrb[24].mxu0 %vm251_vm1, %v6722_v19  ;;  %4773 = vmatmul.mubr.msk.bf16.gmra.mrb[24].mxu1 %vm251_vm1, %v6727_v20 }
  0x37   :  { %4708 = vmatprep.mubr.msk.bf16.mxu0 %vm6565_vm2, %v6564_v1  ;;  %4776 = vmatprep.mubr.msk.bf16.mxu1 %vm6565_vm2, %v6564_v1 }
  0x38   :  { %8 = vsyncpa [#allocation3], 0  ;;  %v6758_v23 = vld [vmem:[%s8585_s0 + $0x50] sm:$0xff]   ;;  %v6763_v24 = vld [vmem:[%s8585_s0 + $0xd8] sm:$0xff]   ;;  %vm2479_vm3 = vcmask 1046528   ;;  %vm3572_vm4 = vcmask 1045504  }
  0x39   :  { %v6776_v25 = vld [vmem:[%s8585_s0 + $0x58] sm:$0xff]   ;;  %v6781_v26 = vld [vmem:[%s8585_s0 + $0xe0] sm:$0xff]   ;;  %v6799_v28 = vld [vmem:[%s8585_s0 + $0xe8] sm:$0xff]   ;;  %vm3884_vm5 = vcmask 519168  }
  0x3a   :  { %v6794_v27 = vld [vmem:[%s8585_s0 + $0x60] sm:$0xff]   ;;  %v6812_v29 = vld [vmem:[%s8585_s0 + $0x68] sm:$0xff]   ;;  %v6817_v30 = vld [vmem:[%s8585_s0 + $0xf0] sm:$0xff]  }
  0x3b   :  { %v6830_v31 = vld [vmem:[%s8585_s0 + $0x70] sm:$0xff]   ;;  %v6835_v32 = vld [vmem:[%s8585_s0 + $0xf8] sm:$0xff]   ;;  %v6848_v33 = vld [vmem:[%s8585_s0 + $0x100] sm:$0xf] }
  0x3c   :  { %v82_v34 = vld [vmem:[%s8585_s0 + $0x104] sm:$0xf]  ;;  %v6856_v35 = vld [vmem:[%s8585_s0 + $0x78] sm:$0xff]   ;;  %v6432_v38 = vld [vmem:[%s8585_s0 + $0x108] sm:$0xff]  }
  0x3d   :  { %v6859_v36 = vcombine.low %v6848_v33, %v82_v34  ;;  %v6872_v37 = vld [vmem:[%s8585_s0 + $0x80] sm:$0xff]   ;;  %v6887_v39 = vld [vmem:[%s8585_s0 + $0x88] sm:$0xff]   ;;  %v6434_v40 = vld [vmem:[%s8585_s0 + $0x110] ss:$0 sps:$4 sm:$0xff]  }
  0x3e   :  { %4709 = vmatmul.mubr.msk.bf16.gmra.mrb[28].mxu0 %vm251_vm1, %v6740_v21  ;;  %4777 = vmatmul.mubr.msk.bf16.gmra.mrb[28].mxu1 %vm251_vm1, %v6745_v22  ;;  %v6902_v41 = vld [vmem:[%s8585_s0 + $0x90] sm:$0xff]   ;;  %v6436_v42 = vld [vmem:[%s8585_s0] sm:$0xff]   ;;  %v6437_v46 = vld [vmem:[%s8585_s0 + $0x8] sm:$0xff]  }
  0x3f   :  { %4712 = vmatprep.mubr.msk.bf16.mxu0 %vm6565_vm2, %v6564_v1  ;;  %4780 = vmatprep.mubr.msk.bf16.mxu1 %vm6565_vm2, %v6564_v1  ;;  %v4104_v43 = vld [vmem:[%s8586_s1 + $0x10] sm:$0xf]  ;;  %v4206_v45 = vld [vmem:[%s8586_s1 + $0x14] sm:$0xf]  ;;  %v6438_v47 = vld [vmem:[%s8585_s0 + $0x20] sm:$0xff]  }
  0x40   :  { %v1536_v44 = vsel %vm351_vm0, %v4104_v43, 0  ;;  %v2629_v48 = vsel %vm351_vm0, %v4206_v45, 0  ;;  %v6439_v49 = vld [vmem:[%s8585_s0 + $0x28] sm:$0xff]   ;;  %v6440_v50 = vld [vmem:[%s8585_s0 + $0x30] sm:$0xff]   ;;  %v6441_v51 = vld [vmem:[%s8585_s0 + $0x38] sm:$0xff]  }
  0x41   :  { %v6442_v52 = vld [vmem:[%s8585_s0 + $0x40] sm:$0xff]   ;;  %v6443_v53 = vld [vmem:[%s8585_s0 + $0x48] sm:$0xff]   ;;  %v6444_v54 = vld [vmem:[%s8585_s0 + $0x50] sm:$0xff]  }
  0x42   :  { %v6445_v55 = vld [vmem:[%s8585_s0 + $0x58] sm:$0xff]   ;;  %v6446_v56 = vld [vmem:[%s8585_s0 + $0x60] sm:$0xff]   ;;  %v6447_v57 = vld [vmem:[%s8585_s0 + $0x68] sm:$0xff]  }
  0x43   :  { %v6448_v62 = vld [vmem:[%s8585_s0 + $0x70] sm:$0xff]   ;;  %v6450_v34 = vld [vmem:[%s8585_s0 + $0x80] sm:$0xff]  }
  0x46   :  { %4713 = vmatmul.mubr.msk.bf16.gmra.mrb[32].mxu0 %vm251_vm1, %v6758_v23  ;;  %4781 = vmatmul.mubr.msk.bf16.gmra.mrb[32].mxu1 %vm251_vm1, %v6763_v24 }
  0x47   :  { %4716 = vmatprep.mubr.msk.bf16.mxu0 %vm6565_vm2, %v6564_v1  ;;  %4784 = vmatprep.mubr.msk.bf16.mxu1 %vm6565_vm2, %v6564_v1 }
  0x4e   :  { %4717 = vmatmul.mubr.msk.bf16.gmra.mrb[36].mxu0 %vm251_vm1, %v6776_v25  ;;  %4785 = vmatmul.mubr.msk.bf16.gmra.mrb[36].mxu1 %vm251_vm1, %v6781_v26 }
  0x4f   :  { %4720 = vmatprep.mubr.msk.bf16.mxu0 %vm6565_vm2, %v6564_v1  ;;  %4788 = vmatprep.mubr.msk.bf16.mxu1 %vm6565_vm2, %v6564_v1 }
  0x56   :  { %4721 = vmatmul.mubr.msk.bf16.gmra.mrb[40].mxu0 %vm251_vm1, %v6794_v27  ;;  %4789 = vmatmul.mubr.msk.bf16.gmra.mrb[40].mxu1 %vm251_vm1, %v6799_v28 }
  0x57   :  { %4724 = vmatprep.mubr.msk.bf16.mxu0 %vm6565_vm2, %v6564_v1  ;;  %4792 = vmatprep.mubr.msk.bf16.mxu1 %vm6565_vm2, %v6564_v1 }
  0x5e   :  { %4725 = vmatmul.mubr.msk.bf16.gmra.mrb[44].mxu0 %vm251_vm1, %v6812_v29  ;;  %4793 = vmatmul.mubr.msk.bf16.gmra.mrb[44].mxu1 %vm251_vm1, %v6817_v30 }
  0x5f   :  { %4728 = vmatprep.mubr.msk.bf16.mxu0 %vm6565_vm2, %v6564_v1  ;;  %4796 = vmatprep.mubr.msk.bf16.mxu1 %vm6565_vm2, %v6564_v1 }
  0x66   :  { %4729 = vmatmul.mubr.msk.bf16.gmra.mrb[48].mxu0 %vm251_vm1, %v6830_v31  ;;  %4797 = vmatmul.mubr.msk.bf16.gmra.mrb[48].mxu1 %vm251_vm1, %v6835_v32 }
  0x67   :  { %4732 = vmatprep.mubr.msk.bf16.mxu0 %vm6565_vm2, %v6564_v1  ;;  %4800 = vmatprep.mubr.msk.bf16.mxu1 %vm6565_vm2, %v6564_v1 }
  0x6e   :  { %4733 = vmatmul.mubr.msk.bf16.gmra.mrb[52].mxu0 %vm251_vm1, %v6856_v35  ;;  %4801 = vmatmul.mubr.msk.bf16.gmra.mrb[52].mxu1 %vm251_vm1, %v6859_v36 }
  0x6f   :  { %4736 = vmatprep.mubr.msk.bf16.mxu0 %vm6565_vm2, %v6564_v1  ;;  %4804 = vmatprep.mubr.msk.bf16.mxu1 %vm6565_vm2, %v6564_v1 }
  0x76   :  { %4737 = vmatmul.mubr.msk.bf16.gmra.mrb[56].mxu0 %vm251_vm1, %v6872_v37  ;;  %4805 = vmatmul.mubr.msk.bf16.gmra.mrb[56].mxu1 %vm251_vm1, %v6432_v38 }
  0x77   :  { %4740 = vmatprep.mubr.msk.bf16.mxu0 %vm6565_vm2, %v6564_v1  ;;  %4808 = vmatprep.mubr.msk.bf16.mxu1 %vm6565_vm2, %v6564_v1 }
  0x7e   :  { %4741 = vmatmul.mubr.msk.bf16.gmra.mrb[60].mxu0 %vm251_vm1, %v6887_v39  ;;  %4809 = vmatmul.mubr.msk.bf16.gmra.mrb[60].mxu1 %vm251_vm1, %v6434_v40 }
  0x7f   :  { %4744 = vmatprep.mubr.msk.bf16.mxu0 %vm6565_vm2, %v6564_v1  ;;  %4814 = vmatprep.mubr.msk.bf16.mxu1 %vm6565_vm2, %v6564_v1 }
  0x86   :  { %4745 = vmatmul.mubr.msk.bf16.gmra.mrb[64].mxu0 %vm251_vm1, %v6902_v41  ;;  %4815 = vmatmul.mubr.msk.bf16.vlgmr.msra.gmra.mrb[64].mxu1 %vm251_vm1, %v6436_v42 }
  0x87   :  { %4818 = vmatprep.mubr.msk.bf16.mxu1 %vm6565_vm2, %v6564_v1  ;;  %4948 = vmatprep.mubr.msk.bf16.mxu0 %vm6565_vm2, %v6564_v1 }
  0x88   :  { %5081 = vmatpush3.bf16.msra.mxu1 %v1536_v44 }
  0x89   :  { %5214 = vmatprep.subr.bf16.mxu1 %v6564_v1 }
  0x8e   :  { %4819 = vmatmul.mubr.msk.bf16.gmra.mrb[68].mxu1 %vm251_vm1, %v6437_v46  ;;  %4949 = vmatmul.mubr.msk.bf16.vlgmr.msra.gmra.mrb[68].mxu0 %vm251_vm1, %v6438_v47  ;;  %v6451_v47 = vld [vmem:[%s8585_s0 + $0x88] sm:$0xff]  }
  0x8f   :  { %5483 = vmatpush3.bf16.msra.mxu0 %v2629_v48  ;;  %4822 = vmatprep.mubr.msk.bf16.mxu1 %vm6565_vm2, %v6564_v1 }
  0x90   :  { %4952 = vmatprep.mubr.msk.bf16.mxu0 %vm6565_vm2, %v6564_v1  ;;  %5616 = vmatprep.subr.bf16.mxu0 %v6564_v1 }
  0x96   :  { %4823 = vmatmul.mubr.msk.bf16.gmra.mrb[72].mxu1 %vm251_vm1, %v6598_v3  ;;  %4953 = vmatmul.mubr.msk.bf16.gmra.mrb[72].mxu0 %vm251_vm1, %v6439_v49 }
  0x97   :  { %4826 = vmatprep.mubr.msk.bf16.mxu1 %vm6565_vm2, %v6564_v1  ;;  %4956 = vmatprep.mubr.msk.bf16.mxu0 %vm6565_vm2, %v6564_v1 }
  0x9e   :  { %4827 = vmatmul.mubr.msk.bf16.gmra.mrb[76].mxu1 %vm251_vm1, %v6630_v9  ;;  %4957 = vmatmul.mubr.msk.bf16.gmra.mrb[76].mxu0 %vm251_vm1, %v6440_v50  ;;  %v6449_v9 = vld [vmem:[%s8585_s0 + $0x78] sm:$0xff]  }
  0x9f   :  { %4830 = vmatprep.mubr.msk.bf16.mxu1 %vm6565_vm2, %v6564_v1  ;;  %4960 = vmatprep.mubr.msk.bf16.mxu0 %vm6565_vm2, %v6564_v1 }
  0xa6   :  { %4831 = vmatmul.mubr.msk.bf16.gmra.mrb[80].mxu1 %vm251_vm1, %v6650_v11  ;;  %4961 = vmatmul.mubr.msk.bf16.gmra.mrb[80].mxu0 %vm251_vm1, %v6441_v51 }
  0xa7   :  { %4834 = vmatprep.mubr.msk.bf16.mxu1 %vm6565_vm2, %v6564_v1  ;;  %4964 = vmatprep.mubr.msk.bf16.mxu0 %vm6565_vm2, %v6564_v1 }
  0xae   :  { %4835 = vmatmul.mubr.msk.bf16.gmra.mrb[84].mxu1 %vm251_vm1, %v6668_v13  ;;  %4965 = vmatmul.mubr.msk.bf16.gmra.mrb[84].mxu0 %vm251_vm1, %v6442_v52 }
  0xaf   :  { %4838 = vmatprep.mubr.msk.bf16.mxu1 %vm6565_vm2, %v6564_v1  ;;  %4968 = vmatprep.mubr.msk.bf16.mxu0 %vm6565_vm2, %v6564_v1 }
  0xb6   :  { %4839 = vmatmul.mubr.msk.bf16.gmra.mrb[88].mxu1 %vm251_vm1, %v6686_v15  ;;  %4969 = vmatmul.mubr.msk.bf16.gmra.mrb[88].mxu0 %vm251_vm1, %v6443_v53 }
  0xb7   :  { %4842 = vmatprep.mubr.msk.bf16.mxu1 %vm6565_vm2, %v6564_v1  ;;  %4972 = vmatprep.mubr.msk.bf16.mxu0 %vm6565_vm2, %v6564_v1 }
  0xbe   :  { %4843 = vmatmul.mubr.msk.bf16.gmra.mrb[92].mxu1 %vm251_vm1, %v6704_v17  ;;  %4973 = vmatmul.mubr.msk.bf16.gmra.mrb[92].mxu0 %vm251_vm1, %v6444_v54 }
  0xbf   :  { %4846 = vmatprep.mubr.msk.bf16.mxu1 %vm6565_vm2, %v6564_v1  ;;  %4976 = vmatprep.mubr.msk.bf16.mxu0 %vm6565_vm2, %v6564_v1 }
  0xc6   :  { %4847 = vmatmul.mubr.msk.bf16.gmra.mrb[96].mxu1 %vm251_vm1, %v6722_v19  ;;  %4977 = vmatmul.mubr.msk.bf16.gmra.mrb[96].mxu0 %vm251_vm1, %v6445_v55  ;;  %v6452_v55 = vld [vmem:[%s8585_s0 + $0x90] sm:$0xff]  }
  0xc7   :  { %4850 = vmatprep.mubr.msk.bf16.mxu1 %vm6565_vm2, %v6564_v1  ;;  %4980 = vmatprep.mubr.msk.bf16.mxu0 %vm6565_vm2, %v6564_v1 }
  0xce   :  { %4851 = vmatmul.mubr.msk.bf16.gmra.mrb[100].mxu1 %vm251_vm1, %v6740_v21  ;;  %4981 = vmatmul.mubr.msk.bf16.gmra.mrb[100].mxu0 %vm251_vm1, %v6446_v56 }
  0xcf   :  { %4854 = vmatprep.mubr.msk.bf16.mxu1 %vm6565_vm2, %v6564_v1  ;;  %4984 = vmatprep.mubr.msk.bf16.mxu0 %vm6565_vm2, %v6564_v1 }
  0xd6   :  { %4855 = vmatmul.mubr.msk.bf16.gmra.mrb[104].mxu1 %vm251_vm1, %v6758_v23  ;;  %4985 = vmatmul.mubr.msk.bf16.gmra.mrb[104].mxu0 %vm251_vm1, %v6447_v57 }
  0xd7   :  { %4858 = vmatprep.mubr.msk.bf16.mxu1 %vm6565_vm2, %v6564_v1  ;;  %4988 = vmatprep.mubr.msk.bf16.mxu0 %vm6565_vm2, %v6564_v1 }
  0xd9   :  { %v7026_v58 = vpop.f32.mrb[0].mxu0  ;;  %v509_v59 = vpop.f32.mrb[0].mxu1 }
  0xda   :  { %v4682_v60 = vpop.f32.mrb[1].mxu0  ;;  %v4750_v61 = vpop.f32.mrb[1].mxu1 }
  0xdb   :  { %v7031_v63 = vpop.f32.mrb[2].mxu0  ;;  %v511_v0 = vpop.f32.mrb[2].mxu1 }
  0xdc   :  { %v4683_v2 = vpop.f32.mrb[3].mxu0  ;;  %v4751_v3 = vpop.f32.mrb[3].mxu1 }
  0xdd   :  { %v6453_v2 = vld [vmem:[%s8585_s0 + $0x98] sm:$0xff]  }
  0xde   :  { %4859 = vmatmul.mubr.msk.bf16.gmra.mrb[108].mxu1 %vm251_vm1, %v6776_v25  ;;  %4989 = vmatmul.mubr.msk.bf16.gmra.mrb[108].mxu0 %vm251_vm1, %v6448_v62 }
  0xdf   :  { %4862 = vmatprep.mubr.msk.bf16.mxu1 %vm6565_vm2, %v6564_v1  ;;  %4992 = vmatprep.mubr.msk.bf16.mxu0 %vm6565_vm2, %v6564_v1 }
  0xe1   :  { %v397_v5 = vpop.f32.mrb[4].mxu0  ;;  %v7040_v6 = vpop.f32.mrb[4].mxu1 }
  0xe2   :  { %v4686_v7 = vpop.f32.mrb[5].mxu0  ;;  %v4754_v8 = vpop.f32.mrb[5].mxu1 }
  0xe3   :  { %v399_v11 = vpop.f32.mrb[6].mxu0  ;;  %v7045_v13 = vpop.f32.mrb[6].mxu1 }
  0xe4   :  { %v4687_v15 = vpop.f32.mrb[7].mxu0  ;;  %v4755_v17 = vpop.f32.mrb[7].mxu1 }
  0xe5   :  { %v6454_v17 = vld [vmem:[%s8585_s0 + $0xa0] sm:$0xff]  }
  0xe6   :  { %4863 = vmatmul.mubr.msk.bf16.gmra.mrb[112].mxu1 %vm251_vm1, %v6794_v27  ;;  %4993 = vmatmul.mubr.msk.bf16.gmra.mrb[112].mxu0 %vm251_vm1, %v6449_v9 }
  0xe7   :  { %4866 = vmatprep.mubr.msk.bf16.mxu1 %vm6565_vm2, %v6564_v1  ;;  %4996 = vmatprep.mubr.msk.bf16.mxu0 %vm6565_vm2, %v6564_v1 }
  0xe9   :  { %v7054_v19 = vpop.f32.mrb[8].mxu0  ;;  %v523_v21 = vpop.f32.mrb[8].mxu1 }
  0xea   :  { %v4690_v23 = vpop.f32.mrb[9].mxu0  ;;  %v4758_v25 = vpop.f32.mrb[9].mxu1 }
  0xeb   :  { %v7059_v38 = vpop.f32.mrb[10].mxu0  ;;  %v525_v27 = vpop.f32.mrb[10].mxu1 }
  0xec   :  { %v4691_v40 = vpop.f32.mrb[11].mxu0  ;;  %v4759_v42 = vpop.f32.mrb[11].mxu1 }
  0xee   :  { %4867 = vmatmul.mubr.msk.bf16.gmra.mrb[116].mxu1 %vm251_vm1, %v6812_v29  ;;  %4997 = vmatmul.mubr.msk.bf16.gmra.mrb[116].mxu0 %vm251_vm1, %v6450_v34 }
  0xef   :  { %4870 = vmatprep.mubr.msk.bf16.mxu1 %vm6565_vm2, %v6564_v1  ;;  %5000 = vmatprep.mubr.msk.bf16.mxu0 %vm6565_vm2, %v6564_v1 }
  0xf1   :  { %v411_v43 = vpop.f32.mrb[12].mxu0  ;;  %v7068_v44 = vpop.f32.mrb[12].mxu1 }
  0xf2   :  { %v4694_v45 = vpop.f32.mrb[13].mxu0  ;;  %v4762_v46 = vpop.f32.mrb[13].mxu1  ;;  %v6455_v43 = vld [vmem:[%s8585_s0 + $0xa8] sm:$0xff]  }
  0xf3   :  { %v413_v48 = vpop.f32.mrb[14].mxu0  ;;  %v7073_v49 = vpop.f32.mrb[14].mxu1 }
  0xf4   :  { %v4695_v29 = vpop.f32.mrb[15].mxu0  ;;  %v4763_v50 = vpop.f32.mrb[15].mxu1 }
  0xf6   :  { %4871 = vmatmul.mubr.msk.bf16.gmra.mrb[120].mxu1 %vm251_vm1, %v6830_v31  ;;  %5001 = vmatmul.mubr.msk.bf16.gmra.mrb[120].mxu0 %vm251_vm1, %v6451_v47 }
  0xf7   :  { %4874 = vmatprep.mubr.msk.bf16.mxu1 %vm6565_vm2, %v6564_v1  ;;  %5004 = vmatprep.mubr.msk.bf16.mxu0 %vm6565_vm2, %v6564_v1 }
  0xf9   :  { %v7082_v51 = vpop.f32.mrb[16].mxu0  ;;  %v537_v52 = vpop.f32.mrb[16].mxu1 }
  0xfa   :  { %v4698_v53 = vpop.f32.mrb[17].mxu0  ;;  %v4766_v54 = vpop.f32.mrb[17].mxu1 }
  0xfb   :  { %v7087_v56 = vpop.f32.mrb[18].mxu0  ;;  %v539_v31 = vpop.f32.mrb[18].mxu1  ;;  %v6456_v53 = vld [vmem:[%s8585_s0 + $0xb0] sm:$0xff]  }
  0xfc   :  { %v4699_v57 = vpop.f32.mrb[19].mxu0  ;;  %v4767_v59 = vpop.f32.mrb[19].mxu1 }
  0xfe   :  { %4875 = vmatmul.mubr.msk.bf16.gmra.mrb[124].mxu1 %vm251_vm1, %v6856_v35  ;;  %5005 = vmatmul.mubr.msk.bf16.gmra.mrb[124].mxu0 %vm251_vm1, %v6452_v55 }
  0xff   :  { %4878 = vmatprep.mubr.msk.bf16.mxu1 %vm6565_vm2, %v6564_v1  ;;  %5008 = vmatprep.mubr.msk.bf16.mxu0 %vm6565_vm2, %v6564_v1 }
 0x101   :  { %v425_v60 = vpop.f32.mrb[20].mxu0  ;;  %v7096_v61 = vpop.f32.mrb[20].mxu1 }
 0x102   :  { %v4702_v62 = vpop.f32.mrb[21].mxu0  ;;  %v4770_v0 = vpop.f32.mrb[21].mxu1 }
 0x103   :  { %v427_v3 = vpop.f32.mrb[22].mxu0  ;;  %v7101_v5 = vpop.f32.mrb[22].mxu1  ;;  %v6457_v0 = vld [vmem:[%s8585_s0 + $0xb8] sm:$0xff]  }
 0x104   :  { %v4703_v35 = vpop.f32.mrb[23].mxu0  ;;  %v4771_v7 = vpop.f32.mrb[23].mxu1 }
 0x106   :  { %4879 = vmatmul.mubr.msk.bf16.gmra.mrb[128].mxu1 %vm251_vm1, %v6872_v37  ;;  %5009 = vmatmul.mubr.msk.bf16.gmra.mrb[128].mxu0 %vm251_vm1, %v6453_v2 }
 0x107   :  { %4882 = vmatprep.mubr.msk.bf16.mxu1 %vm6565_vm2, %v6564_v1  ;;  %5012 = vmatprep.mubr.msk.bf16.mxu0 %vm6565_vm2, %v6564_v1 }
 0x109   :  { %v7110_v8 = vpop.f32.mrb[24].mxu0  ;;  %v551_v9 = vpop.f32.mrb[24].mxu1 }
 0x10a   :  { %v4706_v11 = vpop.f32.mrb[25].mxu0  ;;  %v4774_v15 = vpop.f32.mrb[25].mxu1 }
 0x10b   :  { %v7115_v21 = vpop.f32.mrb[26].mxu0  ;;  %v553_v37 = vpop.f32.mrb[26].mxu1 }
 0x10c   :  { %v4707_v23 = vpop.f32.mrb[27].mxu0  ;;  %v4775_v25 = vpop.f32.mrb[27].mxu1 }
 0x10e   :  { %4883 = vmatmul.mubr.msk.bf16.gmra.mrb[132].mxu1 %vm251_vm1, %v6887_v39  ;;  %5013 = vmatmul.mubr.msk.bf16.gmra.mrb[132].mxu0 %vm251_vm1, %v6454_v17  ;;  %v6458_v17 = vld [vmem:[%s8585_s0 + $0xc0] sm:$0xff]  }
 0x10f   :  { %4886 = vmatprep.mubr.msk.bf16.mxu1 %vm6565_vm2, %v6564_v1  ;;  %5016 = vmatprep.mubr.msk.bf16.mxu0 %vm6565_vm2, %v6564_v1 }
 0x111   :  { %v439_v34 = vpop.f32.mrb[28].mxu0  ;;  %v7124_v27 = vpop.f32.mrb[28].mxu1 }
 0x112   :  { %v4710_v40 = vpop.f32.mrb[29].mxu0  ;;  %v4778_v42 = vpop.f32.mrb[29].mxu1 }
 0x113   :  { %v441_v45 = vpop.f32.mrb[30].mxu0  ;;  %v7129_v46 = vpop.f32.mrb[30].mxu1 }
 0x114   :  { %v4711_v39 = vpop.f32.mrb[31].mxu0  ;;  %v4779_v47 = vpop.f32.mrb[31].mxu1  ;;  %v6459_v45 = vld [vmem:[%s8585_s0 + $0xc8] sm:$0xff]  }
 0x116   :  { %4887 = vmatmul.mubr.msk.bf16.gmra.mrb[136].mxu1 %vm251_vm1, %v6902_v41  ;;  %5017 = vmatmul.mubr.msk.bf16.gmra.mrb[136].mxu0 %vm251_vm1, %v6455_v43 }
 0x117   :  { %4890 = vmatprep.mubr.msk.bf16.mxu1 %vm6565_vm2, %v6564_v1  ;;  %5020 = vmatprep.mubr.msk.bf16.mxu0 %vm6565_vm2, %v6564_v1 }
 0x119   :  { %v7138_v48 = vpop.f32.mrb[32].mxu0  ;;  %v565_v29 = vpop.f32.mrb[32].mxu1 }
 0x11a   :  { %v4714_v50 = vpop.f32.mrb[33].mxu0  ;;  %v4782_v52 = vpop.f32.mrb[33].mxu1 }
 0x11b   :  { %v7143_v54 = vpop.f32.mrb[34].mxu0  ;;  %v567_v41 = vpop.f32.mrb[34].mxu1 }
 0x11c   :  { %v4715_v55 = vpop.f32.mrb[35].mxu0  ;;  %v4783_v31 = vpop.f32.mrb[35].mxu1 }
 0x11d   :  { %v6460_v55 = vld [vmem:[%s8585_s0 + $0xd0] sm:$0xff]  }
 0x11e   :  { %4891 = vmatmul.mubr.msk.bf16.gmra.mrb[140].mxu1 %vm251_vm1, %v6603_v4  ;;  %5021 = vmatmul.mubr.msk.bf16.gmra.mrb[140].mxu0 %vm251_vm1, %v6456_v53 }
 0x11f   :  { %4894 = vmatprep.mubr.msk.bf16.mxu1 %vm6565_vm2, %v6564_v1  ;;  %5024 = vmatprep.mubr.msk.bf16.mxu0 %vm6565_vm2, %v6564_v1 }
 0x121   :  { %v453_v57 = vpop.f32.mrb[36].mxu0  ;;  %v7152_v59 = vpop.f32.mrb[36].mxu1 }
 0x122   :  { %v4718_v60 = vpop.f32.mrb[37].mxu0  ;;  %v4786_v62 = vpop.f32.mrb[37].mxu1 }
 0x123   :  { %v455_v2 = vpop.f32.mrb[38].mxu0  ;;  %v7157_v3 = vpop.f32.mrb[38].mxu1 }
 0x124   :  { %v4719_v4 = vpop.f32.mrb[39].mxu0  ;;  %v4787_v35 = vpop.f32.mrb[39].mxu1 }
 0x125   :  { %v6461_v35 = vld [vmem:[%s8585_s0 + $0xd8] sm:$0xff]  }
 0x126   :  { %4895 = vmatmul.mubr.msk.bf16.gmra.mrb[144].mxu1 %vm251_vm1, %v6637_v10  ;;  %5025 = vmatmul.mubr.msk.bf16.gmra.mrb[144].mxu0 %vm251_vm1, %v6457_v0 }
 0x127   :  { %4898 = vmatprep.mubr.msk.bf16.mxu1 %vm6565_vm2, %v6564_v1  ;;  %5028 = vmatprep.mubr.msk.bf16.mxu0 %vm6565_vm2, %v6564_v1 }
 0x129   :  { %v7166_v7 = vpop.f32.mrb[40].mxu0  ;;  %v579_v9 = vpop.f32.mrb[40].mxu1 }
 0x12a   :  { %v4722_v11 = vpop.f32.mrb[41].mxu0  ;;  %v4790_v15 = vpop.f32.mrb[41].mxu1 }
 0x12b   :  { %v7171_v37 = vpop.f32.mrb[42].mxu0  ;;  %v581_v10 = vpop.f32.mrb[42].mxu1 }
 0x12c   :  { %v4723_v23 = vpop.f32.mrb[43].mxu0  ;;  %v4791_v25 = vpop.f32.mrb[43].mxu1 }
 0x12e   :  { %4899 = vmatmul.mubr.msk.bf16.gmra.mrb[148].mxu1 %vm251_vm1, %v6655_v12  ;;  %5029 = vmatmul.mubr.msk.bf16.gmra.mrb[148].mxu0 %vm251_vm1, %v6458_v17 }
 0x12f   :  { %4902 = vmatprep.mubr.msk.bf16.mxu1 %vm6565_vm2, %v6564_v1  ;;  %5032 = vmatprep.mubr.msk.bf16.mxu0 %vm6565_vm2, %v6564_v1 }
 0x131   :  { %v467_v34 = vpop.f32.mrb[44].mxu0  ;;  %v7180_v40 = vpop.f32.mrb[44].mxu1 }
 0x132   :  { %v4726_v42 = vpop.f32.mrb[45].mxu0  ;;  %v4794_v43 = vpop.f32.mrb[45].mxu1  ;;  %v6462_v34 = vld [vmem:[%s8585_s0 + $0xe0] sm:$0xff]  }
 0x133   :  { %v469_v39 = vpop.f32.mrb[46].mxu0  ;;  %v7185_v47 = vpop.f32.mrb[46].mxu1 }
 0x134   :  { %v4727_v12 = vpop.f32.mrb[47].mxu0  ;;  %v4795_v29 = vpop.f32.mrb[47].mxu1 }
 0x136   :  { %4903 = vmatmul.mubr.msk.bf16.gmra.mrb[152].mxu1 %vm251_vm1, %v6673_v14  ;;  %5033 = vmatmul.mubr.msk.bf16.gmra.mrb[152].mxu0 %vm251_vm1, %v6459_v45 }
 0x137   :  { %4906 = vmatprep.mubr.msk.bf16.mxu1 %vm6565_vm2, %v6564_v1  ;;  %5036 = vmatprep.mubr.msk.bf16.mxu0 %vm6565_vm2, %v6564_v1 }
 0x139   :  { %v7194_v50 = vpop.f32.mrb[48].mxu0  ;;  %v593_v52 = vpop.f32.mrb[48].mxu1 }
 0x13a   :  { %v4730_v53 = vpop.f32.mrb[49].mxu0  ;;  %v4798_v41 = vpop.f32.mrb[49].mxu1 }
 0x13b   :  { %v7199_v31 = vpop.f32.mrb[50].mxu0  ;;  %v595_v14 = vpop.f32.mrb[50].mxu1  ;;  %v6463_v53 = vld [vmem:[%s8585_s0 + $0xe8] sm:$0xff]  }
 0x13c   :  { %v4731_v57 = vpop.f32.mrb[51].mxu0  ;;  %v4799_v60 = vpop.f32.mrb[51].mxu1 }
 0x13e   :  { %4907 = vmatmul.mubr.msk.bf16.gmra.mrb[156].mxu1 %vm251_vm1, %v6691_v16  ;;  %5037 = vmatmul.mubr.msk.bf16.gmra.mrb[156].mxu0 %vm251_vm1, %v6460_v55 }
 0x13f   :  { %4910 = vmatprep.mubr.msk.bf16.mxu1 %vm6565_vm2, %v6564_v1  ;;  %5040 = vmatprep.mubr.msk.bf16.mxu0 %vm6565_vm2, %v6564_v1 }
 0x141   :  { %v481_v62 = vpop.f32.mrb[52].mxu0  ;;  %v7208_v0 = vpop.f32.mrb[52].mxu1 }
 0x142   :  { %v4734_v2 = vpop.f32.mrb[53].mxu0  ;;  %v4802_v4 = vpop.f32.mrb[53].mxu1 }
 0x143   :  { %v483_v9 = vpop.f32.mrb[54].mxu0  ;;  %v7213_v11 = vpop.f32.mrb[54].mxu1 }
 0x144   :  { %v4735_v16 = vpop.f32.mrb[55].mxu0  ;;  %v4803_v15 = vpop.f32.mrb[55].mxu1 }
 0x146   :  { %4911 = vmatmul.mubr.msk.bf16.gmra.mrb[160].mxu1 %vm251_vm1, %v6709_v18  ;;  %5041 = vmatmul.mubr.msk.bf16.gmra.mrb[160].mxu0 %vm251_vm1, %v6461_v35  ;;  %v6464_v35 = vld [vmem:[%s8585_s0 + $0xf0] sm:$0xff]  }
 0x147   :  { %4914 = vmatprep.mubr.msk.bf16.mxu1 %vm6565_vm2, %v6564_v1  ;;  %5044 = vmatprep.mubr.msk.bf16.mxu0 %vm6565_vm2, %v6564_v1 }
 0x149   :  { %v7222_v17 = vpop.f32.mrb[56].mxu0  ;;  %v607_v10 = vpop.f32.mrb[56].mxu1 }
 0x14a   :  { %v4738_v23 = vpop.f32.mrb[57].mxu0  ;;  %v4806_v25 = vpop.f32.mrb[57].mxu1 }
 0x14b   :  { %v7227_v42 = vpop.f32.mrb[58].mxu0  ;;  %v609_v18 = vpop.f32.mrb[58].mxu1 }
 0x14c   :  { %v4739_v43 = vpop.f32.mrb[59].mxu0  ;;  %v4807_v45 = vpop.f32.mrb[59].mxu1 }
 0x14e   :  { %4915 = vmatmul.mubr.msk.bf16.gmra.mrb[164].mxu1 %vm251_vm1, %v6727_v20  ;;  %5045 = vmatmul.mubr.msk.bf16.gmra.mrb[164].mxu0 %vm251_vm1, %v6462_v34 }
 0x14f   :  { %4918 = vmatprep.mubr.msk.bf16.mxu1 %vm6565_vm2, %v6564_v1  ;;  %5048 = vmatprep.mubr.msk.bf16.mxu0 %vm6565_vm2, %v6564_v1 }
 0x151   :  { %v495_v39 = vpop.f32.mrb[60].mxu0  ;;  %v613_v12 = vpop.f32.mrb[60].mxu1 }
 0x152   :  { %v4742_v29 = vpop.f32.mrb[61].mxu0  ;;  %v4810_v52 = vpop.f32.mrb[61].mxu1 }
 0x153   :  { %v497_v41 = vpop.f32.mrb[62].mxu0  ;;  %v615_v55 = vpop.f32.mrb[62].mxu1 }
 0x154   :  { %v4743_v14 = vpop.f32.mrb[63].mxu0  ;;  %v4811_v20 = vpop.f32.mrb[63].mxu1 }
 0x155   :  { %v6466_v14 = vld [vmem:[%s8585_s0 + $0x100] sm:$0xff]  }
 0x156   :  { %4919 = vmatmul.mubr.msk.bf16.gmra.mrb[168].mxu1 %vm251_vm1, %v6745_v22  ;;  %5049 = vmatmul.mubr.msk.bf16.gmra.mrb[168].mxu0 %vm251_vm1, %v6463_v53 }
 0x157   :  { %4922 = vmatprep.mubr.msk.bf16.mxu1 %vm6565_vm2, %v6564_v1  ;;  %5052 = vmatprep.mubr.msk.bf16.mxu0 %vm6565_vm2, %v6564_v1 }
 0x159   :  { %v7246_v57 = vpop.f32.mrb[64].mxu0  ;;  %v675_v60 = vpop.f32.mrb[64].mxu1 }
 0x15a   :  { %v676_v62 = vadd.f32 %v675_v60, %v7026_v58  ;;  %v4746_v2 = vpop.f32.mrb[65].mxu0  ;;  %v4816_v4 = vpop.f32.mrb[65].mxu1 }
 0x15b   :  { %v7252_v22 = vpop.f32.mrb[66].mxu0  ;;  %v678_v9 = vpop.f32.mrb[66].mxu1 }
 0x15c   :  { %v679_v16 = vadd.f32 %v678_v9, %v7031_v63  ;;  %v4747_v15 = vpop.f32.mrb[67].mxu0  ;;  %v4817_v10 = vpop.f32.mrb[67].mxu1  ;;  %v6465_v63 = vld [vmem:[%s8585_s0 + $0xf8] sm:$0xff]  }
 0x15e   :  { %4923 = vmatmul.mubr.msk.bf16.gmra.mrb[172].mxu1 %vm251_vm1, %v6763_v24  ;;  %5053 = vmatmul.mubr.msk.bf16.gmra.mrb[172].mxu0 %vm251_vm1, %v6464_v35 }
 0x15f   :  { %4926 = vmatprep.mubr.msk.bf16.mxu1 %vm6565_vm2, %v6564_v1  ;;  %5056 = vmatprep.mubr.msk.bf16.mxu0 %vm6565_vm2, %v6564_v1 }
 0x161   :  { %v1270_v58 = vpop.f32.mrb[68].mxu0  ;;  %v683_v23 = vpop.f32.mrb[68].mxu1 }
 0x162   :  { %v4950_v25 = vpop.f32.mrb[69].mxu0  ;;  %v4820_v34 = vpop.f32.mrb[69].mxu1  ;;  %v7265_v18 = vadd.f32 %v1270_v58, %v676_v62 }
 0x163   :  { %v1273_v43 = vpop.f32.mrb[70].mxu0  ;;  %v685_v24 = vpop.f32.mrb[70].mxu1 }
 0x164   :  { %v4951_v45 = vpop.f32.mrb[71].mxu0  ;;  %v4821_v39 = vpop.f32.mrb[71].mxu1  ;;  %v7267_v12 = vadd.f32 %v1273_v43, %v679_v16 }
 0x165   :  { %v6468_v45 = vld [vmem:[%s8585_s0 + $0x110] sm:$0xff]  }
 0x166   :  { %4927 = vmatmul.mubr.msk.bf16.gmra.mrb[176].mxu1 %vm251_vm1, %v6781_v26  ;;  %5057 = vmatmul.mubr.msk.bf16.gmra.mrb[176].mxu0 %vm251_vm1, %v6465_v63 }
 0x167   :  { %4930 = vmatprep.mubr.msk.bf16.mxu1 %vm6565_vm2, %v6564_v1  ;;  %5060 = vmatprep.mubr.msk.bf16.mxu0 %vm6565_vm2, %v6564_v1 }
 0x169   :  { %v689_v29 = vpop.f32.mrb[72].mxu1  ;;  %v1278_v52 = vpop.f32.mrb[72].mxu0 }
 0x16a   :  { %v690_v53 = vadd.f32 %v689_v29, %v7054_v19  ;;  %v4824_v41 = vpop.f32.mrb[73].mxu1  ;;  %v4954_v55 = vpop.f32.mrb[73].mxu0 }
 0x16b   :  { %v692_v20 = vpop.f32.mrb[74].mxu1  ;;  %v1280_v26 = vpop.f32.mrb[74].mxu0 }
 0x16c   :  { %v693_v60 = vadd.f32 %v692_v20, %v7059_v38  ;;  %v4955_v62 = vpop.f32.mrb[75].mxu0  ;;  %v4825_v2 = vpop.f32.mrb[75].mxu1  ;;  %v6467_v38 = vld [vmem:[%s8585_s0 + $0x108] sm:$0xff]  }
 0x16e   :  { %4931 = vmatmul.mubr.msk.bf16.gmra.mrb[180].mxu1 %vm251_vm1, %v6799_v28  ;;  %5061 = vmatmul.mubr.msk.bf16.gmra.mrb[180].mxu0 %vm251_vm1, %v6466_v14 }
 0x16f   :  { %4934 = vmatprep.mubr.msk.bf16.mxu1 %vm6565_vm2, %v6564_v1  ;;  %5064 = vmatprep.mubr.msk.bf16.mxu0 %vm6565_vm2, %v6564_v1 }
 0x171   :  { %v1284_v19 = vpop.f32.mrb[76].mxu0  ;;  %v697_v4 = vpop.f32.mrb[76].mxu1 }
 0x172   :  { %v7288_v35 = vadd.f32 %v1284_v19, %v690_v53  ;;  %v4958_v9 = vpop.f32.mrb[77].mxu0  ;;  %v4828_v16 = vpop.f32.mrb[77].mxu1 }
 0x173   :  { %v1287_v15 = vpop.f32.mrb[78].mxu0  ;;  %v699_v28 = vpop.f32.mrb[78].mxu1  ;;  %v4103_v9 = vld [vmem:[%s8586_s1 + $0x4] sm:$0xf] }
 0x174   :  { %v7293_v10 = vadd.f32 %v1287_v15, %v693_v60  ;;  %v4959_v58 = vpop.f32.mrb[79].mxu0  ;;  %v4829_v23 = vpop.f32.mrb[79].mxu1  ;;  %v6471_v28 = vld [vmem:[%s8585_s0 + $0x120] ss:$0 sps:$4 sm:$0xff]  }
 0x176   :  { %4935 = vmatmul.mubr.msk.bf16.gmra.mrb[184].mxu1 %vm251_vm1, %v6817_v30  ;;  %5065 = vmatmul.mubr.msk.bf16.gmra.mrb[184].mxu0 %vm251_vm1, %v6467_v38 }
 0x177   :  { %4938 = vmatprep.mubr.msk.bf16.mxu1 %vm6565_vm2, %v6564_v1  ;;  %5068 = vmatprep.mubr.msk.bf16.mxu0 %vm6565_vm2, %v6564_v1 }
 0x179   :  { %v703_v25 = vpop.f32.mrb[80].mxu1  ;;  %v1292_v34 = vpop.f32.mrb[80].mxu0 }
 0x17a   :  { %v704_v63 = vadd.f32 %v703_v25, %v7082_v51  ;;  %v4832_v43 = vpop.f32.mrb[81].mxu1  ;;  %v4962_v24 = vpop.f32.mrb[81].mxu0 }
 0x17b   :  { %v706_v39 = vpop.f32.mrb[82].mxu1  ;;  %v1294_v30 = vpop.f32.mrb[82].mxu0  ;;  %v1818_v43 = vsel %vm351_vm0, %v4103_v9, 0 }
 0x17c   :  { %v707_v29 = vadd.f32 %v706_v39, %v7087_v56  ;;  %v4963_v52 = vpop.f32.mrb[83].mxu0  ;;  %v4833_v53 = vpop.f32.mrb[83].mxu1  ;;  %v7318_v56 = vcombine.low %v6848_v33, %v6848_v33 }
 0x17e   :  { %4939 = vmatmul.mubr.msk.bf16.gmra.mrb[188].mxu1 %vm251_vm1, %v6835_v32  ;;  %5069 = vmatmul.mubr.msk.bf16.gmra.mrb[188].mxu0 %vm251_vm1, %v6468_v45  ;;  %v6470_v32 = vld [vmem:[%s8585_s0 + $0x118] sm:$0xff]   ;;  %v4205_v45 = vld [vmem:[%s8586_s1 + $0x8] sm:$0xf] }
 0x17f   :  { %4942 = vmatprep.mubr.msk.bf16.mxu1 %vm6565_vm2, %v6564_v1  ;;  %5072 = vmatprep.mubr.msk.bf16.mxu0 %vm6565_vm2, %v6564_v1 }
 0x181   :  { %v1298_v51 = vpop.f32.mrb[84].mxu0  ;;  %v711_v41 = vpop.f32.mrb[84].mxu1 }
 0x182   :  { %v7314_v55 = vadd.f32 %v1298_v51, %v704_v63  ;;  %v4966_v14 = vpop.f32.mrb[85].mxu0  ;;  %v4836_v20 = vpop.f32.mrb[85].mxu1 }
 0x183   :  { %v1301_v26 = vpop.f32.mrb[86].mxu0  ;;  %v713_v60 = vpop.f32.mrb[86].mxu1  ;;  %v2911_v14 = vsel %vm351_vm0, %v4205_v45, 0  ;;  %v7398_v45 = vld [vmem:[%s8585_s0 + $0x28] sm:$0xff]  }
 0x184   :  { %v7323_v62 = vadd.f32 %v1301_v26, %v707_v29  ;;  %v4967_v2 = vpop.f32.mrb[87].mxu0  ;;  %v4837_v19 = vpop.f32.mrb[87].mxu1 }
 0x186   :  { %4943 = vmatmul.mubr.msk.bf16.gmra.mrb[192].mxu1 %vm251_vm1, %v7318_v56  ;;  %5073 = vmatmul.mubr.msk.bf16.gmra.mrb[192].mxu0 %vm251_vm1, %v6470_v32  ;;  %v7365_v32 = vld [vmem:[%s8585_s0 + $0x18] sm:$0xff]  }
 0x187   :  { %5076 = vmatprep.mubr.msk.bf16.mxu0 %vm6565_vm2, %v6564_v1  ;;  %5082 = vmatprep.mubr.msk.bf16.mxu1 %vm6565_vm2, %v6564_v1 }
 0x189   :  { %v717_v33 = vpop.f32.mrb[88].mxu1  ;;  %v1306_v4 = vpop.f32.mrb[88].mxu0 }
 0x18a   :  { %v718_v16 = vadd.f32 %v717_v33, %v7110_v8  ;;  %v4840_v38 = vpop.f32.mrb[89].mxu1  ;;  %v4970_v15 = vpop.f32.mrb[89].mxu0  ;;  %v7345_v8 = vld [vmem:[%s8585_s0 + $0x10] sm:$0xff]  }
 0x18b   :  { %v720_v58 = vpop.f32.mrb[90].mxu1  ;;  %v1308_v23 = vpop.f32.mrb[90].mxu0 }
 0x18c   :  { %v721_v25 = vadd.f32 %v720_v58, %v7115_v21  ;;  %v4971_v34 = vpop.f32.mrb[91].mxu0  ;;  %v4841_v63 = vpop.f32.mrb[91].mxu1 }
 0x18e   :  { %5077 = vmatmul.mubr.msk.bf16.gmra.mrb[196].mxu0 %vm251_vm1, %v6471_v28  ;;  %5083 = vmatmul.mubr.msk.bf16.vlgmr.msra.gmra.mrb[196].mxu1 %vm251_vm1, %v7345_v8  ;;  %v7381_v28 = vld [vmem:[%s8585_s0 + $0x20] sm:$0xff]  }
 0x18f   :  { %5086 = vmatprep.mubr.msk.bf16.mxu1 %vm6565_vm2, %v6564_v1  ;;  %5215 = vmatpush3.bf16.msra.mxu1 %v1818_v43 }
 0x190   :  { %5484 = vmatprep.mubr.msk.bf16.mxu0 %vm6565_vm2, %v6564_v1  ;;  %5348 = vmatprep.subr.bf16.mxu1 %v6564_v1 }
 0x191   :  { %v1312_v21 = vpop.f32.mrb[92].mxu0  ;;  %v725_v24 = vpop.f32.mrb[92].mxu1 }
 0x192   :  { %v7357_v39 = vadd.f32 %v1312_v21, %v718_v16  ;;  %v4974_v30 = vpop.f32.mrb[93].mxu0  ;;  %v4844_v29 = vpop.f32.mrb[93].mxu1 }
 0x193   :  { %v1315_v52 = vpop.f32.mrb[94].mxu0  ;;  %v727_v53 = vpop.f32.mrb[94].mxu1 }
 0x194   :  { %v7359_v51 = vadd.f32 %v1315_v52, %v721_v25  ;;  %v4975_v41 = vpop.f32.mrb[95].mxu0  ;;  %v4845_v20 = vpop.f32.mrb[95].mxu1 }
 0x196   :  { %5087 = vmatmul.mubr.msk.bf16.gmra.mrb[200].mxu1 %vm251_vm1, %v7365_v32  ;;  %5485 = vmatmul.mubr.msk.bf16.vlgmr.msra.gmra.mrb[200].mxu0 %vm251_vm1, %v7345_v8 }
 0x197   :  { %5617 = vmatpush3.bf16.msra.mxu0 %v2911_v14  ;;  %5090 = vmatprep.mubr.msk.bf16.mxu1 %vm6565_vm2, %v6564_v1 }
 0x198   :  { %5488 = vmatprep.mubr.msk.bf16.mxu0 %vm6565_vm2, %v6564_v1  ;;  %5750 = vmatprep.subr.bf16.mxu0 %v6564_v1 }
 0x199   :  { %v731_v26 = vpop.f32.mrb[96].mxu1  ;;  %v1320_v60 = vpop.f32.mrb[96].mxu0 }
 0x19a   :  { %v732_v2 = vadd.f32 %v731_v26, %v7138_v48  ;;  %v4848_v19 = vpop.f32.mrb[97].mxu1  ;;  %v4978_v33 = vpop.f32.mrb[97].mxu0 }
 0x19b   :  { %v734_v4 = vpop.f32.mrb[98].mxu1  ;;  %v1322_v9 = vpop.f32.mrb[98].mxu0  ;;  %v7413_v19 = vld [vmem:[%s8585_s0 + $0x30] sm:$0xff]  }
 0x19c   :  { %v735_v16 = vadd.f32 %v734_v4, %v7143_v54  ;;  %v4979_v38 = vpop.f32.mrb[99].mxu0  ;;  %v4849_v15 = vpop.f32.mrb[99].mxu1 }
 0x19e   :  { %5091 = vmatmul.mubr.msk.bf16.gmra.mrb[204].mxu1 %vm251_vm1, %v7381_v28  ;;  %5489 = vmatmul.mubr.msk.bf16.gmra.mrb[204].mxu0 %vm251_vm1, %v7365_v32 }
 0x19f   :  { %5094 = vmatprep.mubr.msk.bf16.mxu1 %vm6565_vm2, %v6564_v1  ;;  %5492 = vmatprep.mubr.msk.bf16.mxu0 %vm6565_vm2, %v6564_v1 }
 0x1a1   :  { %v1326_v48 = vpop.f32.mrb[100].mxu0  ;;  %v739_v54 = vpop.f32.mrb[100].mxu1 }
 0x1a2   :  { %v7391_v58 = vadd.f32 %v1326_v48, %v732_v2  ;;  %v4982_v23 = vpop.f32.mrb[101].mxu0  ;;  %v4852_v25 = vpop.f32.mrb[101].mxu1 }
 0x1a3   :  { %v1329_v34 = vpop.f32.mrb[102].mxu0  ;;  %v741_v63 = vpop.f32.mrb[102].mxu1  ;;  %v7430_v23 = vld [vmem:[%s8585_s0 + $0x38] sm:$0xff]  }
 0x1a4   :  { %v7393_v43 = vadd.f32 %v1329_v34, %v735_v16  ;;  %v4983_v21 = vpop.f32.mrb[103].mxu0  ;;  %v4853_v24 = vpop.f32.mrb[103].mxu1 }
 0x1a6   :  { %5095 = vmatmul.mubr.msk.bf16.gmra.mrb[208].mxu1 %vm251_vm1, %v7398_v45  ;;  %5493 = vmatmul.mubr.msk.bf16.gmra.mrb[208].mxu0 %vm251_vm1, %v7381_v28 }
 0x1a7   :  { %5098 = vmatprep.mubr.msk.bf16.mxu1 %vm6565_vm2, %v6564_v1  ;;  %5496 = vmatprep.mubr.msk.bf16.mxu0 %vm6565_vm2, %v6564_v1 }
 0x1a9   :  { %v745_v30 = vpop.f32.mrb[104].mxu1  ;;  %v1334_v29 = vpop.f32.mrb[104].mxu0 }
 0x1aa   :  { %v746_v52 = vadd.f32 %v745_v30, %v7166_v7  ;;  %v4856_v53 = vpop.f32.mrb[105].mxu1  ;;  %v4986_v41 = vpop.f32.mrb[105].mxu0 }
 0x1ab   :  { %v748_v14 = vpop.f32.mrb[106].mxu1  ;;  %v1336_v20 = vpop.f32.mrb[106].mxu0 }
 0x1ac   :  { %v749_v26 = vadd.f32 %v748_v14, %v7171_v37  ;;  %v4987_v60 = vpop.f32.mrb[107].mxu0  ;;  %v4857_v2 = vpop.f32.mrb[107].mxu1  ;;  %v7445_v14 = vld [vmem:[%s8585_s0 + $0x40] sm:$0xff]  }
 0x1ae   :  { %5099 = vmatmul.mubr.msk.bf16.gmra.mrb[212].mxu1 %vm251_vm1, %v7413_v19  ;;  %5497 = vmatmul.mubr.msk.bf16.gmra.mrb[212].mxu0 %vm251_vm1, %v7398_v45 }
 0x1af   :  { %5102 = vmatprep.mubr.msk.bf16.mxu1 %vm6565_vm2, %v6564_v1  ;;  %5500 = vmatprep.mubr.msk.bf16.mxu0 %vm6565_vm2, %v6564_v1 }
 0x1b1   :  { %v1340_v7 = vpop.f32.mrb[108].mxu0  ;;  %v753_v37 = vpop.f32.mrb[108].mxu1 }
 0x1b2   :  { %v7423_v33 = vadd.f32 %v1340_v7, %v746_v52  ;;  %v4990_v4 = vpop.f32.mrb[109].mxu0  ;;  %v4860_v9 = vpop.f32.mrb[109].mxu1 }
 0x1b3   :  { %v1343_v16 = vpop.f32.mrb[110].mxu0  ;;  %v755_v38 = vpop.f32.mrb[110].mxu1 }
 0x1b4   :  { %v7425_v15 = vadd.f32 %v1343_v16, %v749_v26  ;;  %v4991_v48 = vpop.f32.mrb[111].mxu0  ;;  %v4861_v54 = vpop.f32.mrb[111].mxu1  ;;  %v7462_v16 = vld [vmem:[%s8585_s0 + $0x48] sm:$0xff]  }
 0x1b6   :  { %5103 = vmatmul.mubr.msk.bf16.gmra.mrb[216].mxu1 %vm251_vm1, %v7430_v23  ;;  %5501 = vmatmul.mubr.msk.bf16.gmra.mrb[216].mxu0 %vm251_vm1, %v7413_v19 }
 0x1b7   :  { %5106 = vmatprep.mubr.msk.bf16.mxu1 %vm6565_vm2, %v6564_v1  ;;  %5504 = vmatprep.mubr.msk.bf16.mxu0 %vm6565_vm2, %v6564_v1 }
 0x1b9   :  { %v759_v25 = vpop.f32.mrb[112].mxu1  ;;  %v1348_v34 = vpop.f32.mrb[112].mxu0 }
 0x1ba   :  { %v760_v63 = vadd.f32 %v759_v25, %v7194_v50  ;;  %v4864_v21 = vpop.f32.mrb[113].mxu1  ;;  %v4994_v24 = vpop.f32.mrb[113].mxu0 }
 0x1bb   :  { %v762_v30 = vpop.f32.mrb[114].mxu1  ;;  %v1350_v29 = vpop.f32.mrb[114].mxu0 }
 0x1bc   :  { %v763_v52 = vadd.f32 %v762_v30, %v7199_v31  ;;  %v4995_v53 = vpop.f32.mrb[115].mxu0  ;;  %v4865_v41 = vpop.f32.mrb[115].mxu1 }
 0x1be   :  { %5107 = vmatmul.mubr.msk.bf16.gmra.mrb[220].mxu1 %vm251_vm1, %v7445_v14  ;;  %5505 = vmatmul.mubr.msk.bf16.gmra.mrb[220].mxu0 %vm251_vm1, %v7430_v23 }
 0x1bf   :  { %5110 = vmatprep.mubr.msk.bf16.mxu1 %vm6565_vm2, %v6564_v1  ;;  %5508 = vmatprep.mubr.msk.bf16.mxu0 %vm6565_vm2, %v6564_v1 }
 0x1c1   :  { %v1354_v50 = vpop.f32.mrb[116].mxu0  ;;  %v767_v31 = vpop.f32.mrb[116].mxu1 }
 0x1c2   :  { %v7455_v20 = vadd.f32 %v1354_v50, %v760_v63  ;;  %v4998_v26 = vpop.f32.mrb[117].mxu0  ;;  %v4868_v60 = vpop.f32.mrb[117].mxu1 }
 0x1c3   :  { %v1357_v2 = vpop.f32.mrb[118].mxu0  ;;  %v769_v7 = vpop.f32.mrb[118].mxu1 }
 0x1c4   :  { %v7457_v37 = vadd.f32 %v1357_v2, %v763_v52  ;;  %v4999_v4 = vpop.f32.mrb[119].mxu0  ;;  %v4869_v9 = vpop.f32.mrb[119].mxu1  ;;  %v7477_v52 = vld [vmem:[%s8585_s0 + $0x50] sm:$0xff]  }
 0x1c5   :  { %v7494_v4 = vld [vmem:[%s8585_s0 + $0x58] sm:$0xff]  }
 0x1c6   :  { %5111 = vmatmul.mubr.msk.bf16.gmra.mrb[224].mxu1 %vm251_vm1, %v7462_v16  ;;  %5509 = vmatmul.mubr.msk.bf16.gmra.mrb[224].mxu0 %vm251_vm1, %v7445_v14 }
 0x1c7   :  { %5114 = vmatprep.mubr.msk.bf16.mxu1 %vm6565_vm2, %v6564_v1  ;;  %5512 = vmatprep.mubr.msk.bf16.mxu0 %vm6565_vm2, %v6564_v1 }
 0x1c9   :  { %v773_v38 = vpop.f32.mrb[120].mxu1  ;;  %v1362_v48 = vpop.f32.mrb[120].mxu0 }
 0x1ca   :  { %v774_v54 = vadd.f32 %v773_v38, %v7222_v17  ;;  %v4872_v25 = vpop.f32.mrb[121].mxu1  ;;  %v5002_v34 = vpop.f32.mrb[121].mxu0 }
 0x1cb   :  { %v776_v63 = vpop.f32.mrb[122].mxu1  ;;  %v1364_v21 = vpop.f32.mrb[122].mxu0 }
 0x1cc   :  { %v777_v24 = vadd.f32 %v776_v63, %v7227_v42  ;;  %v5003_v30 = vpop.f32.mrb[123].mxu0  ;;  %v4873_v29 = vpop.f32.mrb[123].mxu1 }
 0x1cd   :  { %v7509_v29 = vld [vmem:[%s8585_s0 + $0x60] sm:$0xff]  }
 0x1ce   :  { %5115 = vmatmul.mubr.msk.bf16.gmra.mrb[228].mxu1 %vm251_vm1, %v7477_v52  ;;  %5513 = vmatmul.mubr.msk.bf16.gmra.mrb[228].mxu0 %vm251_vm1, %v7462_v16 }
 0x1cf   :  { %5118 = vmatprep.mubr.msk.bf16.mxu1 %vm6565_vm2, %v6564_v1  ;;  %5516 = vmatprep.mubr.msk.bf16.mxu0 %vm6565_vm2, %v6564_v1 }
 0x1d1   :  { %v1368_v17 = vpop.f32.mrb[124].mxu0  ;;  %v781_v42 = vpop.f32.mrb[124].mxu1 }
 0x1d2   :  { %v7487_v53 = vadd.f32 %v1368_v17, %v774_v54  ;;  %v5006_v41 = vpop.f32.mrb[125].mxu0  ;;  %v4876_v50 = vpop.f32.mrb[125].mxu1 }
 0x1d3   :  { %v1371_v31 = vpop.f32.mrb[126].mxu0  ;;  %v783_v26 = vpop.f32.mrb[126].mxu1 }
 0x1d4   :  { %v7489_v60 = vadd.f32 %v1371_v31, %v777_v24  ;;  %v5007_v2 = vpop.f32.mrb[127].mxu0  ;;  %v4877_v7 = vpop.f32.mrb[127].mxu1 }
 0x1d6   :  { %5119 = vmatmul.mubr.msk.bf16.gmra.mrb[232].mxu1 %vm251_vm1, %v7494_v4  ;;  %5517 = vmatmul.mubr.msk.bf16.gmra.mrb[232].mxu0 %vm251_vm1, %v7477_v52 }
 0x1d7   :  { %5122 = vmatprep.mubr.msk.bf16.mxu1 %vm6565_vm2, %v6564_v1  ;;  %5520 = vmatprep.mubr.msk.bf16.mxu0 %vm6565_vm2, %v6564_v1 }
 0x1d9   :  { %v787_v9 = vpop.f32.mrb[128].mxu1  ;;  %v1376_v38 = vpop.f32.mrb[128].mxu0 }
 0x1da   :  { %v788_v48 = vadd.f32 %v787_v9, %v7246_v57  ;;  %v4880_v54 = vpop.f32.mrb[129].mxu1  ;;  %v5010_v25 = vpop.f32.mrb[129].mxu0  ;;  %v7526_v9 = vld [vmem:[%s8585_s0 + $0x68] sm:$0xff]  }
 0x1db   :  { %v790_v34 = vpop.f32.mrb[130].mxu1  ;;  %v1378_v63 = vpop.f32.mrb[130].mxu0 }
 0x1dc   :  { %v791_v21 = vadd.f32 %v790_v34, %v7252_v22  ;;  %v5011_v24 = vpop.f32.mrb[131].mxu0  ;;  %v4881_v30 = vpop.f32.mrb[131].mxu1 }
 0x1de   :  { %5123 = vmatmul.mubr.msk.bf16.gmra.mrb[236].mxu1 %vm251_vm1, %v7509_v29  ;;  %5521 = vmatmul.mubr.msk.bf16.gmra.mrb[236].mxu0 %vm251_vm1, %v7494_v4 }
 0x1df   :  { %5126 = vmatprep.mubr.msk.bf16.mxu1 %vm6565_vm2, %v6564_v1  ;;  %5524 = vmatprep.mubr.msk.bf16.mxu0 %vm6565_vm2, %v6564_v1 }
 0x1e1   :  { %v1382_v57 = vpop.f32.mrb[132].mxu0  ;;  %v795_v22 = vpop.f32.mrb[132].mxu1 }
 0x1e2   :  { %v7519_v17 = vadd.f32 %v1382_v57, %v788_v48  ;;  %v5014_v42 = vpop.f32.mrb[133].mxu0  ;;  %v4884_v41 = vpop.f32.mrb[133].mxu1  ;;  %v7541_v22 = vld [vmem:[%s8585_s0 + $0x70] sm:$0xff]  }
 0x1e3   :  { %v1385_v50 = vpop.f32.mrb[134].mxu0  ;;  %v797_v31 = vpop.f32.mrb[134].mxu1 }
 0x1e4   :  { %v7521_v26 = vadd.f32 %v1385_v50, %v791_v21  ;;  %v5015_v2 = vpop.f32.mrb[135].mxu0  ;;  %v4885_v7 = vpop.f32.mrb[135].mxu1 }
 0x1e6   :  { %5127 = vmatmul.mubr.msk.bf16.gmra.mrb[240].mxu1 %vm251_vm1, %v7526_v9  ;;  %5525 = vmatmul.mubr.msk.bf16.gmra.mrb[240].mxu0 %vm251_vm1, %v7509_v29 }
 0x1e7   :  { %5130 = vmatprep.mubr.msk.bf16.mxu1 %vm6565_vm2, %v6564_v1  ;;  %5528 = vmatprep.mubr.msk.bf16.mxu0 %vm6565_vm2, %v6564_v1 }
 0x1e9   :  { %v801_v38 = vpop.f32.mrb[136].mxu1  ;;  %v1390_v48 = vpop.f32.mrb[136].mxu0 }
 0x1ea   :  { %v802_v54 = vadd.f32 %v801_v38, %v7040_v6  ;;  %v4888_v25 = vpop.f32.mrb[137].mxu1  ;;  %v5018_v34 = vpop.f32.mrb[137].mxu0 }
 0x1eb   :  { %v804_v63 = vpop.f32.mrb[138].mxu1  ;;  %v1392_v21 = vpop.f32.mrb[138].mxu0  ;;  %v7558_v25 = vld [vmem:[%s8585_s0 + $0x78] sm:$0xff]  }
 0x1ec   :  { %v805_v24 = vadd.f32 %v804_v63, %v7045_v13  ;;  %v5019_v30 = vpop.f32.mrb[139].mxu0  ;;  %v4889_v57 = vpop.f32.mrb[139].mxu1 }
 0x1ee   :  { %5131 = vmatmul.mubr.msk.bf16.gmra.mrb[244].mxu1 %vm251_vm1, %v7541_v22  ;;  %5529 = vmatmul.mubr.msk.bf16.gmra.mrb[244].mxu0 %vm251_vm1, %v7526_v9 }
 0x1ef   :  { %5134 = vmatprep.mubr.msk.bf16.mxu1 %vm6565_vm2, %v6564_v1  ;;  %5532 = vmatprep.mubr.msk.bf16.mxu0 %vm6565_vm2, %v6564_v1 }
 0x1f1   :  { %v1396_v6 = vpop.f32.mrb[140].mxu0  ;;  %v809_v13 = vpop.f32.mrb[140].mxu1 }
 0x1f2   :  { %v7551_v42 = vadd.f32 %v1396_v6, %v802_v54  ;;  %v5022_v41 = vpop.f32.mrb[141].mxu0  ;;  %v4892_v50 = vpop.f32.mrb[141].mxu1 }
 0x1f3   :  { %v1399_v31 = vpop.f32.mrb[142].mxu0  ;;  %v811_v2 = vpop.f32.mrb[142].mxu1  ;;  %v7573_v50 = vld [vmem:[%s8585_s0 + $0x80] sm:$0xff]  }
 0x1f4   :  { %v7553_v7 = vadd.f32 %v1399_v31, %v805_v24  ;;  %v5023_v38 = vpop.f32.mrb[143].mxu0  ;;  %v4893_v48 = vpop.f32.mrb[143].mxu1 }
 0x1f6   :  { %5135 = vmatmul.mubr.msk.bf16.gmra.mrb[248].mxu1 %vm251_vm1, %v7558_v25  ;;  %5533 = vmatmul.mubr.msk.bf16.gmra.mrb[248].mxu0 %vm251_vm1, %v7541_v22 }
 0x1f7   :  { %5138 = vmatprep.mubr.msk.bf16.mxu1 %vm6565_vm2, %v6564_v1  ;;  %5536 = vmatprep.mubr.msk.bf16.mxu0 %vm6565_vm2, %v6564_v1 }
 0x1f9   :  { %v815_v54 = vpop.f32.mrb[144].mxu1  ;;  %v1404_v34 = vpop.f32.mrb[144].mxu0 }
 0x1fa   :  { %v816_v63 = vadd.f32 %v815_v54, %v7068_v44  ;;  %v4896_v21 = vpop.f32.mrb[145].mxu1  ;;  %v5026_v24 = vpop.f32.mrb[145].mxu0 }
 0x1fb   :  { %v818_v30 = vpop.f32.mrb[146].mxu1  ;;  %v1406_v57 = vpop.f32.mrb[146].mxu0 }
 0x1fc   :  { %v819_v6 = vadd.f32 %v818_v30, %v7073_v49  ;;  %v5027_v13 = vpop.f32.mrb[147].mxu0  ;;  %v4897_v41 = vpop.f32.mrb[147].mxu1  ;;  %v7590_v30 = vld [vmem:[%s8585_s0 + $0x88] sm:$0xff]  }
 0x1fe   :  { %5139 = vmatmul.mubr.msk.bf16.gmra.mrb[252].mxu1 %vm251_vm1, %v7573_v50  ;;  %5537 = vmatmul.mubr.msk.bf16.gmra.mrb[252].mxu0 %vm251_vm1, %v7558_v25 }
 0x1ff   :  { %5142 = vmatprep.mubr.msk.bf16.mxu1 %vm6565_vm2, %v6564_v1  ;;  %5540 = vmatprep.mubr.msk.bf16.mxu0 %vm6565_vm2, %v6564_v1 }
 0x201   :  { %v1410_v44 = vpop.f32.mrb[148].mxu0  ;;  %v823_v49 = vpop.f32.mrb[148].mxu1 }
 0x202   :  { %v7583_v31 = vadd.f32 %v1410_v44, %v816_v63  ;;  %v5030_v2 = vpop.f32.mrb[149].mxu0  ;;  %v4900_v38 = vpop.f32.mrb[149].mxu1 }
 0x203   :  { %v1413_v48 = vpop.f32.mrb[150].mxu0  ;;  %v825_v54 = vpop.f32.mrb[150].mxu1 }
 0x204   :  { %v7585_v34 = vadd.f32 %v1413_v48, %v819_v6  ;;  %v5031_v21 = vpop.f32.mrb[151].mxu0  ;;  %v4901_v24 = vpop.f32.mrb[151].mxu1  ;;  %v7605_v54 = vld [vmem:[%s8585_s0 + $0x90] sm:$0xff]  }
 0x206   :  { %5143 = vmatmul.mubr.msk.bf16.gmra.mrb[0].mxu1 %vm251_vm1, %v7590_v30  ;;  %5541 = vmatmul.mubr.msk.bf16.gmra.mrb[0].mxu0 %vm251_vm1, %v7573_v50 }
 0x207   :  { %5146 = vmatprep.mubr.msk.bf16.mxu1 %vm6565_vm2, %v6564_v1  ;;  %5544 = vmatprep.mubr.msk.bf16.mxu0 %vm6565_vm2, %v6564_v1 }
 0x209   :  { %v829_v63 = vpop.f32.mrb[152].mxu1  ;;  %v1418_v57 = vpop.f32.mrb[152].mxu0 }
 0x20a   :  { %v830_v6 = vadd.f32 %v829_v63, %v7096_v61  ;;  %v4904_v13 = vpop.f32.mrb[153].mxu1  ;;  %v5034_v41 = vpop.f32.mrb[153].mxu0 }
 0x20b   :  { %v832_v44 = vpop.f32.mrb[154].mxu1  ;;  %v1420_v49 = vpop.f32.mrb[154].mxu0 }
 0x20c   :  { %v833_v2 = vadd.f32 %v832_v44, %v7101_v5  ;;  %v5035_v38 = vpop.f32.mrb[155].mxu0  ;;  %v4905_v48 = vpop.f32.mrb[155].mxu1 }
 0x20d   :  { %v7622_v38 = vld [vmem:[%s8585_s0 + $0x98] sm:$0xff]  }
 0x20e   :  { %5147 = vmatmul.mubr.msk.bf16.gmra.mrb[4].mxu1 %vm251_vm1, %v7605_v54  ;;  %5545 = vmatmul.mubr.msk.bf16.gmra.mrb[4].mxu0 %vm251_vm1, %v7590_v30 }
 0x20f   :  { %5150 = vmatprep.mubr.msk.bf16.mxu1 %vm6565_vm2, %v6564_v1  ;;  %5548 = vmatprep.mubr.msk.bf16.mxu0 %vm6565_vm2, %v6564_v1 }
 0x211   :  { %v1424_v61 = vpop.f32.mrb[156].mxu0  ;;  %v837_v5 = vpop.f32.mrb[156].mxu1 }
 0x212   :  { %v7615_v21 = vadd.f32 %v1424_v61, %v830_v6  ;;  %v5038_v24 = vpop.f32.mrb[157].mxu0  ;;  %v4908_v63 = vpop.f32.mrb[157].mxu1 }
 0x213   :  { %v1427_v57 = vpop.f32.mrb[158].mxu0  ;;  %v839_v13 = vpop.f32.mrb[158].mxu1 }
 0x214   :  { %v7617_v41 = vadd.f32 %v1427_v57, %v833_v2  ;;  %v5039_v44 = vpop.f32.mrb[159].mxu0  ;;  %v4909_v49 = vpop.f32.mrb[159].mxu1 }
 0x215   :  { %v7637_v49 = vld [vmem:[%s8585_s0 + $0xa0] sm:$0xff]  }
 0x216   :  { %8589 = vst [vmem:[#allocation5_spill] sm:$0xff] %v7617_v41  ;;  %5151 = vmatmul.mubr.msk.bf16.gmra.mrb[8].mxu1 %vm251_vm1, %v7622_v38  ;;  %5549 = vmatmul.mubr.msk.bf16.gmra.mrb[8].mxu0 %vm251_vm1, %v7605_v54  ;;  %v7654_v41 = vld [vmem:[%s8585_s0 + $0xa8] sm:$0xff]  }
 0x217   :  { %5154 = vmatprep.mubr.msk.bf16.mxu1 %vm6565_vm2, %v6564_v1  ;;  %5552 = vmatprep.mubr.msk.bf16.mxu0 %vm6565_vm2, %v6564_v1 }
 0x219   :  { %v843_v6 = vpop.f32.mrb[160].mxu1  ;;  %v1432_v2 = vpop.f32.mrb[160].mxu0 }
 0x21a   :  { %v844_v48 = vadd.f32 %v843_v6, %v7124_v27  ;;  %v4912_v61 = vpop.f32.mrb[161].mxu1  ;;  %v5042_v5 = vpop.f32.mrb[161].mxu0 }
 0x21b   :  { %v846_v24 = vpop.f32.mrb[162].mxu1  ;;  %v1434_v63 = vpop.f32.mrb[162].mxu0 }
 0x21c   :  { %v847_v57 = vadd.f32 %v846_v24, %v7129_v46  ;;  %v5043_v13 = vpop.f32.mrb[163].mxu0  ;;  %v4913_v44 = vpop.f32.mrb[163].mxu1 }
 0x21e   :  { %5155 = vmatmul.mubr.msk.bf16.gmra.mrb[12].mxu1 %vm251_vm1, %v7637_v49  ;;  %5553 = vmatmul.mubr.msk.bf16.gmra.mrb[12].mxu0 %vm251_vm1, %v7622_v38 }
 0x21f   :  { %5158 = vmatprep.mubr.msk.bf16.mxu1 %vm6565_vm2, %v6564_v1  ;;  %5556 = vmatprep.mubr.msk.bf16.mxu0 %vm6565_vm2, %v6564_v1 }
 0x221   :  { %v1438_v27 = vpop.f32.mrb[164].mxu0  ;;  %v851_v46 = vpop.f32.mrb[164].mxu1 }
 0x222   :  { %v7647_v6 = vadd.f32 %v1438_v27, %v844_v48  ;;  %v5046_v2 = vpop.f32.mrb[165].mxu0  ;;  %v4916_v61 = vpop.f32.mrb[165].mxu1 }
 0x223   :  { %v1441_v5 = vpop.f32.mrb[166].mxu0  ;;  %v853_v24 = vpop.f32.mrb[166].mxu1 }
 0x224   :  { %8590 = vst [vmem:[#allocation6_spill] sm:$0xff] %v7647_v6  ;;  %v7649_v63 = vadd.f32 %v1441_v5, %v847_v57  ;;  %v5047_v13 = vpop.f32.mrb[167].mxu0  ;;  %v4917_v44 = vpop.f32.mrb[167].mxu1  ;;  %v7686_v6 = vld [vmem:[%s8585_s0 + $0xb8] sm:$0xff]  }
 0x226   :  { %8591 = vst [vmem:[#allocation7_spill] sm:$0xff] %v7649_v63  ;;  %5159 = vmatmul.mubr.msk.bf16.gmra.mrb[16].mxu1 %vm251_vm1, %v7654_v41  ;;  %5557 = vmatmul.mubr.msk.bf16.gmra.mrb[16].mxu0 %vm251_vm1, %v7637_v49  ;;  %v7669_v63 = vld [vmem:[%s8585_s0 + $0xb0] sm:$0xff]  }
 0x227   :  { %5162 = vmatprep.mubr.msk.bf16.mxu1 %vm6565_vm2, %v6564_v1  ;;  %5560 = vmatprep.mubr.msk.bf16.mxu0 %vm6565_vm2, %v6564_v1 }
 0x229   :  { %v857_v48 = vpop.f32.mrb[168].mxu1  ;;  %v1446_v57 = vpop.f32.mrb[168].mxu0 }
 0x22a   :  { %v858_v27 = vadd.f32 %v857_v48, %v7152_v59  ;;  %v4920_v46 = vpop.f32.mrb[169].mxu1  ;;  %v5050_v2 = vpop.f32.mrb[169].mxu0 }
 0x22b   :  { %v860_v61 = vpop.f32.mrb[170].mxu1  ;;  %v1448_v5 = vpop.f32.mrb[170].mxu0 }
 0x22c   :  { %v861_v24 = vadd.f32 %v860_v61, %v7157_v3  ;;  %v5051_v13 = vpop.f32.mrb[171].mxu0  ;;  %v4921_v44 = vpop.f32.mrb[171].mxu1 }
 0x22e   :  { %5163 = vmatmul.mubr.msk.bf16.gmra.mrb[20].mxu1 %vm251_vm1, %v7669_v63  ;;  %5561 = vmatmul.mubr.msk.bf16.gmra.mrb[20].mxu0 %vm251_vm1, %v7654_v41 }
 0x22f   :  { %5166 = vmatprep.mubr.msk.bf16.mxu1 %vm6565_vm2, %v6564_v1  ;;  %5564 = vmatprep.mubr.msk.bf16.mxu0 %vm6565_vm2, %v6564_v1 }
 0x231   :  { %v1452_v59 = vpop.f32.mrb[172].mxu0  ;;  %v865_v3 = vpop.f32.mrb[172].mxu1 }
 0x232   :  { %v7679_v48 = vadd.f32 %v1452_v59, %v858_v27  ;;  %v5054_v57 = vpop.f32.mrb[173].mxu0  ;;  %v4924_v46 = vpop.f32.mrb[173].mxu1 }
 0x233   :  { %v1455_v2 = vpop.f32.mrb[174].mxu0  ;;  %v867_v61 = vpop.f32.mrb[174].mxu1 }
 0x234   :  { %8592 = vst [vmem:[#allocation8_spill] sm:$0xff] %v7679_v48  ;;  %v7681_v5 = vadd.f32 %v1455_v2, %v861_v24  ;;  %v5055_v13 = vpop.f32.mrb[175].mxu0  ;;  %v4925_v44 = vpop.f32.mrb[175].mxu1  ;;  %v7718_v48 = vld [vmem:[%s8585_s0 + $0xc8] sm:$0xff]  }
 0x236   :  { %8593 = vst [vmem:[#allocation9_spill] sm:$0xff] %v7681_v5  ;;  %5167 = vmatmul.mubr.msk.bf16.gmra.mrb[24].mxu1 %vm251_vm1, %v7686_v6  ;;  %5565 = vmatmul.mubr.msk.bf16.gmra.mrb[24].mxu0 %vm251_vm1, %v7669_v63  ;;  %v7701_v5 = vld [vmem:[%s8585_s0 + $0xc0] sm:$0xff]  }
 0x237   :  { %5170 = vmatprep.mubr.msk.bf16.mxu1 %vm6565_vm2, %v6564_v1  ;;  %5568 = vmatprep.mubr.msk.bf16.mxu0 %vm6565_vm2, %v6564_v1 }
 0x239   :  { %v871_v27 = vpop.f32.mrb[176].mxu1  ;;  %v1460_v24 = vpop.f32.mrb[176].mxu0 }
 0x23a   :  { %v872_v59 = vadd.f32 %v871_v27, %v7180_v40  ;;  %v4928_v3 = vpop.f32.mrb[177].mxu1  ;;  %v5058_v57 = vpop.f32.mrb[177].mxu0 }
 0x23b   :  { %v874_v46 = vpop.f32.mrb[178].mxu1  ;;  %v1462_v2 = vpop.f32.mrb[178].mxu0 }
 0x23c   :  { %v875_v61 = vadd.f32 %v874_v46, %v7185_v47  ;;  %v5059_v13 = vpop.f32.mrb[179].mxu0  ;;  %v4929_v44 = vpop.f32.mrb[179].mxu1 }
 0x23e   :  { %5171 = vmatmul.mubr.msk.bf16.gmra.mrb[28].mxu1 %vm251_vm1, %v7701_v5  ;;  %5569 = vmatmul.mubr.msk.bf16.gmra.mrb[28].mxu0 %vm251_vm1, %v7686_v6 }
 0x23f   :  { %5174 = vmatprep.mubr.msk.bf16.mxu1 %vm6565_vm2, %v6564_v1  ;;  %5572 = vmatprep.mubr.msk.bf16.mxu0 %vm6565_vm2, %v6564_v1 }
 0x241   :  { %v1466_v40 = vpop.f32.mrb[180].mxu0  ;;  %v879_v47 = vpop.f32.mrb[180].mxu1 }
 0x242   :  { %v7711_v27 = vadd.f32 %v1466_v40, %v872_v59  ;;  %v5062_v24 = vpop.f32.mrb[181].mxu0  ;;  %v4932_v3 = vpop.f32.mrb[181].mxu1 }
 0x243   :  { %v1469_v57 = vpop.f32.mrb[182].mxu0  ;;  %v881_v46 = vpop.f32.mrb[182].mxu1 }
 0x244   :  { %8594 = vst [vmem:[#allocation10_spill] sm:$0xff] %v7711_v27  ;;  %v7713_v2 = vadd.f32 %v1469_v57, %v875_v61  ;;  %v5063_v13 = vpop.f32.mrb[183].mxu0  ;;  %v4933_v44 = vpop.f32.mrb[183].mxu1  ;;  %v7750_v27 = vld [vmem:[%s8585_s0 + $0xd8] sm:$0xff]  }
 0x246   :  { %8595 = vst [vmem:[#allocation11_spill] sm:$0xff] %v7713_v2  ;;  %5175 = vmatmul.mubr.msk.bf16.gmra.mrb[32].mxu1 %vm251_vm1, %v7718_v48  ;;  %5573 = vmatmul.mubr.msk.bf16.gmra.mrb[32].mxu0 %vm251_vm1, %v7701_v5  ;;  %v7733_v2 = vld [vmem:[%s8585_s0 + $0xd0] sm:$0xff]  }
 0x247   :  { %5178 = vmatprep.mubr.msk.bf16.mxu1 %vm6565_vm2, %v6564_v1  ;;  %5576 = vmatprep.mubr.msk.bf16.mxu0 %vm6565_vm2, %v6564_v1 }
 0x249   :  { %v885_v59 = vpop.f32.mrb[184].mxu1  ;;  %v1474_v61 = vpop.f32.mrb[184].mxu0 }
 0x24a   :  { %v886_v40 = vadd.f32 %v885_v59, %v7208_v0  ;;  %v4936_v47 = vpop.f32.mrb[185].mxu1  ;;  %v5066_v24 = vpop.f32.mrb[185].mxu0 }
 0x24b   :  { %v888_v3 = vpop.f32.mrb[186].mxu1  ;;  %v1476_v57 = vpop.f32.mrb[186].mxu0 }
 0x24c   :  { %v889_v46 = vadd.f32 %v888_v3, %v7213_v11  ;;  %v5067_v13 = vpop.f32.mrb[187].mxu0  ;;  %v4937_v44 = vpop.f32.mrb[187].mxu1 }
 0x24e   :  { %5179 = vmatmul.mubr.msk.bf16.gmra.mrb[36].mxu1 %vm251_vm1, %v7733_v2  ;;  %5577 = vmatmul.mubr.msk.bf16.gmra.mrb[36].mxu0 %vm251_vm1, %v7718_v48 }
 0x24f   :  { %5182 = vmatprep.mubr.msk.bf16.mxu1 %vm6565_vm2, %v6564_v1  ;;  %5580 = vmatprep.mubr.msk.bf16.mxu0 %vm6565_vm2, %v6564_v1 }
 0x251   :  { %v1480_v0 = vpop.f32.mrb[188].mxu0  ;;  %v893_v11 = vpop.f32.mrb[188].mxu1 }
 0x252   :  { %v7743_v59 = vadd.f32 %v1480_v0, %v886_v40  ;;  %v5070_v61 = vpop.f32.mrb[189].mxu0  ;;  %v4940_v47 = vpop.f32.mrb[189].mxu1 }
 0x253   :  { %v1483_v24 = vpop.f32.mrb[190].mxu0  ;;  %v895_v3 = vpop.f32.mrb[190].mxu1 }
 0x254   :  { %v7745_v57 = vadd.f32 %v1483_v24, %v889_v46  ;;  %v5071_v13 = vpop.f32.mrb[191].mxu0  ;;  %v4941_v44 = vpop.f32.mrb[191].mxu1 }
 0x255   :  { %v7763_v13 = vld [vmem:[%s8585_s0 + $0xe0] sm:$0xff]  }
 0x256   :  { %5183 = vmatmul.mubr.msk.bf16.gmra.mrb[40].mxu1 %vm251_vm1, %v7750_v27  ;;  %5581 = vmatmul.mubr.msk.bf16.gmra.mrb[40].mxu0 %vm251_vm1, %v7733_v2 }
 0x257   :  { %5186 = vmatprep.mubr.msk.bf16.mxu1 %vm6565_vm2, %v6564_v1  ;;  %5584 = vmatprep.mubr.msk.bf16.mxu0 %vm6565_vm2, %v6564_v1 }
 0x259   :  { %v1488_v40 = vpop.f32.mrb[192].mxu0  ;;  %v899_v46 = vpop.f32.mrb[192].mxu1 }
 0x25a   :  { %v5074_v0 = vpop.f32.mrb[193].mxu0  ;;  %v4944_v11 = vpop.f32.mrb[193].mxu1 }
 0x25b   :  { %v1490_v61 = vpop.f32.mrb[194].mxu0  ;;  %v901_v47 = vpop.f32.mrb[194].mxu1  ;;  %v7776_v11 = vld [vmem:[%s8585_s0 + $0xe8] sm:$0xff]  }
 0x25c   :  { %v5075_v24 = vpop.f32.mrb[195].mxu0  ;;  %v4945_v3 = vpop.f32.mrb[195].mxu1  ;;  %v7789_v61 = vld [vmem:[%s8585_s0 + $0xf0] sm:$0xff]   ;;  %v7802_v47 = vld [vmem:[%s8585_s0 + $0xf8] sm:$0xff]  }
 0x25d   :  { %v6502_v24 = vld [vmem:[%s8585_s0 + $0x108] sm:$0xff]   ;;  %v6503_v3 = vld [vmem:[%s8585_s0 + $0x110] ss:$0 sps:$4 sm:$0xff]  }
 0x25e   :  { %5187 = vmatmul.mubr.msk.bf16.gmra.mrb[44].mxu1 %vm251_vm1, %v7763_v13  ;;  %5585 = vmatmul.mubr.msk.bf16.gmra.mrb[44].mxu0 %vm251_vm1, %v7750_v27 }
 0x25f   :  { %5190 = vmatprep.mubr.msk.bf16.mxu1 %vm6565_vm2, %v6564_v1  ;;  %5588 = vmatprep.mubr.msk.bf16.mxu0 %vm6565_vm2, %v6564_v1 }
 0x261   :  { %v1494_v44 = vpop.f32.mrb[196].mxu0 }
 0x262   :  { %v5078_v40 = vpop.f32.mrb[197].mxu0 }
 0x263   :  { %v1496_v46 = vpop.f32.mrb[198].mxu0  ;;  %v6504_v40 = vld [vmem:[%s8585_s0] sm:$0xff]  }
 0x264   :  { %v5079_v0 = vpop.f32.mrb[199].mxu0  ;;  %v4273_v46 = vld [vmem:[%s8586_s1 + $0x20] sm:$0xf] }
 0x265   :  { %v3195_v0 = vsel %vm351_vm0, %v4273_v46, 0 }
 0x266   :  { %5191 = vmatmul.mubr.msk.bf16.gmra.mrb[48].mxu1 %vm251_vm1, %v7776_v11  ;;  %5589 = vmatmul.mubr.msk.bf16.gmra.mrb[48].mxu0 %vm251_vm1, %v7763_v13 }
 0x267   :  { %5194 = vmatprep.mubr.msk.bf16.mxu1 %vm6565_vm2, %v6564_v1  ;;  %5592 = vmatprep.mubr.msk.bf16.mxu0 %vm6565_vm2, %v6564_v1 }
 0x26e   :  { %5195 = vmatmul.mubr.msk.bf16.gmra.mrb[52].mxu1 %vm251_vm1, %v7789_v61  ;;  %5593 = vmatmul.mubr.msk.bf16.gmra.mrb[52].mxu0 %vm251_vm1, %v7776_v11 }
 0x26f   :  { %5198 = vmatprep.mubr.msk.bf16.mxu1 %vm6565_vm2, %v6564_v1  ;;  %5596 = vmatprep.mubr.msk.bf16.mxu0 %vm6565_vm2, %v6564_v1 }
 0x276   :  { %5199 = vmatmul.mubr.msk.bf16.gmra.mrb[56].mxu1 %vm251_vm1, %v7802_v47  ;;  %5597 = vmatmul.mubr.msk.bf16.gmra.mrb[56].mxu0 %vm251_vm1, %v7789_v61 }
 0x277   :  { %5202 = vmatprep.mubr.msk.bf16.mxu1 %vm6565_vm2, %v6564_v1  ;;  %5600 = vmatprep.mubr.msk.bf16.mxu0 %vm6565_vm2, %v6564_v1 }
 0x27e   :  { %5203 = vmatmul.mubr.msk.bf16.gmra.mrb[60].mxu1 %vm251_vm1, %v6859_v36  ;;  %5601 = vmatmul.mubr.msk.bf16.gmra.mrb[60].mxu0 %vm251_vm1, %v7802_v47 }
 0x27f   :  { %5206 = vmatprep.mubr.msk.bf16.mxu1 %vm6565_vm2, %v6564_v1  ;;  %5604 = vmatprep.mubr.msk.bf16.mxu0 %vm6565_vm2, %v6564_v1 }
 0x286   :  { %5207 = vmatmul.mubr.msk.bf16.gmra.mrb[64].mxu1 %vm251_vm1, %v6502_v24  ;;  %5605 = vmatmul.mubr.msk.bf16.gmra.mrb[64].mxu0 %vm251_vm1, %v6859_v36  ;;  %v4171_v36 = vld [vmem:[%s8586_s1 + $0x1c] sm:$0xf] }
 0x287   :  { %5210 = vmatprep.mubr.msk.bf16.mxu1 %vm6565_vm2, %v6564_v1  ;;  %5608 = vmatprep.mubr.msk.bf16.mxu0 %vm6565_vm2, %v6564_v1  ;;  %v2102_v44 = vsel %vm351_vm0, %v4171_v36, 0  ;;  %v6530_v36 = vld [vmem:[%s8585_s0 + $0xe0] sm:$0xff]  }
 0x28e   :  { %5211 = vmatmul.mubr.msk.bf16.gmra.mrb[68].mxu1 %vm251_vm1, %v6503_v3  ;;  %5609 = vmatmul.mubr.msk.bf16.gmra.mrb[68].mxu0 %vm251_vm1, %v6502_v24  ;;  %v6505_v24 = vld [vmem:[%s8585_s0 + $0x8] sm:$0xff]  }
 0x28f   :  { %5216 = vmatprep.mubr.msk.bf16.mxu1 %vm6565_vm2, %v6564_v1  ;;  %5612 = vmatprep.mubr.msk.bf16.mxu0 %vm6565_vm2, %v6564_v1 }
 0x296   :  { %5217 = vmatmul.mubr.msk.bf16.vlgmr.msra.gmra.mrb[196].mxu1 %vm251_vm1, %v6504_v40  ;;  %5613 = vmatmul.mubr.msk.bf16.gmra.mrb[72].mxu0 %vm251_vm1, %v6503_v3  ;;  %v6529_v3 = vld [vmem:[%s8585_s0 + $0xd8] sm:$0xff]  }
 0x297   :  { %5220 = vmatprep.mubr.msk.bf16.mxu1 %vm6565_vm2, %v6564_v1  ;;  %5349 = vmatpush3.bf16.msra.mxu1 %v2102_v44  ;;  %v6531_v44 = vld [vmem:[%s8585_s0 + $0xe8] sm:$0xff]  }
 0x298   :  { %5618 = vmatprep.mubr.msk.bf16.mxu0 %vm6565_vm2, %v6564_v1 }
 0x29e   :  { %5221 = vmatmul.mubr.msk.bf16.gmra.mrb[200].mxu1 %vm251_vm1, %v6505_v24  ;;  %5619 = vmatmul.mubr.msk.bf16.vlgmr.msra.gmra.mrb[200].mxu0 %vm251_vm1, %v6504_v40 }
 0x29f   :  { %5751 = vmatpush3.bf16.msra.mxu0 %v3195_v0  ;;  %5224 = vmatprep.mubr.msk.bf16.mxu1 %vm6565_vm2, %v6564_v1 }
 0x2a0   :  { %5622 = vmatprep.mubr.msk.bf16.mxu0 %vm6565_vm2, %v6564_v1 }
 0x2a6   :  { %5225 = vmatmul.mubr.msk.bf16.gmra.mrb[204].mxu1 %vm251_vm1, %v7345_v8  ;;  %5623 = vmatmul.mubr.msk.bf16.gmra.mrb[204].mxu0 %vm251_vm1, %v6505_v24 }
 0x2a7   :  { %5228 = vmatprep.mubr.msk.bf16.mxu1 %vm6565_vm2, %v6564_v1  ;;  %5626 = vmatprep.mubr.msk.bf16.mxu0 %vm6565_vm2, %v6564_v1 }
 0x2ae   :  { %5229 = vmatmul.mubr.msk.bf16.gmra.mrb[208].mxu1 %vm251_vm1, %v7365_v32  ;;  %5627 = vmatmul.mubr.msk.bf16.gmra.mrb[208].mxu0 %vm251_vm1, %v7345_v8 }
 0x2af   :  { %5232 = vmatprep.mubr.msk.bf16.mxu1 %vm6565_vm2, %v6564_v1  ;;  %5630 = vmatprep.mubr.msk.bf16.mxu0 %vm6565_vm2, %v6564_v1 }
 0x2b6   :  { %5233 = vmatmul.mubr.msk.bf16.gmra.mrb[212].mxu1 %vm251_vm1, %v7381_v28  ;;  %5631 = vmatmul.mubr.msk.bf16.gmra.mrb[212].mxu0 %vm251_vm1, %v7365_v32 }
 0x2b7   :  { %5236 = vmatprep.mubr.msk.bf16.mxu1 %vm6565_vm2, %v6564_v1  ;;  %5634 = vmatprep.mubr.msk.bf16.mxu0 %vm6565_vm2, %v6564_v1 }
 0x2be   :  { %5237 = vmatmul.mubr.msk.bf16.gmra.mrb[216].mxu1 %vm251_vm1, %v7398_v45  ;;  %5635 = vmatmul.mubr.msk.bf16.gmra.mrb[216].mxu0 %vm251_vm1, %v7381_v28 }
 0x2bf   :  { %5240 = vmatprep.mubr.msk.bf16.mxu1 %vm6565_vm2, %v6564_v1  ;;  %5638 = vmatprep.mubr.msk.bf16.mxu0 %vm6565_vm2, %v6564_v1 }
 0x2c6   :  { %5241 = vmatmul.mubr.msk.bf16.gmra.mrb[220].mxu1 %vm251_vm1, %v7413_v19  ;;  %5639 = vmatmul.mubr.msk.bf16.gmra.mrb[220].mxu0 %vm251_vm1, %v7398_v45 }
 0x2c7   :  { %5244 = vmatprep.mubr.msk.bf16.mxu1 %vm6565_vm2, %v6564_v1  ;;  %5642 = vmatprep.mubr.msk.bf16.mxu0 %vm6565_vm2, %v6564_v1 }
 0x2ce   :  { %5245 = vmatmul.mubr.msk.bf16.gmra.mrb[224].mxu1 %vm251_vm1, %v7430_v23  ;;  %5643 = vmatmul.mubr.msk.bf16.gmra.mrb[224].mxu0 %vm251_vm1, %v7413_v19 }
 0x2cf   :  { %5248 = vmatprep.mubr.msk.bf16.mxu1 %vm6565_vm2, %v6564_v1  ;;  %5646 = vmatprep.mubr.msk.bf16.mxu0 %vm6565_vm2, %v6564_v1 }
 0x2d6   :  { %5249 = vmatmul.mubr.msk.bf16.gmra.mrb[228].mxu1 %vm251_vm1, %v7445_v14  ;;  %5647 = vmatmul.mubr.msk.bf16.gmra.mrb[228].mxu0 %vm251_vm1, %v7430_v23 }
 0x2d7   :  { %5252 = vmatprep.mubr.msk.bf16.mxu1 %vm6565_vm2, %v6564_v1  ;;  %5650 = vmatprep.mubr.msk.bf16.mxu0 %vm6565_vm2, %v6564_v1 }
 0x2de   :  { %5253 = vmatmul.mubr.msk.bf16.gmra.mrb[232].mxu1 %vm251_vm1, %v7462_v16  ;;  %5651 = vmatmul.mubr.msk.bf16.gmra.mrb[232].mxu0 %vm251_vm1, %v7445_v14 }
 0x2df   :  { %5256 = vmatprep.mubr.msk.bf16.mxu1 %vm6565_vm2, %v6564_v1  ;;  %5654 = vmatprep.mubr.msk.bf16.mxu0 %vm6565_vm2, %v6564_v1 }
 0x2e6   :  { %5257 = vmatmul.mubr.msk.bf16.gmra.mrb[236].mxu1 %vm251_vm1, %v7477_v52  ;;  %5655 = vmatmul.mubr.msk.bf16.gmra.mrb[236].mxu0 %vm251_vm1, %v7462_v16 }
 0x2e7   :  { %5260 = vmatprep.mubr.msk.bf16.mxu1 %vm6565_vm2, %v6564_v1  ;;  %5658 = vmatprep.mubr.msk.bf16.mxu0 %vm6565_vm2, %v6564_v1 }
 0x2ee   :  { %5261 = vmatmul.mubr.msk.bf16.gmra.mrb[240].mxu1 %vm251_vm1, %v7494_v4  ;;  %5659 = vmatmul.mubr.msk.bf16.gmra.mrb[240].mxu0 %vm251_vm1, %v7477_v52  ;;  %v6506_v52 = vld [vmem:[%s8585_s0 + $0x20] sm:$0xff]  }
 0x2ef   :  { %5264 = vmatprep.mubr.msk.bf16.mxu1 %vm6565_vm2, %v6564_v1  ;;  %5662 = vmatprep.mubr.msk.bf16.mxu0 %vm6565_vm2, %v6564_v1 }
 0x2f6   :  { %5265 = vmatmul.mubr.msk.bf16.gmra.mrb[244].mxu1 %vm251_vm1, %v7509_v29  ;;  %5663 = vmatmul.mubr.msk.bf16.gmra.mrb[244].mxu0 %vm251_vm1, %v7494_v4  ;;  %v6507_v4 = vld [vmem:[%s8585_s0 + $0x28] sm:$0xff]  }
 0x2f7   :  { %5268 = vmatprep.mubr.msk.bf16.mxu1 %vm6565_vm2, %v6564_v1  ;;  %5666 = vmatprep.mubr.msk.bf16.mxu0 %vm6565_vm2, %v6564_v1 }
 0x2fe   :  { %5269 = vmatmul.mubr.msk.bf16.gmra.mrb[248].mxu1 %vm251_vm1, %v7526_v9  ;;  %5667 = vmatmul.mubr.msk.bf16.gmra.mrb[248].mxu0 %vm251_vm1, %v7509_v29  ;;  %v6509_v29 = vld [vmem:[%s8585_s0 + $0x38] sm:$0xff]  }
 0x2ff   :  { %5272 = vmatprep.mubr.msk.bf16.mxu1 %vm6565_vm2, %v6564_v1  ;;  %5670 = vmatprep.mubr.msk.bf16.mxu0 %vm6565_vm2, %v6564_v1 }
 0x306   :  { %5273 = vmatmul.mubr.msk.bf16.gmra.mrb[252].mxu1 %vm251_vm1, %v7541_v22  ;;  %5671 = vmatmul.mubr.msk.bf16.gmra.mrb[252].mxu0 %vm251_vm1, %v7526_v9  ;;  %v6510_v9 = vld [vmem:[%s8585_s0 + $0x40] sm:$0xff]  }
 0x307   :  { %5276 = vmatprep.mubr.msk.bf16.mxu1 %vm6565_vm2, %v6564_v1  ;;  %5674 = vmatprep.mubr.msk.bf16.mxu0 %vm6565_vm2, %v6564_v1 }
 0x30e   :  { %5277 = vmatmul.mubr.msk.bf16.gmra.mrb[0].mxu1 %vm251_vm1, %v7558_v25  ;;  %5675 = vmatmul.mubr.msk.bf16.gmra.mrb[0].mxu0 %vm251_vm1, %v7541_v22  ;;  %v6511_v22 = vld [vmem:[%s8585_s0 + $0x48] sm:$0xff]  }
 0x30f   :  { %5280 = vmatprep.mubr.msk.bf16.mxu1 %vm6565_vm2, %v6564_v1  ;;  %5678 = vmatprep.mubr.msk.bf16.mxu0 %vm6565_vm2, %v6564_v1 }
 0x316   :  { %5281 = vmatmul.mubr.msk.bf16.gmra.mrb[4].mxu1 %vm251_vm1, %v7573_v50  ;;  %5679 = vmatmul.mubr.msk.bf16.gmra.mrb[4].mxu0 %vm251_vm1, %v7558_v25  ;;  %v6512_v25 = vld [vmem:[%s8585_s0 + $0x50] sm:$0xff]  }
 0x317   :  { %5284 = vmatprep.mubr.msk.bf16.mxu1 %vm6565_vm2, %v6564_v1  ;;  %5682 = vmatprep.mubr.msk.bf16.mxu0 %vm6565_vm2, %v6564_v1 }
 0x31e   :  { %5285 = vmatmul.mubr.msk.bf16.gmra.mrb[8].mxu1 %vm251_vm1, %v7590_v30  ;;  %5683 = vmatmul.mubr.msk.bf16.gmra.mrb[8].mxu0 %vm251_vm1, %v7573_v50  ;;  %v6513_v50 = vld [vmem:[%s8585_s0 + $0x58] sm:$0xff]  }
 0x31f   :  { %5288 = vmatprep.mubr.msk.bf16.mxu1 %vm6565_vm2, %v6564_v1  ;;  %5686 = vmatprep.mubr.msk.bf16.mxu0 %vm6565_vm2, %v6564_v1 }
 0x326   :  { %5289 = vmatmul.mubr.msk.bf16.gmra.mrb[12].mxu1 %vm251_vm1, %v7605_v54  ;;  %5687 = vmatmul.mubr.msk.bf16.gmra.mrb[12].mxu0 %vm251_vm1, %v7590_v30  ;;  %v6514_v30 = vld [vmem:[%s8585_s0 + $0x60] sm:$0xff]  }
 0x327   :  { %5292 = vmatprep.mubr.msk.bf16.mxu1 %vm6565_vm2, %v6564_v1  ;;  %5690 = vmatprep.mubr.msk.bf16.mxu0 %vm6565_vm2, %v6564_v1 }
 0x32e   :  { %5293 = vmatmul.mubr.msk.bf16.gmra.mrb[16].mxu1 %vm251_vm1, %v7622_v38  ;;  %5691 = vmatmul.mubr.msk.bf16.gmra.mrb[16].mxu0 %vm251_vm1, %v7605_v54  ;;  %v6515_v54 = vld [vmem:[%s8585_s0 + $0x68] sm:$0xff]  }
 0x32f   :  { %5296 = vmatprep.mubr.msk.bf16.mxu1 %vm6565_vm2, %v6564_v1  ;;  %5694 = vmatprep.mubr.msk.bf16.mxu0 %vm6565_vm2, %v6564_v1 }
 0x336   :  { %5297 = vmatmul.mubr.msk.bf16.gmra.mrb[20].mxu1 %vm251_vm1, %v7637_v49  ;;  %5695 = vmatmul.mubr.msk.bf16.gmra.mrb[20].mxu0 %vm251_vm1, %v7622_v38  ;;  %v6517_v38 = vld [vmem:[%s8585_s0 + $0x78] sm:$0xff]  }
 0x337   :  { %5300 = vmatprep.mubr.msk.bf16.mxu1 %vm6565_vm2, %v6564_v1  ;;  %5698 = vmatprep.mubr.msk.bf16.mxu0 %vm6565_vm2, %v6564_v1 }
 0x33e   :  { %5301 = vmatmul.mubr.msk.bf16.gmra.mrb[24].mxu1 %vm251_vm1, %v7654_v41  ;;  %5699 = vmatmul.mubr.msk.bf16.gmra.mrb[24].mxu0 %vm251_vm1, %v7637_v49  ;;  %v6518_v49 = vld [vmem:[%s8585_s0 + $0x80] sm:$0xff]  }
 0x33f   :  { %5304 = vmatprep.mubr.msk.bf16.mxu1 %vm6565_vm2, %v6564_v1  ;;  %5702 = vmatprep.mubr.msk.bf16.mxu0 %vm6565_vm2, %v6564_v1 }
 0x346   :  { %5305 = vmatmul.mubr.msk.bf16.gmra.mrb[28].mxu1 %vm251_vm1, %v7669_v63  ;;  %5703 = vmatmul.mubr.msk.bf16.gmra.mrb[28].mxu0 %vm251_vm1, %v7654_v41  ;;  %v6516_v41 = vld [vmem:[%s8585_s0 + $0x70] sm:$0xff]  }
 0x347   :  { %5308 = vmatprep.mubr.msk.bf16.mxu1 %vm6565_vm2, %v6564_v1  ;;  %5706 = vmatprep.mubr.msk.bf16.mxu0 %vm6565_vm2, %v6564_v1 }
 0x34e   :  { %5309 = vmatmul.mubr.msk.bf16.gmra.mrb[32].mxu1 %vm251_vm1, %v7686_v6  ;;  %5707 = vmatmul.mubr.msk.bf16.gmra.mrb[32].mxu0 %vm251_vm1, %v7669_v63  ;;  %v6520_v63 = vld [vmem:[%s8585_s0 + $0x90] sm:$0xff]  }
 0x34f   :  { %5312 = vmatprep.mubr.msk.bf16.mxu1 %vm6565_vm2, %v6564_v1  ;;  %5710 = vmatprep.mubr.msk.bf16.mxu0 %vm6565_vm2, %v6564_v1 }
 0x356   :  { %5313 = vmatmul.mubr.msk.bf16.gmra.mrb[36].mxu1 %vm251_vm1, %v7701_v5  ;;  %5711 = vmatmul.mubr.msk.bf16.gmra.mrb[36].mxu0 %vm251_vm1, %v7686_v6  ;;  %v6519_v6 = vld [vmem:[%s8585_s0 + $0x88] sm:$0xff]  }
 0x357   :  { %5316 = vmatprep.mubr.msk.bf16.mxu1 %vm6565_vm2, %v6564_v1  ;;  %5714 = vmatprep.mubr.msk.bf16.mxu0 %vm6565_vm2, %v6564_v1 }
 0x35e   :  { %5317 = vmatmul.mubr.msk.bf16.gmra.mrb[40].mxu1 %vm251_vm1, %v7718_v48  ;;  %5715 = vmatmul.mubr.msk.bf16.gmra.mrb[40].mxu0 %vm251_vm1, %v7701_v5  ;;  %v6522_v5 = vld [vmem:[%s8585_s0 + $0xa0] sm:$0xff]  }
 0x35f   :  { %5320 = vmatprep.mubr.msk.bf16.mxu1 %vm6565_vm2, %v6564_v1  ;;  %5718 = vmatprep.mubr.msk.bf16.mxu0 %vm6565_vm2, %v6564_v1 }
 0x361   :  { %v1812_v8 = vpop.f32.mrb[68].mxu1 }
 0x362   :  { %v5212_v32 = vpop.f32.mrb[69].mxu1  ;;  %v6532_v8 = vld [vmem:[%s8585_s0 + $0xf0] sm:$0xff]  }
 0x363   :  { %v1814_v28 = vpop.f32.mrb[70].mxu1 }
 0x364   :  { %v5213_v45 = vpop.f32.mrb[71].mxu1 }
 0x366   :  { %5321 = vmatmul.mubr.msk.bf16.gmra.mrb[44].mxu1 %vm251_vm1, %v7733_v2  ;;  %5719 = vmatmul.mubr.msk.bf16.gmra.mrb[44].mxu0 %vm251_vm1, %v7718_v48  ;;  %v6521_v48 = vld [vmem:[%s8585_s0 + $0x98] sm:$0xff]  }
 0x367   :  { %5324 = vmatprep.mubr.msk.bf16.mxu1 %vm6565_vm2, %v6564_v1  ;;  %5722 = vmatprep.mubr.msk.bf16.mxu0 %vm6565_vm2, %v6564_v1 }
 0x369   :  { %v2905_v19 = vpop.f32.mrb[72].mxu0 }
 0x36a   :  { %v5614_v23 = vpop.f32.mrb[73].mxu0 }
 0x36b   :  { %v2907_v14 = vpop.f32.mrb[74].mxu0 }
 0x36c   :  { %v5615_v16 = vpop.f32.mrb[75].mxu0 }
 0x36e   :  { %5325 = vmatmul.mubr.msk.bf16.gmra.mrb[48].mxu1 %vm251_vm1, %v7750_v27  ;;  %5723 = vmatmul.mubr.msk.bf16.gmra.mrb[48].mxu0 %vm251_vm1, %v7733_v2  ;;  %v6524_v2 = vld [vmem:[%s8585_s0 + $0xb0] sm:$0xff]  }
 0x36f   :  { %5328 = vmatprep.mubr.msk.bf16.mxu1 %vm6565_vm2, %v6564_v1  ;;  %5726 = vmatprep.mubr.msk.bf16.mxu0 %vm6565_vm2, %v6564_v1 }
 0x376   :  { %5329 = vmatmul.mubr.msk.bf16.gmra.mrb[52].mxu1 %vm251_vm1, %v7763_v13  ;;  %5727 = vmatmul.mubr.msk.bf16.gmra.mrb[52].mxu0 %vm251_vm1, %v7750_v27  ;;  %v6523_v27 = vld [vmem:[%s8585_s0 + $0xa8] sm:$0xff]  }
 0x377   :  { %5332 = vmatprep.mubr.msk.bf16.mxu1 %vm6565_vm2, %v6564_v1  ;;  %5730 = vmatprep.mubr.msk.bf16.mxu0 %vm6565_vm2, %v6564_v1 }
 0x37e   :  { %5333 = vmatmul.mubr.msk.bf16.gmra.mrb[56].mxu1 %vm251_vm1, %v7776_v11  ;;  %5731 = vmatmul.mubr.msk.bf16.gmra.mrb[56].mxu0 %vm251_vm1, %v7763_v13  ;;  %v6525_v13 = vld [vmem:[%s8585_s0 + $0xb8] sm:$0xff]  }
 0x37f   :  { %5336 = vmatprep.mubr.msk.bf16.mxu1 %vm6565_vm2, %v6564_v1  ;;  %5734 = vmatprep.mubr.msk.bf16.mxu0 %vm6565_vm2, %v6564_v1 }
 0x386   :  { %5337 = vmatmul.mubr.msk.bf16.gmra.mrb[60].mxu1 %vm251_vm1, %v7789_v61  ;;  %5735 = vmatmul.mubr.msk.bf16.gmra.mrb[60].mxu0 %vm251_vm1, %v7776_v11  ;;  %v6526_v11 = vld [vmem:[%s8585_s0 + $0xc0] sm:$0xff]  }
 0x387   :  { %5340 = vmatprep.mubr.msk.bf16.mxu1 %vm6565_vm2, %v6564_v1  ;;  %5738 = vmatprep.mubr.msk.bf16.mxu0 %vm6565_vm2, %v6564_v1 }
 0x38e   :  { %5341 = vmatmul.mubr.msk.bf16.gmra.mrb[64].mxu1 %vm251_vm1, %v7802_v47  ;;  %5739 = vmatmul.mubr.msk.bf16.gmra.mrb[64].mxu0 %vm251_vm1, %v7789_v61  ;;  %v6527_v61 = vld [vmem:[%s8585_s0 + $0xc8] sm:$0xff]  }
 0x38f   :  { %5344 = vmatprep.mubr.msk.bf16.mxu1 %vm6565_vm2, %v6564_v1  ;;  %5742 = vmatprep.mubr.msk.bf16.mxu0 %vm6565_vm2, %v6564_v1 }
 0x396   :  { %5345 = vmatmul.mubr.msk.bf16.gmra.mrb[72].mxu1 %vm251_vm1, %v7318_v56  ;;  %5743 = vmatmul.mubr.msk.bf16.gmra.mrb[68].mxu0 %vm251_vm1, %v7802_v47  ;;  %v6528_v47 = vld [vmem:[%s8585_s0 + $0xd0] sm:$0xff]  }
 0x397   :  { %5350 = vmatprep.mubr.msk.bf16.mxu1 %vm6565_vm2, %v6564_v1  ;;  %5746 = vmatprep.mubr.msk.bf16.mxu0 %vm6565_vm2, %v6564_v1 }
 0x39e   :  { %5351 = vmatmul.mubr.msk.bf16.vlgmr.msra.gmra.mrb[196].mxu1 %vm251_vm1, %v6506_v52  ;;  %5747 = vmatmul.mubr.msk.bf16.gmra.mrb[76].mxu0 %vm251_vm1, %v7318_v56  ;;  %v6508_v56 = vld [vmem:[%s8585_s0 + $0x30] sm:$0xff]  }
 0x39f   :  { %5354 = vmatprep.mubr.msk.bf16.mxu1 %vm6565_vm2, %v6564_v1  ;;  %5752 = vmatprep.mubr.msk.bf16.mxu0 %vm6565_vm2, %v6564_v1 }
 0x3a6   :  { %5355 = vmatmul.mubr.msk.bf16.gmra.mrb[200].mxu1 %vm251_vm1, %v6507_v4  ;;  %5753 = vmatmul.mubr.msk.bf16.vlgmr.msra.gmra.mrb[200].mxu0 %vm251_vm1, %v6506_v52 }
 0x3a7   :  { %5358 = vmatprep.mubr.msk.bf16.mxu1 %vm6565_vm2, %v6564_v1  ;;  %5756 = vmatprep.mubr.msk.bf16.mxu0 %vm6565_vm2, %v6564_v1 }
 0x3ae   :  { %5359 = vmatmul.mubr.msk.bf16.gmra.mrb[204].mxu1 %vm251_vm1, %v6508_v56  ;;  %5757 = vmatmul.mubr.msk.bf16.gmra.mrb[204].mxu0 %vm251_vm1, %v6507_v4 }
 0x3af   :  { %5362 = vmatprep.mubr.msk.bf16.mxu1 %vm6565_vm2, %v6564_v1  ;;  %5760 = vmatprep.mubr.msk.bf16.mxu0 %vm6565_vm2, %v6564_v1 }
 0x3b6   :  { %5363 = vmatmul.mubr.msk.bf16.gmra.mrb[208].mxu1 %vm251_vm1, %v6509_v29  ;;  %5761 = vmatmul.mubr.msk.bf16.gmra.mrb[208].mxu0 %vm251_vm1, %v6508_v56 }
 0x3b7   :  { %5366 = vmatprep.mubr.msk.bf16.mxu1 %vm6565_vm2, %v6564_v1  ;;  %5764 = vmatprep.mubr.msk.bf16.mxu0 %vm6565_vm2, %v6564_v1 }
 0x3be   :  { %5367 = vmatmul.mubr.msk.bf16.gmra.mrb[212].mxu1 %vm251_vm1, %v6510_v9  ;;  %5765 = vmatmul.mubr.msk.bf16.gmra.mrb[212].mxu0 %vm251_vm1, %v6509_v29 }
 0x3bf   :  { %5370 = vmatprep.mubr.msk.bf16.mxu1 %vm6565_vm2, %v6564_v1  ;;  %5768 = vmatprep.mubr.msk.bf16.mxu0 %vm6565_vm2, %v6564_v1 }
 0x3c6   :  { %5371 = vmatmul.mubr.msk.bf16.gmra.mrb[216].mxu1 %vm251_vm1, %v6511_v22  ;;  %5769 = vmatmul.mubr.msk.bf16.gmra.mrb[216].mxu0 %vm251_vm1, %v6510_v9  ;;  %v6533_v9 = vld [vmem:[%s8585_s0 + $0xf8] sm:$0xff]  }
 0x3c7   :  { %5374 = vmatprep.mubr.msk.bf16.mxu1 %vm6565_vm2, %v6564_v1  ;;  %5772 = vmatprep.mubr.msk.bf16.mxu0 %vm6565_vm2, %v6564_v1 }
 0x3ce   :  { %5375 = vmatmul.mubr.msk.bf16.gmra.mrb[220].mxu1 %vm251_vm1, %v6512_v25  ;;  %5773 = vmatmul.mubr.msk.bf16.gmra.mrb[220].mxu0 %vm251_vm1, %v6511_v22 }
 0x3cf   :  { %5378 = vmatprep.mubr.msk.bf16.mxu1 %vm6565_vm2, %v6564_v1  ;;  %5776 = vmatprep.mubr.msk.bf16.mxu0 %vm6565_vm2, %v6564_v1 }
 0x3d6   :  { %5379 = vmatmul.mubr.msk.bf16.gmra.mrb[224].mxu1 %vm251_vm1, %v6513_v50  ;;  %5777 = vmatmul.mubr.msk.bf16.gmra.mrb[224].mxu0 %vm251_vm1, %v6512_v25 }
 0x3d7   :  { %5382 = vmatprep.mubr.msk.bf16.mxu1 %vm6565_vm2, %v6564_v1  ;;  %5780 = vmatprep.mubr.msk.bf16.mxu0 %vm6565_vm2, %v6564_v1 }
 0x3de   :  { %5383 = vmatmul.mubr.msk.bf16.gmra.mrb[228].mxu1 %vm251_vm1, %v6514_v30  ;;  %5781 = vmatmul.mubr.msk.bf16.gmra.mrb[228].mxu0 %vm251_vm1, %v6513_v50 }
 0x3df   :  { %5386 = vmatprep.mubr.msk.bf16.mxu1 %vm6565_vm2, %v6564_v1  ;;  %5784 = vmatprep.mubr.msk.bf16.mxu0 %vm6565_vm2, %v6564_v1 }
 0x3e6   :  { %5387 = vmatmul.mubr.msk.bf16.gmra.mrb[232].mxu1 %vm251_vm1, %v6515_v54  ;;  %5785 = vmatmul.mubr.msk.bf16.gmra.mrb[232].mxu0 %vm251_vm1, %v6514_v30 }
 0x3e7   :  { %5390 = vmatprep.mubr.msk.bf16.mxu1 %vm6565_vm2, %v6564_v1  ;;  %5788 = vmatprep.mubr.msk.bf16.mxu0 %vm6565_vm2, %v6564_v1 }
 0x3ee   :  { %5391 = vmatmul.mubr.msk.bf16.gmra.mrb[236].mxu1 %vm251_vm1, %v6516_v41  ;;  %5789 = vmatmul.mubr.msk.bf16.gmra.mrb[236].mxu0 %vm251_vm1, %v6515_v54 }
 0x3ef   :  { %5394 = vmatprep.mubr.msk.bf16.mxu1 %vm6565_vm2, %v6564_v1  ;;  %5792 = vmatprep.mubr.msk.bf16.mxu0 %vm6565_vm2, %v6564_v1 }
 0x3f6   :  { %5395 = vmatmul.mubr.msk.bf16.gmra.mrb[240].mxu1 %vm251_vm1, %v6517_v38  ;;  %5793 = vmatmul.mubr.msk.bf16.gmra.mrb[240].mxu0 %vm251_vm1, %v6516_v41 }
 0x3f7   :  { %5398 = vmatprep.mubr.msk.bf16.mxu1 %vm6565_vm2, %v6564_v1  ;;  %5796 = vmatprep.mubr.msk.bf16.mxu0 %vm6565_vm2, %v6564_v1 }
 0x3fe   :  { %5399 = vmatmul.mubr.msk.bf16.gmra.mrb[244].mxu1 %vm251_vm1, %v6518_v49  ;;  %5797 = vmatmul.mubr.msk.bf16.gmra.mrb[244].mxu0 %vm251_vm1, %v6517_v38 }
 0x3ff   :  { %5402 = vmatprep.mubr.msk.bf16.mxu1 %vm6565_vm2, %v6564_v1  ;;  %5800 = vmatprep.mubr.msk.bf16.mxu0 %vm6565_vm2, %v6564_v1 }
 0x406   :  { %5403 = vmatmul.mubr.msk.bf16.gmra.mrb[248].mxu1 %vm251_vm1, %v6519_v6  ;;  %5801 = vmatmul.mubr.msk.bf16.gmra.mrb[248].mxu0 %vm251_vm1, %v6518_v49 }
 0x407   :  { %5406 = vmatprep.mubr.msk.bf16.mxu1 %vm6565_vm2, %v6564_v1  ;;  %5804 = vmatprep.mubr.msk.bf16.mxu0 %vm6565_vm2, %v6564_v1 }
 0x40e   :  { %5407 = vmatmul.mubr.msk.bf16.gmra.mrb[252].mxu1 %vm251_vm1, %v6520_v63  ;;  %5805 = vmatmul.mubr.msk.bf16.gmra.mrb[252].mxu0 %vm251_vm1, %v6519_v6 }
 0x40f   :  { %5410 = vmatprep.mubr.msk.bf16.mxu1 %vm6565_vm2, %v6564_v1  ;;  %5808 = vmatprep.mubr.msk.bf16.mxu0 %vm6565_vm2, %v6564_v1 }
 0x416   :  { %5411 = vmatmul.mubr.msk.bf16.gmra.mrb[0].mxu1 %vm251_vm1, %v6521_v48  ;;  %5809 = vmatmul.mubr.msk.bf16.gmra.mrb[0].mxu0 %vm251_vm1, %v6520_v63 }
 0x417   :  { %5414 = vmatprep.mubr.msk.bf16.mxu1 %vm6565_vm2, %v6564_v1  ;;  %5812 = vmatprep.mubr.msk.bf16.mxu0 %vm6565_vm2, %v6564_v1 }
 0x41e   :  { %5415 = vmatmul.mubr.msk.bf16.gmra.mrb[4].mxu1 %vm251_vm1, %v6522_v5  ;;  %5813 = vmatmul.mubr.msk.bf16.gmra.mrb[4].mxu0 %vm251_vm1, %v6521_v48 }
 0x41f   :  { %5418 = vmatprep.mubr.msk.bf16.mxu1 %vm6565_vm2, %v6564_v1  ;;  %5816 = vmatprep.mubr.msk.bf16.mxu0 %vm6565_vm2, %v6564_v1 }
 0x426   :  { %5419 = vmatmul.mubr.msk.bf16.gmra.mrb[8].mxu1 %vm251_vm1, %v6523_v27  ;;  %5817 = vmatmul.mubr.msk.bf16.gmra.mrb[8].mxu0 %vm251_vm1, %v6522_v5 }
 0x427   :  { %5422 = vmatprep.mubr.msk.bf16.mxu1 %vm6565_vm2, %v6564_v1  ;;  %5820 = vmatprep.mubr.msk.bf16.mxu0 %vm6565_vm2, %v6564_v1 }
 0x42e   :  { %5423 = vmatmul.mubr.msk.bf16.gmra.mrb[12].mxu1 %vm251_vm1, %v6524_v2  ;;  %5821 = vmatmul.mubr.msk.bf16.gmra.mrb[12].mxu0 %vm251_vm1, %v6523_v27 }
 0x42f   :  { %5426 = vmatprep.mubr.msk.bf16.mxu1 %vm6565_vm2, %v6564_v1  ;;  %5824 = vmatprep.mubr.msk.bf16.mxu0 %vm6565_vm2, %v6564_v1 }
 0x436   :  { %5427 = vmatmul.mubr.msk.bf16.gmra.mrb[16].mxu1 %vm251_vm1, %v6525_v13  ;;  %5825 = vmatmul.mubr.msk.bf16.gmra.mrb[16].mxu0 %vm251_vm1, %v6524_v2 }
 0x437   :  { %5430 = vmatprep.mubr.msk.bf16.mxu1 %vm6565_vm2, %v6564_v1  ;;  %5828 = vmatprep.mubr.msk.bf16.mxu0 %vm6565_vm2, %v6564_v1 }
 0x43e   :  { %5431 = vmatmul.mubr.msk.bf16.gmra.mrb[20].mxu1 %vm251_vm1, %v6526_v11  ;;  %5829 = vmatmul.mubr.msk.bf16.gmra.mrb[20].mxu0 %vm251_vm1, %v6525_v13  ;;  %v8373_v13 = vld [vmem:[%s8587_s2] ss:$0 sm:$0xff] }
 0x43f   :  { %5434 = vmatprep.mubr.msk.bf16.mxu1 %vm6565_vm2, %v6564_v1  ;;  %5832 = vmatprep.mubr.msk.bf16.mxu0 %vm6565_vm2, %v6564_v1 }
 0x446   :  { %5435 = vmatmul.mubr.msk.bf16.gmra.mrb[24].mxu1 %vm251_vm1, %v6527_v61  ;;  %5833 = vmatmul.mubr.msk.bf16.gmra.mrb[24].mxu0 %vm251_vm1, %v6526_v11  ;;  %v6534_v11 = vld [vmem:[%s8585_s0 + $0x100] sm:$0xff]  }
 0x447   :  { %5438 = vmatprep.mubr.msk.bf16.mxu1 %vm6565_vm2, %v6564_v1  ;;  %5836 = vmatprep.mubr.msk.bf16.mxu0 %vm6565_vm2, %v6564_v1 }
 0x44e   :  { %5439 = vmatmul.mubr.msk.bf16.gmra.mrb[28].mxu1 %vm251_vm1, %v6528_v47  ;;  %5837 = vmatmul.mubr.msk.bf16.gmra.mrb[28].mxu0 %vm251_vm1, %v6527_v61 }
 0x44f   :  { %5442 = vmatprep.mubr.msk.bf16.mxu1 %vm6565_vm2, %v6564_v1  ;;  %5840 = vmatprep.mubr.msk.bf16.mxu0 %vm6565_vm2, %v6564_v1 }
 0x456   :  { %5443 = vmatmul.mubr.msk.bf16.gmra.mrb[32].mxu1 %vm251_vm1, %v6529_v3  ;;  %5841 = vmatmul.mubr.msk.bf16.gmra.mrb[32].mxu0 %vm251_vm1, %v6528_v47 }
 0x457   :  { %5446 = vmatprep.mubr.msk.bf16.mxu1 %vm6565_vm2, %v6564_v1  ;;  %5844 = vmatprep.mubr.msk.bf16.mxu0 %vm6565_vm2, %v6564_v1 }
 0x45e   :  { %5447 = vmatmul.mubr.msk.bf16.gmra.mrb[36].mxu1 %vm251_vm1, %v6530_v36  ;;  %5845 = vmatmul.mubr.msk.bf16.gmra.mrb[36].mxu0 %vm251_vm1, %v6529_v3 }
 0x45f   :  { %5450 = vmatprep.mubr.msk.bf16.mxu1 %vm6565_vm2, %v6564_v1  ;;  %5848 = vmatprep.mubr.msk.bf16.mxu0 %vm6565_vm2, %v6564_v1 }
 0x466   :  { %5451 = vmatmul.mubr.msk.bf16.gmra.mrb[40].mxu1 %vm251_vm1, %v6531_v44  ;;  %5849 = vmatmul.mubr.msk.bf16.gmra.mrb[40].mxu0 %vm251_vm1, %v6530_v36 }
 0x467   :  { %5454 = vmatprep.mubr.msk.bf16.mxu1 %vm6565_vm2, %v6564_v1  ;;  %5852 = vmatprep.mubr.msk.bf16.mxu0 %vm6565_vm2, %v6564_v1 }
 0x469   :  { %v2094_v40 = vpop.f32.mrb[72].mxu1 }
 0x46a   :  { %v5346_v46 = vpop.f32.mrb[73].mxu1 }
 0x46b   :  { %v2096_v0 = vpop.f32.mrb[74].mxu1 }
 0x46c   :  { %v5347_v24 = vpop.f32.mrb[75].mxu1 }
 0x46e   :  { %5455 = vmatmul.mubr.msk.bf16.gmra.mrb[44].mxu1 %vm251_vm1, %v6532_v8  ;;  %5853 = vmatmul.mubr.msk.bf16.gmra.mrb[44].mxu0 %vm251_vm1, %v6531_v44 }
 0x46f   :  { %5458 = vmatprep.mubr.msk.bf16.mxu1 %vm6565_vm2, %v6564_v1  ;;  %5856 = vmatprep.mubr.msk.bf16.mxu0 %vm6565_vm2, %v6564_v1 }
 0x471   :  { %v2138_v32 = vpop.f32.mrb[196].mxu1  ;;  %v3187_v28 = vpop.f32.mrb[76].mxu0 }
 0x472   :  { %v5352_v45 = vpop.f32.mrb[197].mxu1  ;;  %v5748_v19 = vpop.f32.mrb[77].mxu0  ;;  %v2480_v16 = vrot.slane %v2138_v32, 1 }
 0x473   :  { %v2141_v23 = vpop.f32.mrb[198].mxu1  ;;  %v3189_v14 = vpop.f32.mrb[78].mxu0 }
 0x474   :  { %v2481_v52 = vrot.slane %v2141_v23, 1  ;;  %v5353_v4 = vpop.f32.mrb[199].mxu1  ;;  %v5749_v56 = vpop.f32.mrb[79].mxu0 }
 0x476   :  { %v2482_v29 = vsel %vm2479_vm3, %v2480_v16, %v2481_v52  ;;  %5459 = vmatmul.mubr.msk.bf16.gmra.mrb[48].mxu1 %vm251_vm1, %v6533_v9  ;;  %5857 = vmatmul.mubr.msk.bf16.gmra.mrb[48].mxu0 %vm251_vm1, %v6532_v8  ;;  %v6535_v16 = vld [vmem:[%s8585_s0 + $0x108] sm:$0xff]  }
 0x477   :  { %v2592_v22 = vadd.f32 %v2482_v29, %v7265_v18  ;;  %5462 = vmatprep.mubr.msk.bf16.mxu1 %vm6565_vm2, %v6564_v1  ;;  %5860 = vmatprep.mubr.msk.bf16.mxu0 %vm6565_vm2, %v6564_v1 }
 0x479   :  { %v2146_v25 = vpop.f32.mrb[200].mxu1  ;;  %v3231_v50 = vpop.f32.mrb[200].mxu0 }
 0x47a   :  { %v2483_v30 = vrot.slane %v2146_v25, 1  ;;  %v5356_v54 = vpop.f32.mrb[201].mxu1  ;;  %v5754_v41 = vpop.f32.mrb[201].mxu0  ;;  %v3573_v63 = vrot.slane %v3231_v50, 2 }
 0x47b   :  { %v2149_v38 = vpop.f32.mrb[202].mxu1  ;;  %v3234_v49 = vpop.f32.mrb[202].mxu0 }
 0x47c   :  { %v2484_v6 = vsel %vm2479_vm3, %v2481_v52, %v2483_v30  ;;  %v3574_v48 = vrot.slane %v3234_v49, 2  ;;  %v5357_v5 = vpop.f32.mrb[203].mxu1  ;;  %v5755_v18 = vpop.f32.mrb[203].mxu0 }
 0x47d   :  { %v2593_v27 = vadd.f32 %v2484_v6, %v7267_v12  ;;  %v6536_v5 = vld [vmem:[%s8585_s0 + $0x110] sm:$0xff]  }
 0x47e   :  { %v3575_v2 = vsel %vm3572_vm4, %v3573_v63, %v3574_v48  ;;  %5463 = vmatmul.mubr.msk.bf16.gmra.mrb[52].mxu1 %vm251_vm1, %v6534_v11  ;;  %5861 = vmatmul.mubr.msk.bf16.gmra.mrb[52].mxu0 %vm251_vm1, %v6533_v9 }
 0x47f   :  { %v3685_v61 = vadd.f32 %v3575_v2, %v2592_v22  ;;  %5466 = vmatprep.mubr.msk.bf16.mxu1 %vm6565_vm2, %v6564_v1  ;;  %5864 = vmatprep.mubr.msk.bf16.mxu0 %vm6565_vm2, %v6564_v1 }
 0x481   :  { %v3724_v12 = vadd.f32 %v8373_v13, %v3685_v61  ;;  %v2153_v47 = vpop.f32.mrb[204].mxu1  ;;  %v3239_v3 = vpop.f32.mrb[204].mxu0 }
 0x482   :  { %v3576_v36 = vrot.slane %v3239_v3, 2  ;;  %v5360_v44 = vpop.f32.mrb[205].mxu1  ;;  %v5758_v40 = vpop.f32.mrb[205].mxu0  ;;  %v2485_v8 = vrot.slane %v2153_v47, 1 }
 0x483   :  { %v4340_v46 = vpack.c.bf16 %v3724_v12, %v3724_v12  ;;  %v2156_v0 = vpop.f32.mrb[206].mxu1  ;;  %v3242_v24 = vpop.f32.mrb[206].mxu0 }
 0x484   :  { %v3577_v32 = vsel %vm3572_vm4, %v3574_v48, %v3576_v36  ;;  %v2486_v28 = vrot.slane %v2156_v0, 1  ;;  %v5361_v45 = vpop.f32.mrb[207].mxu1  ;;  %v5759_v19 = vpop.f32.mrb[207].mxu0 }
 0x485   :  { %3885 = vst.msk [vmem:[#allocation2] sm:$0xf] %vm3884_vm5, %v4340_v46  ;;  %v3686_v23 = vadd.f32 %v3577_v32, %v2593_v27 }
 0x486   :  { %v2487_v14 = vsel %vm2479_vm3, %v2485_v8, %v2486_v28  ;;  %5467 = vmatmul.mubr.msk.bf16.gmra.mrb[56].mxu1 %vm251_vm1, %v6535_v16  ;;  %5865 = vmatmul.mubr.msk.bf16.gmra.mrb[56].mxu0 %vm251_vm1, %v6534_v11 }
 0x487   :  { %v3725_v52 = vadd.f32 %v8373_v13, %v3686_v23  ;;  %v2594_v4 = vadd.f32 %v2487_v14, %v7288_v35  ;;  %5470 = vmatprep.mubr.msk.bf16.mxu1 %vm6565_vm2, %v6564_v1  ;;  %5868 = vmatprep.mubr.msk.bf16.mxu0 %vm6565_vm2, %v6564_v1 }
 0x489   :  { %v4341_v56 = vpack.c.bf16 %v3725_v52, %v3725_v52  ;;  %v2161_v29 = vpop.f32.mrb[208].mxu1  ;;  %v3246_v9 = vpop.f32.mrb[208].mxu0 }
 0x48a   :  { %v2488_v22 = vrot.slane %v2161_v29, 1  ;;  %v5364_v25 = vpop.f32.mrb[209].mxu1  ;;  %v5762_v50 = vpop.f32.mrb[209].mxu0  ;;  %v3578_v38 = vrot.slane %v3246_v9, 2 }
 0x48b   :  { %3886 = vst.msk [vmem:[#allocation2 + $0x4] sm:$0xf] %vm3884_vm5, %v4341_v56  ;;  %v2164_v30 = vpop.f32.mrb[210].mxu1  ;;  %v3249_v54 = vpop.f32.mrb[210].mxu0 }
 0x48c   :  { %v2489_v41 = vsel %vm2479_vm3, %v2486_v28, %v2488_v22  ;;  %v3579_v35 = vrot.slane %v3249_v54, 2  ;;  %v5365_v49 = vpop.f32.mrb[211].mxu1  ;;  %v5763_v6 = vpop.f32.mrb[211].mxu0  ;;  %v6537_v28 = vld [vmem:[%s8585_s0 + $0x118] sm:$0xff]  }
 0x48d   :  { %v2595_v63 = vadd.f32 %v2489_v41, %v7293_v10 }
 0x48e   :  { %v3580_v48 = vsel %vm3572_vm4, %v3578_v38, %v3579_v35  ;;  %5471 = vmatmul.mubr.msk.bf16.gmra.mrb[60].mxu1 %vm251_vm1, %v6536_v5  ;;  %5869 = vmatmul.mubr.msk.bf16.gmra.mrb[60].mxu0 %vm251_vm1, %v6535_v16  ;;  %v6538_v38 = vld [vmem:[%s8585_s0 + $0x120] ss:$0 sps:$4 sm:$0xff]  }
 0x48f   :  { %v3687_v18 = vadd.f32 %v3580_v48, %v2594_v4  ;;  %5474 = vmatprep.mubr.msk.bf16.mxu1 %vm6565_vm2, %v6564_v1  ;;  %5872 = vmatprep.mubr.msk.bf16.mxu0 %vm6565_vm2, %v6564_v1 }
 0x491   :  { %v3726_v27 = vadd.f32 %v8373_v13, %v3687_v18  ;;  %v2168_v10 = vpop.f32.mrb[212].mxu1  ;;  %v3254_v2 = vpop.f32.mrb[212].mxu0 }
 0x492   :  { %v3581_v11 = vrot.slane %v3254_v2, 2  ;;  %v5368_v61 = vpop.f32.mrb[213].mxu1  ;;  %v5766_v12 = vpop.f32.mrb[213].mxu0  ;;  %v2490_v44 = vrot.slane %v2168_v10, 1 }
 0x493   :  { %v4342_v47 = vpack.c.bf16 %v3726_v27, %v3726_v27  ;;  %v2171_v3 = vpop.f32.mrb[214].mxu1  ;;  %v3257_v36 = vpop.f32.mrb[214].mxu0 }
 0x494   :  { %v3582_v40 = vsel %vm3572_vm4, %v3579_v35, %v3581_v11  ;;  %v2491_v46 = vrot.slane %v2171_v3, 1  ;;  %v5369_v0 = vpop.f32.mrb[215].mxu1  ;;  %v5767_v24 = vpop.f32.mrb[215].mxu0 }
 0x495   :  { %3887 = vst.msk [vmem:[#allocation2 + $0x8] sm:$0xf] %vm3884_vm5, %v4342_v47  ;;  %v3688_v8 = vadd.f32 %v3582_v40, %v2595_v63 }
 0x496   :  { %v2492_v32 = vsel %vm2479_vm3, %v2490_v44, %v2491_v46  ;;  %5475 = vmatmul.mubr.msk.bf16.gmra.mrb[64].mxu1 %vm251_vm1, %v6537_v28  ;;  %5873 = vmatmul.mubr.msk.bf16.gmra.mrb[64].mxu0 %vm251_vm1, %v6536_v5 }
 0x497   :  { %v3727_v45 = vadd.f32 %v8373_v13, %v3688_v8  ;;  %v2596_v19 = vadd.f32 %v2492_v32, %v7314_v55  ;;  %5876 = vmatprep.mubr.msk.bf16.mxu0 %vm6565_vm2, %v6564_v1  ;;  %5478 = vmatprep.mubr.msk.bf16.mxu1 %vm6565_vm2, %v6564_v1 }
 0x499   :  { %v4343_v23 = vpack.c.bf16 %v3727_v45, %v3727_v45  ;;  %v2176_v14 = vpop.f32.mrb[216].mxu1  ;;  %v3261_v16 = vpop.f32.mrb[216].mxu0 }
 0x49a   :  { %v2493_v52 = vrot.slane %v2176_v14, 1  ;;  %v5372_v4 = vpop.f32.mrb[217].mxu1  ;;  %v5770_v56 = vpop.f32.mrb[217].mxu0  ;;  %v3583_v25 = vrot.slane %v3261_v16, 2 }
 0x49b   :  { %3888 = vst.msk [vmem:[#allocation2 + $0xc] sm:$0xf] %vm3884_vm5, %v4343_v23  ;;  %v2179_v29 = vpop.f32.mrb[218].mxu1  ;;  %v3264_v9 = vpop.f32.mrb[218].mxu0 }
 0x49c   :  { %v2494_v22 = vsel %vm2479_vm3, %v2491_v46, %v2493_v52  ;;  %v3584_v55 = vrot.slane %v3264_v9, 2  ;;  %v5373_v50 = vpop.f32.mrb[219].mxu1  ;;  %v5771_v30 = vpop.f32.mrb[219].mxu0 }
 0x49d   :  { %v2597_v54 = vadd.f32 %v2494_v22, %v7323_v62 }
 0x49e   :  { %v3585_v41 = vsel %vm3572_vm4, %v3583_v25, %v3584_v55  ;;  %5877 = vmatmul.mubr.msk.bf16.gmra.mrb[68].mxu0 %vm251_vm1, %v6537_v28  ;;  %5479 = vmatmul.mubr.msk.bf16.gmra.mrb[76].mxu1 %vm251_vm1, %v6538_v38 }
 0x49f   :  { %v3689_v35 = vadd.f32 %v3585_v41, %v2596_v19  ;;  %5880 = vmatprep.mubr.msk.bf16.mxu0 %vm6565_vm2, %v6564_v1 }
 0x4a1   :  { %v3728_v49 = vadd.f32 %v8373_v13, %v3689_v35  ;;  %v2183_v6 = vpop.f32.mrb[220].mxu1  ;;  %v3269_v63 = vpop.f32.mrb[220].mxu0 }
 0x4a2   :  { %v3586_v48 = vrot.slane %v3269_v63, 2  ;;  %v5376_v62 = vpop.f32.mrb[221].mxu1  ;;  %v5774_v5 = vpop.f32.mrb[221].mxu0  ;;  %v2495_v2 = vrot.slane %v2183_v6, 1 }
 0x4a3   :  { %v4344_v18 = vpack.c.bf16 %v3728_v49, %v3728_v49  ;;  %v2186_v27 = vpop.f32.mrb[222].mxu1  ;;  %v3272_v10 = vpop.f32.mrb[222].mxu0 }
 0x4a4   :  { %v3587_v11 = vsel %vm3572_vm4, %v3584_v55, %v3586_v48  ;;  %v2496_v61 = vrot.slane %v2186_v27, 1  ;;  %v5377_v12 = vpop.f32.mrb[223].mxu1  ;;  %v5775_v47 = vpop.f32.mrb[223].mxu0 }
 0x4a5   :  { %3889 = vst.msk [vmem:[#allocation2 + $0x10] sm:$0xf] %vm3884_vm5, %v4344_v18  ;;  %v3690_v3 = vadd.f32 %v3587_v11, %v2597_v54 }
 0x4a6   :  { %v2497_v1 = vsel %vm2479_vm3, %v2495_v2, %v2496_v61  ;;  %5881 = vmatmul.mubr.msk.bf16.gmra.mrb[80].mxu0 %vm251_vm1, %v6538_v38 }
 0x4a7   :  { %v3729_v36 = vadd.f32 %v8373_v13, %v3690_v3  ;;  %v2598_v44 = vadd.f32 %v2497_v1, %v7357_v39 }
 0x4a9   :  { %v4345_v40 = vpack.c.bf16 %v3729_v36, %v3729_v36  ;;  %v2191_v46 = vpop.f32.mrb[224].mxu1  ;;  %v3276_v0 = vpop.f32.mrb[224].mxu0 }
 0x4aa   :  { %v2498_v24 = vrot.slane %v2191_v46, 1  ;;  %v5380_v8 = vpop.f32.mrb[225].mxu1  ;;  %v5778_v32 = vpop.f32.mrb[225].mxu0  ;;  %v3588_v23 = vrot.slane %v3276_v0, 2 }
 0x4ab   :  { %3890 = vst.msk [vmem:[#allocation2 + $0x14] sm:$0xf] %vm3884_vm5, %v4345_v40  ;;  %v2194_v28 = vpop.f32.mrb[226].mxu1  ;;  %v3279_v45 = vpop.f32.mrb[226].mxu0 }
 0x4ac   :  { %v2499_v19 = vsel %vm2479_vm3, %v2496_v61, %v2498_v24  ;;  %v3589_v14 = vrot.slane %v3279_v45, 2  ;;  %v5381_v16 = vpop.f32.mrb[227].mxu1  ;;  %v5779_v52 = vpop.f32.mrb[227].mxu0 }
 0x4ad   :  { %v2599_v4 = vadd.f32 %v2499_v19, %v7359_v51 }
 0x4ae   :  { %v3590_v39 = vsel %vm3572_vm4, %v3588_v23, %v3589_v14 }
 0x4af   :  { %v3691_v56 = vadd.f32 %v3590_v39, %v2598_v44 }
 0x4b1   :  { %v3730_v29 = vadd.f32 %v8373_v13, %v3691_v56  ;;  %v2198_v9 = vpop.f32.mrb[228].mxu1  ;;  %v3284_v22 = vpop.f32.mrb[228].mxu0 }
 0x4b2   :  { %v3591_v25 = vrot.slane %v3284_v22, 2  ;;  %v5384_v55 = vpop.f32.mrb[229].mxu1  ;;  %v5782_v50 = vpop.f32.mrb[229].mxu0  ;;  %v2500_v38 = vrot.slane %v2198_v9, 1 }
 0x4b3   :  { %v4346_v30 = vpack.c.bf16 %v3730_v29, %v3730_v29  ;;  %v2201_v54 = vpop.f32.mrb[230].mxu1  ;;  %v3287_v41 = vpop.f32.mrb[230].mxu0 }
 0x4b4   :  { %v3592_v35 = vsel %vm3572_vm4, %v3589_v14, %v3591_v25  ;;  %v2501_v49 = vrot.slane %v2201_v54, 1  ;;  %v5385_v6 = vpop.f32.mrb[231].mxu1  ;;  %v5783_v63 = vpop.f32.mrb[231].mxu0 }
 0x4b5   :  { %3891 = vst.msk [vmem:[#allocation2 + $0x18] sm:$0xf] %vm3884_vm5, %v4346_v30  ;;  %v3692_v51 = vadd.f32 %v3592_v35, %v2599_v4 }
 0x4b6   :  { %v2502_v48 = vsel %vm2479_vm3, %v2500_v38, %v2501_v49 }
 0x4b7   :  { %v3731_v62 = vadd.f32 %v8373_v13, %v3692_v51  ;;  %v2600_v5 = vadd.f32 %v2502_v48, %v7391_v58 }
 0x4b9   :  { %v4347_v18 = vpack.c.bf16 %v3731_v62, %v3731_v62  ;;  %v2206_v27 = vpop.f32.mrb[232].mxu1  ;;  %v3291_v10 = vpop.f32.mrb[232].mxu0 }
 0x4ba   :  { %v2503_v2 = vrot.slane %v2206_v27, 1  ;;  %v5388_v11 = vpop.f32.mrb[233].mxu1  ;;  %v5786_v61 = vpop.f32.mrb[233].mxu0  ;;  %v3593_v1 = vrot.slane %v3291_v10, 2 }
 0x4bb   :  { %3892 = vst.msk [vmem:[#allocation2 + $0x1c] sm:$0xf] %vm3884_vm5, %v4347_v18  ;;  %v2209_v12 = vpop.f32.mrb[234].mxu1  ;;  %v3294_v47 = vpop.f32.mrb[234].mxu0 }
 0x4bc   :  { %v2504_v3 = vsel %vm2479_vm3, %v2501_v49, %v2503_v2  ;;  %v3594_v36 = vrot.slane %v3294_v47, 2  ;;  %v5389_v44 = vpop.f32.mrb[235].mxu1  ;;  %v5787_v40 = vpop.f32.mrb[235].mxu0 }
 0x4bd   :  { %v2601_v46 = vadd.f32 %v2504_v3, %v7393_v43 }
 0x4be   :  { %v3595_v58 = vsel %vm3572_vm4, %v3593_v1, %v3594_v36 }
 0x4bf   :  { %v3693_v0 = vadd.f32 %v3595_v58, %v2600_v5 }
 0x4c1   :  { %v3732_v24 = vadd.f32 %v8373_v13, %v3693_v0  ;;  %v2213_v8 = vpop.f32.mrb[236].mxu1  ;;  %v3299_v32 = vpop.f32.mrb[236].mxu0 }
 0x4c2   :  { %v3596_v28 = vrot.slane %v3299_v32, 2  ;;  %v5392_v45 = vpop.f32.mrb[237].mxu1  ;;  %v5790_v19 = vpop.f32.mrb[237].mxu0  ;;  %v2505_v52 = vrot.slane %v2213_v8, 1 }
 0x4c3   :  { %v4348_v23 = vpack.c.bf16 %v3732_v24, %v3732_v24  ;;  %v2216_v14 = vpop.f32.mrb[238].mxu1  ;;  %v3302_v16 = vpop.f32.mrb[238].mxu0 }
 0x4c4   :  { %v3597_v4 = vsel %vm3572_vm4, %v3594_v36, %v3596_v28  ;;  %v2506_v39 = vrot.slane %v2216_v14, 1  ;;  %v5393_v56 = vpop.f32.mrb[239].mxu1  ;;  %v5791_v29 = vpop.f32.mrb[239].mxu0 }
 0x4c5   :  { %3893 = vst.msk [vmem:[#allocation2 + $0x20] sm:$0xf] %vm3884_vm5, %v4348_v23  ;;  %v3694_v43 = vadd.f32 %v3597_v4, %v2601_v46 }
 0x4c6   :  { %v2507_v9 = vsel %vm2479_vm3, %v2505_v52, %v2506_v39 }
 0x4c7   :  { %v3733_v22 = vadd.f32 %v8373_v13, %v3694_v43  ;;  %v2602_v25 = vadd.f32 %v2507_v9, %v7423_v33 }
 0x4c9   :  { %v4349_v55 = vpack.c.bf16 %v3733_v22, %v3733_v22  ;;  %v2221_v50 = vpop.f32.mrb[240].mxu1  ;;  %v3306_v30 = vpop.f32.mrb[240].mxu0 }
 0x4ca   :  { %v2508_v54 = vrot.slane %v2221_v50, 1  ;;  %v5396_v41 = vpop.f32.mrb[241].mxu1  ;;  %v5794_v38 = vpop.f32.mrb[241].mxu0  ;;  %v3598_v63 = vrot.slane %v3306_v30, 2 }
 0x4cb   :  { %3894 = vst.msk [vmem:[#allocation2 + $0x24] sm:$0xf] %vm3884_vm5, %v4349_v55  ;;  %v2224_v35 = vpop.f32.mrb[242].mxu1  ;;  %v3309_v49 = vpop.f32.mrb[242].mxu0 }
 0x4cc   :  { %v2509_v6 = vsel %vm2479_vm3, %v2506_v39, %v2508_v54  ;;  %v3599_v51 = vrot.slane %v3309_v49, 2  ;;  %v5397_v48 = vpop.f32.mrb[243].mxu1  ;;  %v5795_v62 = vpop.f32.mrb[243].mxu0 }
 0x4cd   :  { %v2603_v5 = vadd.f32 %v2509_v6, %v7425_v15 }
 0x4ce   :  { %v3600_v33 = vsel %vm3572_vm4, %v3598_v63, %v3599_v51 }
 0x4cf   :  { %v3695_v18 = vadd.f32 %v3600_v33, %v2602_v25 }
 0x4d1   :  { %v3734_v27 = vadd.f32 %v8373_v13, %v3695_v18  ;;  %v2228_v10 = vpop.f32.mrb[244].mxu1  ;;  %v3314_v2 = vpop.f32.mrb[244].mxu0 }
 0x4d2   :  { %v3601_v11 = vrot.slane %v3314_v2, 2  ;;  %v5400_v61 = vpop.f32.mrb[245].mxu1  ;;  %v5798_v12 = vpop.f32.mrb[245].mxu0  ;;  %v2510_v36 = vrot.slane %v2228_v10, 1 }
 0x4d3   :  { %v4350_v47 = vpack.c.bf16 %v3734_v27, %v3734_v27  ;;  %v2231_v3 = vpop.f32.mrb[246].mxu1  ;;  %v3317_v1 = vpop.f32.mrb[246].mxu0 }
 0x4d4   :  { %v3602_v44 = vsel %vm3572_vm4, %v3599_v51, %v3601_v11  ;;  %v2511_v40 = vrot.slane %v2231_v3, 1  ;;  %v5401_v46 = vpop.f32.mrb[247].mxu1  ;;  %v5799_v58 = vpop.f32.mrb[247].mxu0 }
 0x4d5   :  { %3895 = vst.msk [vmem:[#allocation2 + $0x28] sm:$0xf] %vm3884_vm5, %v4350_v47  ;;  %v3696_v15 = vadd.f32 %v3602_v44, %v2603_v5 }
 0x4d6   :  { %v2512_v0 = vsel %vm2479_vm3, %v2510_v36, %v2511_v40 }
 0x4d7   :  { %v3735_v24 = vadd.f32 %v8373_v13, %v3696_v15  ;;  %v2604_v8 = vadd.f32 %v2512_v0, %v7455_v20 }
 0x4d9   :  { %v4351_v32 = vpack.c.bf16 %v3735_v24, %v3735_v24  ;;  %v2236_v28 = vpop.f32.mrb[248].mxu1  ;;  %v3321_v45 = vpop.f32.mrb[248].mxu0 }
 0x4da   :  { %v2513_v19 = vrot.slane %v2236_v28, 1  ;;  %v5404_v23 = vpop.f32.mrb[249].mxu1  ;;  %v5802_v14 = vpop.f32.mrb[249].mxu0  ;;  %v3603_v39 = vrot.slane %v3321_v45, 2 }
 0x4db   :  { %3896 = vst.msk [vmem:[#allocation2 + $0x2c] sm:$0xf] %vm3884_vm5, %v4351_v32  ;;  %v2239_v16 = vpop.f32.mrb[250].mxu1  ;;  %v3324_v52 = vpop.f32.mrb[250].mxu0 }
 0x4dc   :  { %v2514_v4 = vsel %vm2479_vm3, %v2511_v40, %v2513_v19  ;;  %v3604_v56 = vrot.slane %v3324_v52, 2  ;;  %v5405_v29 = vpop.f32.mrb[251].mxu1  ;;  %v5803_v43 = vpop.f32.mrb[251].mxu0 }
 0x4dd   :  { %v2605_v9 = vadd.f32 %v2514_v4, %v7457_v37 }
 0x4de   :  { %v3605_v20 = vsel %vm3572_vm4, %v3603_v39, %v3604_v56 }
 0x4df   :  { %v3697_v22 = vadd.f32 %v3605_v20, %v2604_v8 }
 0x4e1   :  { %v3736_v25 = vadd.f32 %v8373_v13, %v3697_v22  ;;  %v2243_v55 = vpop.f32.mrb[252].mxu1  ;;  %v3329_v50 = vpop.f32.mrb[252].mxu0 }
 0x4e2   :  { %v3606_v30 = vrot.slane %v3329_v50, 2  ;;  %v5408_v54 = vpop.f32.mrb[253].mxu1  ;;  %v5806_v41 = vpop.f32.mrb[253].mxu0  ;;  %v2515_v6 = vrot.slane %v2243_v55, 1 }
 0x4e3   :  { %v4352_v38 = vpack.c.bf16 %v3736_v25, %v3736_v25  ;;  %v2246_v35 = vpop.f32.mrb[254].mxu1  ;;  %v3332_v49 = vpop.f32.mrb[254].mxu0 }
 0x4e4   :  { %v3607_v63 = vsel %vm3572_vm4, %v3604_v56, %v3606_v30  ;;  %v2516_v51 = vrot.slane %v2246_v35, 1  ;;  %v5409_v48 = vpop.f32.mrb[255].mxu1  ;;  %v5807_v62 = vpop.f32.mrb[255].mxu0 }
 0x4e5   :  { %3897 = vst.msk [vmem:[#allocation2 + $0x30] sm:$0xf] %vm3884_vm5, %v4352_v38  ;;  %v3698_v37 = vadd.f32 %v3607_v63, %v2605_v9 }
 0x4e6   :  { %v2517_v5 = vsel %vm2479_vm3, %v2515_v6, %v2516_v51 }
 0x4e7   :  { %v3737_v33 = vadd.f32 %v8373_v13, %v3698_v37  ;;  %v2606_v18 = vadd.f32 %v2517_v5, %v7487_v53 }
 0x4e9   :  { %v4353_v27 = vpack.c.bf16 %v3737_v33, %v3737_v33  ;;  %v2251_v10 = vpop.f32.mrb[0].mxu1  ;;  %v3336_v2 = vpop.f32.mrb[0].mxu0 }
 0x4ea   :  { %v2518_v11 = vrot.slane %v2251_v10, 1  ;;  %v5412_v61 = vpop.f32.mrb[1].mxu1  ;;  %v5810_v12 = vpop.f32.mrb[1].mxu0  ;;  %v3608_v36 = vrot.slane %v3336_v2, 2 }
 0x4eb   :  { %3898 = vst.msk [vmem:[#allocation2 + $0x34] sm:$0xf] %vm3884_vm5, %v4353_v27  ;;  %v2254_v47 = vpop.f32.mrb[2].mxu1  ;;  %v3339_v3 = vpop.f32.mrb[2].mxu0 }
 0x4ec   :  { %v2519_v1 = vsel %vm2479_vm3, %v2516_v51, %v2518_v11  ;;  %v3609_v44 = vrot.slane %v3339_v3, 2  ;;  %v5413_v40 = vpop.f32.mrb[3].mxu1  ;;  %v5811_v46 = vpop.f32.mrb[3].mxu0 }
 0x4ed   :  { %v2607_v58 = vadd.f32 %v2519_v1, %v7489_v60 }
 0x4ee   :  { %v3610_v53 = vsel %vm3572_vm4, %v3608_v36, %v3609_v44 }
 0x4ef   :  { %v3699_v15 = vadd.f32 %v3610_v53, %v2606_v18 }
 0x4f1   :  { %v3738_v0 = vadd.f32 %v8373_v13, %v3699_v15  ;;  %v2258_v24 = vpop.f32.mrb[4].mxu1  ;;  %v3344_v8 = vpop.f32.mrb[4].mxu0 }
 0x4f2   :  { %v3611_v32 = vrot.slane %v3344_v8, 2  ;;  %v5416_v28 = vpop.f32.mrb[5].mxu1  ;;  %v5814_v45 = vpop.f32.mrb[5].mxu0  ;;  %v2520_v16 = vrot.slane %v2258_v24, 1 }
 0x4f3   :  { %v4354_v19 = vpack.c.bf16 %v3738_v0, %v3738_v0  ;;  %v2261_v23 = vpop.f32.mrb[6].mxu1  ;;  %v3347_v14 = vpop.f32.mrb[6].mxu0 }
 0x4f4   :  { %v3612_v52 = vsel %vm3572_vm4, %v3609_v44, %v3611_v32  ;;  %v2521_v4 = vrot.slane %v2261_v23, 1  ;;  %v5417_v39 = vpop.f32.mrb[7].mxu1  ;;  %v5815_v56 = vpop.f32.mrb[7].mxu0 }
 0x4f5   :  { %3899 = vst.msk [vmem:[#allocation2 + $0x38] sm:$0xf] %vm3884_vm5, %v4354_v19  ;;  %v3700_v60 = vadd.f32 %v3612_v52, %v2607_v58 }
 0x4f6   :  { %v2522_v29 = vsel %vm2479_vm3, %v2520_v16, %v2521_v4 }
 0x4f7   :  { %v3739_v43 = vadd.f32 %v8373_v13, %v3700_v60  ;;  %v2608_v9 = vadd.f32 %v2522_v29, %v7519_v17 }
 0x4f9   :  { %v4355_v20 = vpack.c.bf16 %v3739_v43, %v3739_v43  ;;  %v2266_v22 = vpop.f32.mrb[8].mxu1  ;;  %v3351_v25 = vpop.f32.mrb[8].mxu0 }
 0x4fa   :  { %v2523_v55 = vrot.slane %v2266_v22, 1  ;;  %v5420_v50 = vpop.f32.mrb[9].mxu1  ;;  %v5818_v30 = vpop.f32.mrb[9].mxu0  ;;  %v3613_v35 = vrot.slane %v3351_v25, 2 }
 0x4fb   :  { %3900 = vst.msk [vmem:[#allocation2 + $0x3c] sm:$0xf] %vm3884_vm5, %v4355_v20  ;;  %v2269_v54 = vpop.f32.mrb[10].mxu1  ;;  %v3354_v41 = vpop.f32.mrb[10].mxu0 }
 0x4fc   :  { %v2524_v38 = vsel %vm2479_vm3, %v2521_v4, %v2523_v55  ;;  %v3614_v49 = vrot.slane %v3354_v41, 2  ;;  %v5421_v6 = vpop.f32.mrb[11].mxu1  ;;  %v5819_v63 = vpop.f32.mrb[11].mxu0 }
 0x4fd   :  { %v2609_v51 = vadd.f32 %v2524_v38, %v7521_v26 }
 0x4fe   :  { %v3615_v17 = vsel %vm3572_vm4, %v3613_v35, %v3614_v49 }
 0x4ff   :  { %v3701_v48 = vadd.f32 %v3615_v17, %v2608_v9 }
 0x501   :  { %v3740_v62 = vadd.f32 %v8373_v13, %v3701_v48  ;;  %v2273_v37 = vpop.f32.mrb[12].mxu1  ;;  %v3359_v5 = vpop.f32.mrb[12].mxu0 }
 0x502   :  { %v3616_v33 = vrot.slane %v3359_v5, 2  ;;  %v5424_v18 = vpop.f32.mrb[13].mxu1  ;;  %v5822_v27 = vpop.f32.mrb[13].mxu0  ;;  %v2525_v61 = vrot.slane %v2273_v37, 1 }
 0x503   :  { %v4356_v10 = vpack.c.bf16 %v3740_v62, %v3740_v62  ;;  %v2276_v2 = vpop.f32.mrb[14].mxu1  ;;  %v3362_v11 = vpop.f32.mrb[14].mxu0 }
 0x504   :  { %v3617_v12 = vsel %vm3572_vm4, %v3614_v49, %v3616_v33  ;;  %v2526_v47 = vrot.slane %v2276_v2, 1  ;;  %v5425_v3 = vpop.f32.mrb[15].mxu1  ;;  %v5823_v1 = vpop.f32.mrb[15].mxu0 }
 0x505   :  { %3901 = vst.msk [vmem:[#allocation2 + $0x40] sm:$0xf] %vm3884_vm5, %v4356_v10  ;;  %v3702_v26 = vadd.f32 %v3617_v12, %v2609_v51 }
 0x506   :  { %v2527_v36 = vsel %vm2479_vm3, %v2525_v61, %v2526_v47 }
 0x507   :  { %v3741_v44 = vadd.f32 %v8373_v13, %v3702_v26  ;;  %v2610_v40 = vadd.f32 %v2527_v36, %v7551_v42 }
 0x509   :  { %v4357_v46 = vpack.c.bf16 %v3741_v44, %v3741_v44  ;;  %v2281_v58 = vpop.f32.mrb[16].mxu1  ;;  %v3366_v53 = vpop.f32.mrb[16].mxu0 }
 0x50a   :  { %v2528_v15 = vrot.slane %v2281_v58, 1  ;;  %v5428_v0 = vpop.f32.mrb[17].mxu1  ;;  %v5826_v24 = vpop.f32.mrb[17].mxu0  ;;  %v3618_v45 = vrot.slane %v3366_v53, 2 }
 0x50b   :  { %3902 = vst.msk [vmem:[#allocation2 + $0x44] sm:$0xf] %vm3884_vm5, %v4357_v46  ;;  %v2284_v8 = vpop.f32.mrb[18].mxu1  ;;  %v3369_v32 = vpop.f32.mrb[18].mxu0 }
 0x50c   :  { %v2529_v28 = vsel %vm2479_vm3, %v2526_v47, %v2528_v15  ;;  %v3619_v19 = vrot.slane %v3369_v32, 2  ;;  %v5429_v23 = vpop.f32.mrb[19].mxu1  ;;  %v5827_v14 = vpop.f32.mrb[19].mxu0 }
 0x50d   :  { %v2611_v16 = vadd.f32 %v2529_v28, %v7553_v7 }
 0x50e   :  { %v3620_v42 = vsel %vm3572_vm4, %v3618_v45, %v3619_v19 }
 0x50f   :  { %v3703_v52 = vadd.f32 %v3620_v42, %v2610_v40 }
 0x511   :  { %v3742_v4 = vadd.f32 %v8373_v13, %v3703_v52  ;;  %v2288_v39 = vpop.f32.mrb[20].mxu1  ;;  %v3374_v56 = vpop.f32.mrb[20].mxu0 }
 0x512   :  { %v3621_v60 = vrot.slane %v3374_v56, 2  ;;  %v5432_v29 = vpop.f32.mrb[21].mxu1  ;;  %v5830_v43 = vpop.f32.mrb[21].mxu0  ;;  %v2530_v25 = vrot.slane %v2288_v39, 1 }
 0x513   :  { %v4358_v9 = vpack.c.bf16 %v3742_v4, %v3742_v4  ;;  %v2291_v20 = vpop.f32.mrb[22].mxu1  ;;  %v3377_v22 = vpop.f32.mrb[22].mxu0  ;;  %v8596_v43 = vld [vmem:[#allocation5_spill] sm:$0xff] }
 0x514   :  { %v3622_v55 = vsel %vm3572_vm4, %v3619_v19, %v3621_v60  ;;  %v2531_v50 = vrot.slane %v2291_v20, 1  ;;  %v5433_v30 = vpop.f32.mrb[23].mxu1  ;;  %v5831_v54 = vpop.f32.mrb[23].mxu0 }
 0x515   :  { %3903 = vst.msk [vmem:[#allocation2 + $0x48] sm:$0xf] %vm3884_vm5, %v4358_v9  ;;  %v3704_v7 = vadd.f32 %v3622_v55, %v2611_v16 }
 0x516   :  { %v2532_v41 = vsel %vm2479_vm3, %v2530_v25, %v2531_v50 }
 0x517   :  { %v3743_v38 = vadd.f32 %v8373_v13, %v3704_v7  ;;  %v2612_v35 = vadd.f32 %v2532_v41, %v7583_v31 }
 0x519   :  { %v4359_v49 = vpack.c.bf16 %v3743_v38, %v3743_v38  ;;  %v2296_v6 = vpop.f32.mrb[24].mxu1  ;;  %v3381_v63 = vpop.f32.mrb[24].mxu0 }
 0x51a   :  { %v2533_v51 = vrot.slane %v2296_v6, 1  ;;  %v5436_v17 = vpop.f32.mrb[25].mxu1  ;;  %v5834_v48 = vpop.f32.mrb[25].mxu0  ;;  %v3623_v33 = vrot.slane %v3381_v63, 2 }
 0x51b   :  { %3904 = vst.msk [vmem:[#allocation2 + $0x4c] sm:$0xf] %vm3884_vm5, %v4359_v49  ;;  %v2299_v62 = vpop.f32.mrb[26].mxu1  ;;  %v3384_v37 = vpop.f32.mrb[26].mxu0 }
 0x51c   :  { %v2534_v5 = vsel %vm2479_vm3, %v2531_v50, %v2533_v51  ;;  %v3624_v18 = vrot.slane %v3384_v37, 2  ;;  %v5437_v27 = vpop.f32.mrb[27].mxu1  ;;  %v5835_v10 = vpop.f32.mrb[27].mxu0  ;;  %v8597_v37 = vld [vmem:[#allocation6_spill] sm:$0xff] }
 0x51d   :  { %v2613_v2 = vadd.f32 %v2534_v5, %v7585_v34 }
 0x51e   :  { %v3625_v31 = vsel %vm3572_vm4, %v3623_v33, %v3624_v18 }
 0x51f   :  { %v3705_v11 = vadd.f32 %v3625_v31, %v2612_v35 }
 0x521   :  { %v3744_v61 = vadd.f32 %v8373_v13, %v3705_v11  ;;  %v2303_v12 = vpop.f32.mrb[28].mxu1  ;;  %v3389_v47 = vpop.f32.mrb[28].mxu0 }
 0x522   :  { %v3626_v3 = vrot.slane %v3389_v47, 2  ;;  %v5440_v1 = vpop.f32.mrb[29].mxu1  ;;  %v5838_v26 = vpop.f32.mrb[29].mxu0  ;;  %v2535_v46 = vrot.slane %v2303_v12, 1 }
 0x523   :  { %v4360_v36 = vpack.c.bf16 %v3744_v61, %v3744_v61  ;;  %v2306_v44 = vpop.f32.mrb[30].mxu1  ;;  %v3392_v40 = vpop.f32.mrb[30].mxu0 }
 0x524   :  { %v3627_v58 = vsel %vm3572_vm4, %v3624_v18, %v3626_v3  ;;  %v2536_v53 = vrot.slane %v2306_v44, 1  ;;  %v5441_v15 = vpop.f32.mrb[31].mxu1  ;;  %v5839_v0 = vpop.f32.mrb[31].mxu0 }
 0x525   :  { %3905 = vst.msk [vmem:[#allocation2 + $0x50] sm:$0xf] %vm3884_vm5, %v4360_v36  ;;  %v3706_v34 = vadd.f32 %v3627_v58, %v2613_v2  ;;  %v8598_v36 = vld [vmem:[#allocation7_spill] sm:$0xff] }
 0x526   :  { %v2537_v24 = vsel %vm2479_vm3, %v2535_v46, %v2536_v53 }
 0x527   :  { %v3745_v8 = vadd.f32 %v8373_v13, %v3706_v34  ;;  %v2614_v32 = vadd.f32 %v2537_v24, %v7615_v21 }
 0x529   :  { %v4361_v28 = vpack.c.bf16 %v3745_v8, %v3745_v8  ;;  %v2311_v45 = vpop.f32.mrb[32].mxu1  ;;  %v3396_v19 = vpop.f32.mrb[32].mxu0 }
 0x52a   :  { %v2538_v23 = vrot.slane %v2311_v45, 1  ;;  %v5444_v14 = vpop.f32.mrb[33].mxu1  ;;  %v5842_v16 = vpop.f32.mrb[33].mxu0  ;;  %v3628_v39 = vrot.slane %v3396_v19, 2 }
 0x52b   :  { %3906 = vst.msk [vmem:[#allocation2 + $0x54] sm:$0xf] %vm3884_vm5, %v4361_v28  ;;  %v2314_v42 = vpop.f32.mrb[34].mxu1  ;;  %v3399_v52 = vpop.f32.mrb[34].mxu0 }
 0x52c   :  { %v2539_v4 = vsel %vm2479_vm3, %v2536_v53, %v2538_v23  ;;  %v3629_v56 = vrot.slane %v3399_v52, 2  ;;  %v5445_v60 = vpop.f32.mrb[35].mxu1  ;;  %v5843_v29 = vpop.f32.mrb[35].mxu0 }
 0x52d   :  { %v2615_v9 = vadd.f32 %v2539_v4, %v8596_v43 }
 0x52e   :  { %v3630_v21 = vsel %vm3572_vm4, %v3628_v39, %v3629_v56  ;;  %v8599_v39 = vld [vmem:[#allocation8_spill] sm:$0xff] }
 0x52f   :  { %v3707_v20 = vadd.f32 %v3630_v21, %v2614_v32 }
 0x531   :  { %v3746_v22 = vadd.f32 %v8373_v13, %v3707_v20  ;;  %v2318_v25 = vpop.f32.mrb[36].mxu1  ;;  %v3404_v55 = vpop.f32.mrb[36].mxu0 }
 0x532   :  { %v3631_v50 = vrot.slane %v3404_v55, 2  ;;  %v5448_v30 = vpop.f32.mrb[37].mxu1  ;;  %v5846_v54 = vpop.f32.mrb[37].mxu0  ;;  %v2540_v35 = vrot.slane %v2318_v25, 1 }
 0x533   :  { %v4362_v7 = vpack.c.bf16 %v3746_v22, %v3746_v22  ;;  %v2321_v41 = vpop.f32.mrb[38].mxu1  ;;  %v3407_v38 = vpop.f32.mrb[38].mxu0 }
 0x534   :  { %v3632_v49 = vsel %vm3572_vm4, %v3629_v56, %v3631_v50  ;;  %v2541_v6 = vrot.slane %v2321_v41, 1  ;;  %v5449_v63 = vpop.f32.mrb[39].mxu1  ;;  %v5847_v51 = vpop.f32.mrb[39].mxu0  ;;  %v8600_v41 = vld [vmem:[#allocation9_spill] sm:$0xff] }
 0x535   :  { %3907 = vst.msk [vmem:[#allocation2 + $0x58] sm:$0xf] %vm3884_vm5, %v4362_v7  ;;  %v3708_v17 = vadd.f32 %v3632_v49, %v2615_v9 }
 0x536   :  { %v2542_v48 = vsel %vm2479_vm3, %v2540_v35, %v2541_v6 }
 0x537   :  { %v3747_v62 = vadd.f32 %v8373_v13, %v3708_v17  ;;  %v2616_v5 = vadd.f32 %v2542_v48, %v8597_v37 }
 0x539   :  { %v4363_v33 = vpack.c.bf16 %v3747_v62, %v3747_v62  ;;  %v2326_v18 = vpop.f32.mrb[40].mxu1  ;;  %v3411_v27 = vpop.f32.mrb[40].mxu0 }
 0x53a   :  { %v2543_v10 = vrot.slane %v2326_v18, 1  ;;  %v5452_v2 = vpop.f32.mrb[41].mxu1  ;;  %v5850_v31 = vpop.f32.mrb[41].mxu0  ;;  %v3633_v47 = vrot.slane %v3411_v27, 2 }
 0x53b   :  { %3908 = vst.msk [vmem:[#allocation2 + $0x5c] sm:$0xf] %vm3884_vm5, %v4363_v33  ;;  %v2329_v11 = vpop.f32.mrb[42].mxu1  ;;  %v3414_v61 = vpop.f32.mrb[42].mxu0 }
 0x53c   :  { %v2544_v12 = vsel %vm2479_vm3, %v2541_v6, %v2543_v10  ;;  %v3634_v3 = vrot.slane %v3414_v61, 2  ;;  %v5453_v1 = vpop.f32.mrb[43].mxu1  ;;  %v5851_v26 = vpop.f32.mrb[43].mxu0 }
 0x53d   :  { %v2617_v44 = vadd.f32 %v2544_v12, %v8598_v36 }
 0x53e   :  { %v3635_v40 = vsel %vm3572_vm4, %v3633_v47, %v3634_v3  ;;  %v8601_v47 = vld [vmem:[#allocation10_spill] sm:$0xff] }
 0x53f   :  { %v3709_v46 = vadd.f32 %v3635_v40, %v2616_v5 }
 0x541   :  { %v3748_v58 = vadd.f32 %v8373_v13, %v3709_v46  ;;  %v2333_v53 = vpop.f32.mrb[44].mxu1  ;;  %v3419_v15 = vpop.f32.mrb[44].mxu0 }
 0x542   :  { %v3636_v0 = vrot.slane %v3419_v15, 2  ;;  %v5456_v34 = vpop.f32.mrb[45].mxu1  ;;  %v5854_v24 = vpop.f32.mrb[45].mxu0  ;;  %v2545_v45 = vrot.slane %v2333_v53, 1 }
 0x543   :  { %v4364_v8 = vpack.c.bf16 %v3748_v58, %v3748_v58  ;;  %v2336_v32 = vpop.f32.mrb[46].mxu1  ;;  %v3422_v28 = vpop.f32.mrb[46].mxu0 }
 0x544   :  { %v3637_v19 = vsel %vm3572_vm4, %v3634_v3, %v3636_v0  ;;  %v2546_v23 = vrot.slane %v2336_v32, 1  ;;  %v5457_v14 = vpop.f32.mrb[47].mxu1  ;;  %v5855_v16 = vpop.f32.mrb[47].mxu0  ;;  %v8602_v32 = vld [vmem:[#allocation11_spill] sm:$0xff] }
 0x545   :  { %3909 = vst.msk [vmem:[#allocation2 + $0x60] sm:$0xf] %vm3884_vm5, %v4364_v8  ;;  %v3710_v42 = vadd.f32 %v3637_v19, %v2617_v44  ;;  %v6539_v19 = vld [vmem:[%s8587_s2] ss:$0 sm:$0xff]  ;;  %s6566_s2 = smov [#allocation2]  }
 0x546   :  { %v2547_v52 = vsel %vm2479_vm3, %v2545_v45, %v2546_v23  ;;  %s3922_s5 = sshll.u32 %s6566_s2, 4  ;;  %s3923_s5 = int_to_ptr.vmem [resolvable:$true] %s3922_s5 }
 0x547   :  { %v3749_v4 = vadd.f32 %v8373_v13, %v3710_v42  ;;  %v2618_v56 = vadd.f32 %v2547_v52, %v8599_v39  ;;  %s6540_s6 = scalar_lea.vmem %s3923_s5, 2048  ;;  %p6545_p1 = scmp.lt.s32.totalorder %s3923_s5, %s3923_s5 }
 0x548   :  { %p6541_p0 = scmp.ne.s32.totalorder %s3923_s5, %s6540_s6  ;;  %p6546_p2 = scmp.lt.s32.totalorder %s6540_s6, %s6540_s6 }
 0x549   :  { %v4365_v60 = vpack.c.bf16 %v3749_v4, %v3749_v4  ;;  %v2341_v29 = vpop.f32.mrb[48].mxu1  ;;  %v3426_v43 = vpop.f32.mrb[48].mxu0 }
 0x54a   :  { %v2548_v9 = vrot.slane %v2341_v29, 1  ;;  %v5460_v21 = vpop.f32.mrb[49].mxu1  ;;  %v5858_v20 = vpop.f32.mrb[49].mxu0  ;;  %v3638_v50 = vrot.slane %v3426_v43, 2  ;;  %p6547_p3 = por %p6546_p2, %p6545_p1 }
 0x54b   :  { %3910 = vst.msk [vmem:[#allocation2 + $0x64] sm:$0xf] %vm3884_vm5, %v4365_v60  ;;  %v2344_v22 = vpop.f32.mrb[50].mxu1  ;;  %v3429_v25 = vpop.f32.mrb[50].mxu0 }
 0x54c   :  { %v2549_v55 = vsel %vm2479_vm3, %v2546_v23, %v2548_v9  ;;  %v3639_v30 = vrot.slane %v3429_v25, 2  ;;  %v5461_v54 = vpop.f32.mrb[51].mxu1  ;;  %v5859_v7 = vpop.f32.mrb[51].mxu0  ;;  %p6548_p4 = pnand %p6547_p3, %p6541_p0 }
 0x54d   :  { %v2619_v38 = vadd.f32 %v2549_v55, %v8600_v41 }
 0x54e   :  { %v3640_v35 = vsel %vm3572_vm4, %v3638_v50, %v3639_v30 }
 0x54f   :  { %v3711_v49 = vadd.f32 %v3640_v35, %v2618_v56 }
 0x551   :  { %v3750_v6 = vadd.f32 %v8373_v13, %v3711_v49  ;;  %v2348_v63 = vpop.f32.mrb[52].mxu1  ;;  %v3434_v51 = vpop.f32.mrb[52].mxu0 }
 0x552   :  { %v3641_v17 = vrot.slane %v3434_v51, 2  ;;  %v5464_v48 = vpop.f32.mrb[53].mxu1  ;;  %v5862_v62 = vpop.f32.mrb[53].mxu0  ;;  %v2550_v18 = vrot.slane %v2348_v63, 1 }
 0x553   :  { %v4366_v37 = vpack.c.bf16 %v3750_v6, %v3750_v6  ;;  %v2351_v5 = vpop.f32.mrb[54].mxu1  ;;  %v3437_v33 = vpop.f32.mrb[54].mxu0 }
 0x554   :  { %v3642_v27 = vsel %vm3572_vm4, %v3639_v30, %v3641_v17  ;;  %v2551_v10 = vrot.slane %v2351_v5, 1  ;;  %v5465_v2 = vpop.f32.mrb[55].mxu1  ;;  %v5863_v31 = vpop.f32.mrb[55].mxu0 }
 0x555   :  { %3911 = vst.msk [vmem:[#allocation2 + $0x68] sm:$0xf] %vm3884_vm5, %v4366_v37  ;;  %v3712_v11 = vadd.f32 %v3642_v27, %v2619_v38 }
 0x556   :  { %v2552_v61 = vsel %vm2479_vm3, %v2550_v18, %v2551_v10 }
 0x557   :  { %v3751_v12 = vadd.f32 %v8373_v13, %v3712_v11  ;;  %v2620_v3 = vadd.f32 %v2552_v61, %v8601_v47 }
 0x559   :  { %v4367_v1 = vpack.c.bf16 %v3751_v12, %v3751_v12  ;;  %v2356_v26 = vpop.f32.mrb[56].mxu1  ;;  %v3441_v36 = vpop.f32.mrb[56].mxu0 }
 0x55a   :  { %v2553_v44 = vrot.slane %v2356_v26, 1  ;;  %v5468_v40 = vpop.f32.mrb[57].mxu1  ;;  %v5866_v46 = vpop.f32.mrb[57].mxu0  ;;  %v3643_v0 = vrot.slane %v3441_v36, 2 }
 0x55b   :  { %3912 = vst.msk [vmem:[#allocation2 + $0x6c] sm:$0xf] %vm3884_vm5, %v4367_v1  ;;  %v2359_v58 = vpop.f32.mrb[58].mxu1  ;;  %v3444_v53 = vpop.f32.mrb[58].mxu0 }
 0x55c   :  { %v2554_v15 = vsel %vm2479_vm3, %v2551_v10, %v2553_v44  ;;  %v3644_v34 = vrot.slane %v3444_v53, 2  ;;  %v5469_v24 = vpop.f32.mrb[59].mxu1  ;;  %v5867_v8 = vpop.f32.mrb[59].mxu0 }
 0x55d   :  { %v2621_v13 = vadd.f32 %v2554_v15, %v8602_v32 }
 0x55e   :  { %v3645_v28 = vsel %vm3572_vm4, %v3643_v0, %v3644_v34 }
 0x55f   :  { %v3713_v45 = vadd.f32 %v3645_v28, %v2620_v3 }
 0x561   :  { %v3752_v23 = vadd.f32 %v6539_v19, %v3713_v45  ;;  %v2363_v14 = vpop.f32.mrb[60].mxu1  ;;  %v3449_v16 = vpop.f32.mrb[60].mxu0 }
 0x562   :  { %v3646_v42 = vrot.slane %v3449_v16, 2  ;;  %v5472_v52 = vpop.f32.mrb[61].mxu1  ;;  %v5870_v4 = vpop.f32.mrb[61].mxu0  ;;  %v2555_v29 = vrot.slane %v2363_v14, 1 }
 0x563   :  { %v4368_v39 = vpack.c.bf16 %v3752_v23, %v3752_v23  ;;  %v2366_v56 = vpop.f32.mrb[62].mxu1  ;;  %v3452_v60 = vpop.f32.mrb[62].mxu0 }
 0x564   :  { %v3647_v43 = vsel %vm3572_vm4, %v3644_v34, %v3646_v42  ;;  %v2556_v9 = vrot.slane %v2366_v56, 1  ;;  %v5473_v21 = vpop.f32.mrb[63].mxu1  ;;  %v5871_v20 = vpop.f32.mrb[63].mxu0 }
 0x565   :  { %3913 = vst.msk [vmem:[#allocation2 + $0x70] sm:$0xf] %vm3884_vm5, %v4368_v39  ;;  %v3714_v22 = vadd.f32 %v3647_v43, %v2621_v13 }
 0x566   :  { %v2557_v25 = vsel %vm2479_vm3, %v2555_v29, %v2556_v9 }
 0x567   :  { %v3753_v55 = vadd.f32 %v6539_v19, %v3714_v22  ;;  %v2622_v50 = vadd.f32 %v2557_v25, %v7743_v59 }
 0x569   :  { %v4369_v30 = vpack.c.bf16 %v3753_v55, %v3753_v55  ;;  %v2371_v54 = vpop.f32.mrb[64].mxu1  ;;  %v3456_v7 = vpop.f32.mrb[64].mxu0 }
 0x56a   :  { %v2558_v41 = vrot.slane %v2371_v54, 1  ;;  %v5476_v38 = vpop.f32.mrb[65].mxu1  ;;  %v5874_v35 = vpop.f32.mrb[65].mxu0  ;;  %v3648_v51 = vrot.slane %v3456_v7, 2 }
 0x56b   :  { %3914 = vst.msk [vmem:[#allocation2 + $0x74] sm:$0xf] %vm3884_vm5, %v4369_v30  ;;  %v2374_v49 = vpop.f32.mrb[66].mxu1  ;;  %v3459_v6 = vpop.f32.mrb[66].mxu0 }
 0x56c   :  { %v2559_v63 = vsel %vm2479_vm3, %v2556_v9, %v2558_v41  ;;  %v3649_v17 = vrot.slane %v3459_v6, 2  ;;  %v5477_v48 = vpop.f32.mrb[67].mxu1  ;;  %v5875_v62 = vpop.f32.mrb[67].mxu0 }
 0x56d   :  { %v2623_v37 = vadd.f32 %v2559_v63, %v7745_v57 }
 0x56e   :  { %v3650_v59 = vsel %vm3572_vm4, %v3648_v51, %v3649_v17 }
 0x56f   :  { %v3715_v5 = vadd.f32 %v3650_v59, %v2622_v50 }
 0x571   :  { %v3754_v33 = vadd.f32 %v6539_v19, %v3715_v5  ;;  %v3464_v18 = vpop.f32.mrb[68].mxu0  ;;  %v2378_v27 = vpop.f32.mrb[76].mxu1 }
 0x572   :  { %v3651_v10 = vrot.slane %v3464_v18, 2  ;;  %v5878_v2 = vpop.f32.mrb[69].mxu0  ;;  %v5480_v31 = vpop.f32.mrb[77].mxu1 }
 0x573   :  { %v4370_v11 = vpack.c.bf16 %v3754_v33, %v3754_v33  ;;  %v3467_v61 = vpop.f32.mrb[70].mxu0  ;;  %v2380_v12 = vpop.f32.mrb[78].mxu1 }
 0x574   :  { %v3652_v47 = vsel %vm3572_vm4, %v3649_v17, %v3651_v10  ;;  %v5879_v3 = vpop.f32.mrb[71].mxu0  ;;  %v5481_v1 = vpop.f32.mrb[79].mxu1 }
 0x575   :  { %3915 = vst.msk [vmem:[#allocation2 + $0x78] sm:$0xf] %vm3884_vm5, %v4370_v11  ;;  %v3716_v26 = vadd.f32 %v3652_v47, %v2623_v37 }
 0x577   :  { %v3755_v57 = vadd.f32 %v6539_v19, %v3716_v26 }
 0x579   :  { %v4371_v36 = vpack.c.bf16 %v3755_v57, %v3755_v57  ;;  %v3471_v44 = vpop.f32.mrb[80].mxu0 }
 0x57a   :  { %v5882_v40 = vpop.f32.mrb[81].mxu0 }
 0x57b   :  { %3916 = vst.msk [vmem:[#allocation2 + $0x7c] sm:$0xf] %vm3884_vm5, %v4371_v36  ;;  %v3473_v46 = vpop.f32.mrb[82].mxu0 }
 0x57c   :  { %v5883_v58 = vpop.f32.mrb[83].mxu0 }
 0x57d   :  { %6551 = shalt.err (!%p6548_p4)
}
 0x57e   :  { %s6552_s9 = scalar_lea.hbm %s8588_s3, 2048 }
 0x57f   :  { %p6553_p5 = scmp.ne.s32.totalorder %s8588_s3, %s6552_s9  ;;  %p6556_p6 = scmp.lt.u32.totalorder %s6552_s9, %s8588_s3 }
 0x581   :  { %p6558_p7 = pnand %p6556_p6, %p6553_p5 }
 0x583   :  { %6561 = shalt.err (!%p6558_p7)
}
 0x584   :  { %s6567_s14 = smov 64   ;;  %s6568_s15 = smov 4  }
 0x585   :  { %3928 = dma.vmem_to_hbm [thread:$0]  %s3923_s5, 2048, %s8588_s3, [#allocation3], %s6567_s14, %s6567_s14, %s6568_s15  }
 0x586   :  { %6562 = dma.done.wait [#allocation3], 2048  }
 0x587   :  { %6563 = vsyncadd [#allocation3], 4294965248 }
 0x588   :  { %3932 = vsyncpa [#allocation3], 1 }

</bundles_post_ra>
